<compile_context>
chip_gen: v7x
topology: tpu7x:2x2x1
jax: 0.10.0
libtpu: 0.0.40
codegen_flags: <defaults>
</compile_context>

<pallas_src>
from functools import partial

import jax
import jax.numpy as jnp
from jax.experimental import pallas as pl
from jax.experimental.pallas import tpu as pltpu


HIDDEN_1 = 32   # hidden_dim_1
HIDDEN_2 = 32   # hidden_dim_2
LAYER1 = 2
LAYER2 = 1
LAYER3 = 1
MAX_X = 8


# ----------------------------------------------------------------------------
# Fused Pallas kernel: whole LocalFWLNet forward, VMEM resident.
# ----------------------------------------------------------------------------
def _fused_kernel(n, h2,
                  x0_ref, ahat_ref, adjf_ref, rowsel_ref, colsel_ref,
                  psrc_ref, pdst_ref, pfwd_ref, prev_ref,
                  g1w_ref, g1b_ref, g2w_ref, g2b_ref,
                  m1w_ref, m1b_ref, m2w_ref, m2b_ref,
                  m3w_ref, m3b_ref, lw_ref, lb_ref,
                  out_ref):
    f32 = jnp.float32
    bf16 = jnp.bfloat16

    def mxu(a, b):
        # bf16 operands, f32 accumulation on the MXU.
        return jnp.dot(a.astype(bf16), b.astype(bf16), preferred_element_type=f32)

    def sel(s, v):
        # exact one-hot / selector gather as an f32 matmul (selection, not compute)
        return jnp.dot(s, v, preferred_element_type=f32)

    # ---- 1) GCN stack: ReLU(GraphNorm(A_hat @ (X @ W) + b)) x LAYER1 ----
    X = x0_ref[...]
    ahat = ahat_ref[...]
    for w_ref, b_ref in ((g1w_ref, g1b_ref), (g2w_ref, g2b_ref)):     # LAYER1 == 2
        h = mxu(ahat, mxu(X, w_ref[...])) + b_ref[...]
        # GraphNorm over the node axis, per feature (unit affine; see TODO above)
        mu = jnp.mean(h, axis=0, keepdims=True)
        c = h - mu
        var = jnp.mean(c * c, axis=0, keepdims=True)
        X = jnp.maximum(c * jax.lax.rsqrt(var + 1e-5), 0.0)

    # ---- 2) node-pair products for the prediction pairs ----
    xx = sel(psrc_ref[...], X) * sel(pdst_ref[...], X)                 # (P, h1)

    # ---- 3) dense edge features: val[(i,j)] = concat(X[i], X[j]) ----
    val = jnp.concatenate([sel(rowsel_ref[...], X), sel(colsel_ref[...], X)], axis=1)
    adj = adjf_ref[...]                                                # (n*n, 1) mask

    # mlps_1: Linear + ReLU, restricted to the edge support
    x_e = jnp.maximum(mxu(val, m1w_ref[...]) + m1b_ref[...], 0.0) * adj
    curr = adj
    mul = None

    # ---- 4) local-FWL iterations (dense masked sparse_bmm / sparse_cat) ----
    # TODO(synk): LAYER2 / LAYER3 > 1 would need per-layer mlp2/mlp3 weights.
    for it in range(LAYER3):
        if it < LAYER2:
            mul = jnp.maximum(mxu(val, m2w_ref[...]) + m2b_ref[...], 0.0) * adj

        # extra channel carries the structural support (path count)
        lhs = jnp.concatenate([x_e * curr, curr], axis=1).reshape(n, n, h2 + 1)
        rhs = jnp.concatenate([mul, adj], axis=1).reshape(n, n, h2 + 1)

        # channel-last contraction: acc[i,j,c] = sum_k lhs[i,k,c] * rhs[k,j,c]
        acc = jnp.zeros((n, n, h2 + 1), f32)
        for k in range(n):
            acc = acc + lhs[:, k:k + 1, :] * rhs[k:k + 1, :, :]
        r = acc.reshape(n * n, h2 + 1)

        path_cnt = r[:, h2:h2 + 1]                                     # (n*n, 1)
        union = ((path_cnt + adj) > 0.0).astype(f32)                   # sparse_cat support
        value = jnp.concatenate([r[:, :h2], adj], axis=1)              # (n*n, h2+1)

        # mlps_3: Linear -> GraphNorm over support entries -> ReLU (masked)
        h = (mxu(value, m3w_ref[...]) + m3b_ref[...]) * union
        cnt = jnp.maximum(jnp.sum(union, axis=0, keepdims=True), 1.0)
        mu = jnp.sum(h, axis=0, keepdims=True) / cnt
        c = (h - mu) * union
        var = jnp.sum(c * c, axis=0, keepdims=True) / cnt
        x_e = jnp.maximum(c * jax.lax.rsqrt(var + 1e-5), 0.0) * union
        curr = union

    # ---- 5) symmetrize (x * x^T over the support) + gather prediction pairs ----
    pair = sel(pfwd_ref[...], x_e) * sel(prev_ref[...], x_e)           # (P, h2)

    # ---- 6) final linear head ----
    feat = jnp.concatenate([pair, xx], axis=1)                         # (P, h2 + h1)
    out_ref[...] = jnp.sum(feat * lw_ref[...], axis=1, keepdims=True) + lb_ref[...]


# ----------------------------------------------------------------------------
# Parameters + forward wrapper (glue: embedding lookup, graph setup, selectors)
# ----------------------------------------------------------------------------
def init_params(key):
    ks = jax.random.split(key, 16)
    s = 0.1
    params = {
        "emb": s * jax.random.normal(ks[0], (MAX_X + 1, HIDDEN_1), jnp.float32),
        "gcn": [
            (s * jax.random.normal(ks[1], (HIDDEN_1, HIDDEN_1), jnp.float32),
             s * jax.random.normal(ks[2], (HIDDEN_1,), jnp.float32)),
            (s * jax.random.normal(ks[3], (HIDDEN_1, HIDDEN_1), jnp.float32),
             s * jax.random.normal(ks[4], (HIDDEN_1,), jnp.float32)),
        ],
        "mlp1_w": s * jax.random.normal(ks[5], (2 * HIDDEN_1, HIDDEN_2), jnp.float32),
        "mlp1_b": s * jax.random.normal(ks[6], (HIDDEN_2,), jnp.float32),
        "mlp2_w": [s * jax.random.normal(ks[7], (2 * HIDDEN_1, HIDDEN_2), jnp.float32)],
        "mlp2_b": [s * jax.random.normal(ks[8], (HIDDEN_2,), jnp.float32)],
        "mlp3_w": [s * jax.random.normal(ks[9], (HIDDEN_2 + 1, HIDDEN_2), jnp.float32)],
        "mlp3_b": [s * jax.random.normal(ks[10], (HIDDEN_2,), jnp.float32)],
        "lin_dir_w": s * jax.random.normal(ks[11], (HIDDEN_1 + HIDDEN_2, 1), jnp.float32),
        "lin_dir_b": s * jax.random.normal(ks[12], (1,), jnp.float32),
    }
    return params


@jax.jit
def local_fwl_forward(params, x_idx, ei, pos):
    n = x_idx.shape[0]
    h1, h2 = HIDDEN_1, HIDDEN_2
    p = pos.shape[0]

    # node embedding lookup (glue gather)
    x0 = params["emb"][x_idx]                                          # (n, h1)

    # GCN normalization A_hat = D^-1/2 (A + I) D^-1/2 (structural setup)
    adj = jnp.zeros((n, n), jnp.float32).at[ei[0], ei[1]].set(1.0)
    adj_sl = adj.at[jnp.arange(n), jnp.arange(n)].set(1.0)
    deg = jnp.sum(adj_sl, axis=1)
    dinv = jax.lax.rsqrt(jnp.maximum(deg, 1.0))
    a_hat = dinv[:, None] * adj_sl * dinv[None, :]

    # structural selector / one-hot matrices consumed inside the kernel
    eye = jnp.eye(n, dtype=jnp.float32)
    row_sel = jnp.repeat(eye, n, axis=0)                               # row i*n+j -> e_i
    col_sel = jnp.tile(eye, (n, 1))                                    # row i*n+j -> e_j
    adj_flat = adj.reshape(n * n, 1)
    psrc = jax.nn.one_hot(pos[:, 0], n, dtype=jnp.float32)
    pdst = jax.nn.one_hot(pos[:, 1], n, dtype=jnp.float32)
    pfwd = jax.nn.one_hot(pos[:, 0] * n + pos[:, 1], n * n, dtype=jnp.float32)
    prev = jax.nn.one_hot(pos[:, 1] * n + pos[:, 0], n * n, dtype=jnp.float32)

    (g1w, g1b), (g2w, g2b) = params["gcn"]

    return pl.pallas_call(
        partial(_fused_kernel, n, h2),
        out_shape=jax.ShapeDtypeStruct((p, 1), jnp.float32),
        compiler_params=pltpu.CompilerParams(vmem_limit_bytes=32 * 1024 * 1024),
    )(
        x0, a_hat, adj_flat, row_sel, col_sel, psrc, pdst, pfwd, prev,
        g1w, g1b.reshape(1, h1), g2w, g2b.reshape(1, h1),
        params["mlp1_w"], params["mlp1_b"].reshape(1, h2),
        params["mlp2_w"][0], params["mlp2_b"][0].reshape(1, h2),
        params["mlp3_w"][0], params["mlp3_b"][0].reshape(1, h2),
        params["lin_dir_w"].reshape(1, h1 + h2), params["lin_dir_b"].reshape(1, 1),
    )


# ----------------------------------------------------------------------------
# Example run
# ----------------------------------------------------------------------------
if __name__ == "__main__":
    key = jax.random.PRNGKey(0)
    k_param, k_pos = jax.random.split(key)

    n = 16
    # deterministic small graph: bidirected ring + a few chords
    src = jnp.arange(n)
    dst = (src + 1) % n
    extra_s = jnp.array([0, 2, 5, 7, 9, 11], dtype=jnp.int32)
    extra_d = jnp.array([8, 10, 13, 15, 1, 3], dtype=jnp.int32)
    ei = jnp.stack([
        jnp.concatenate([src, dst, extra_s, extra_d]),
        jnp.concatenate([dst, src, extra_d, extra_s]),
    ]).astype(jnp.int32)                                               # (2, 44)

    # node "x" = out-degree indices into the embedding table
    deg = jnp.zeros((n,), jnp.int32).at[ei[0]].add(1)
    x_idx = jnp.clip(deg, 0, MAX_X)

    # prediction pairs
    pos = jax.random.randint(k_pos, (8, 2), 0, n, dtype=jnp.int32)

    params = init_params(k_param)
    out = local_fwl_forward(params, x_idx, ei, pos)
    out = jax.block_until_ready(out)
    assert out.shape == (8, 1)
    print("KERNEL_OK")
</pallas_src>

<mosaic_0001>
module attributes {stable_mosaic.version = 11 : i64} {
  func.func @_fused_kernel(%arg0: memref<16x32xf32, #tpu.memory_space<vmem>>, %arg1: memref<16x16xf32, #tpu.memory_space<vmem>>, %arg2: memref<256x1xf32, #tpu.memory_space<vmem>>, %arg3: memref<256x16xf32, #tpu.memory_space<vmem>>, %arg4: memref<256x16xf32, #tpu.memory_space<vmem>>, %arg5: memref<8x16xf32, #tpu.memory_space<vmem>>, %arg6: memref<8x16xf32, #tpu.memory_space<vmem>>, %arg7: memref<8x256xf32, #tpu.memory_space<vmem>>, %arg8: memref<8x256xf32, #tpu.memory_space<vmem>>, %arg9: memref<32x32xf32, #tpu.memory_space<vmem>>, %arg10: memref<1x32xf32, #tpu.memory_space<vmem>>, %arg11: memref<32x32xf32, #tpu.memory_space<vmem>>, %arg12: memref<1x32xf32, #tpu.memory_space<vmem>>, %arg13: memref<64x32xf32, #tpu.memory_space<vmem>>, %arg14: memref<1x32xf32, #tpu.memory_space<vmem>>, %arg15: memref<64x32xf32, #tpu.memory_space<vmem>>, %arg16: memref<1x32xf32, #tpu.memory_space<vmem>>, %arg17: memref<33x32xf32, #tpu.memory_space<vmem>>, %arg18: memref<1x32xf32, #tpu.memory_space<vmem>>, %arg19: memref<1x64xf32, #tpu.memory_space<vmem>>, %arg20: memref<1x1xf32, #tpu.memory_space<vmem>>, %arg21: memref<8x1xf32, #tpu.memory_space<vmem>>) attributes {dimension_semantics = [], scalar_prefetch = 0 : i64, scratch_operands = 0 : i64, tpu.core_type = #tpu.core_type<tc>} {
    %c0 = arith.constant 0 : index
    %c0_0 = arith.constant 0 : index
    %0 = vector.load %arg0[%c0, %c0_0] : memref<16x32xf32, #tpu.memory_space<vmem>>, vector<16x32xf32>
    %c0_1 = arith.constant 0 : index
    %c0_2 = arith.constant 0 : index
    %1 = vector.load %arg1[%c0_1, %c0_2] : memref<16x16xf32, #tpu.memory_space<vmem>>, vector<16x16xf32>
    %c0_3 = arith.constant 0 : index
    %c0_4 = arith.constant 0 : index
    %2 = vector.load %arg9[%c0_3, %c0_4] : memref<32x32xf32, #tpu.memory_space<vmem>>, vector<32x32xf32>
    %3 = arith.truncf %0 : vector<16x32xf32> to vector<16x32xbf16>
    %4 = arith.truncf %2 : vector<32x32xf32> to vector<32x32xbf16>
    %cst = arith.constant dense<0.000000e+00> : vector<16x32xf32>
    %5 = tpu.matmul %3, %4, %cst {dimension_numbers = #tpu.dot_dimension_numbers<[1], [0], [0], [1], [0, 0, 1, 1], [], []>} : vector<16x32xbf16>, vector<32x32xbf16>, vector<16x32xf32> -> vector<16x32xf32>
    %6 = arith.truncf %1 : vector<16x16xf32> to vector<16x16xbf16>
    %7 = arith.truncf %5 : vector<16x32xf32> to vector<16x32xbf16>
    %cst_5 = arith.constant dense<0.000000e+00> : vector<16x32xf32>
    %8 = tpu.matmul %6, %7, %cst_5 {dimension_numbers = #tpu.dot_dimension_numbers<[1], [0], [0], [1], [0, 0, 1, 1], [], []>} : vector<16x16xbf16>, vector<16x32xbf16>, vector<16x32xf32> -> vector<16x32xf32>
    %c0_6 = arith.constant 0 : index
    %c0_7 = arith.constant 0 : index
    %9 = vector.load %arg10[%c0_6, %c0_7] : memref<1x32xf32, #tpu.memory_space<vmem>>, vector<1x32xf32>
    %10 = vector.broadcast %9 : vector<1x32xf32> to vector<16x32xf32>
    %11 = arith.addf %8, %10 : vector<16x32xf32>
    %cst_8 = arith.constant dense<0.000000e+00> : vector<32xf32>
    %12 = vector.multi_reduction <add>, %11, %cst_8 [0] : vector<16x32xf32> to vector<32xf32>
    %13 = vector.shape_cast %12 : vector<32xf32> to vector<1x32xf32>
    %cst_9 = arith.constant 1.600000e+01 : f32
    %14 = vector.broadcast %cst_9 : f32 to vector<1x32xf32>
    %15 = arith.divf %13, %14 : vector<1x32xf32>
    %16 = vector.broadcast %15 : vector<1x32xf32> to vector<16x32xf32>
    %17 = arith.subf %11, %16 : vector<16x32xf32>
    %18 = arith.mulf %17, %17 : vector<16x32xf32>
    %cst_10 = arith.constant dense<0.000000e+00> : vector<32xf32>
    %19 = vector.multi_reduction <add>, %18, %cst_10 [0] : vector<16x32xf32> to vector<32xf32>
    %20 = vector.shape_cast %19 : vector<32xf32> to vector<1x32xf32>
    %cst_11 = arith.constant 1.600000e+01 : f32
    %21 = vector.broadcast %cst_11 : f32 to vector<1x32xf32>
    %22 = arith.divf %20, %21 : vector<1x32xf32>
    %cst_12 = arith.constant 9.99999974E-6 : f32
    %23 = vector.broadcast %cst_12 : f32 to vector<1x32xf32>
    %24 = arith.addf %22, %23 : vector<1x32xf32>
    %25 = math.rsqrt %24 : vector<1x32xf32>
    %26 = vector.broadcast %25 : vector<1x32xf32> to vector<16x32xf32>
    %27 = arith.mulf %17, %26 : vector<16x32xf32>
    %cst_13 = arith.constant 0.000000e+00 : f32
    %28 = vector.broadcast %cst_13 : f32 to vector<16x32xf32>
    %29 = arith.maximumf %27, %28 : vector<16x32xf32>
    %c0_14 = arith.constant 0 : index
    %c0_15 = arith.constant 0 : index
    %30 = vector.load %arg11[%c0_14, %c0_15] : memref<32x32xf32, #tpu.memory_space<vmem>>, vector<32x32xf32>
    %31 = arith.truncf %29 : vector<16x32xf32> to vector<16x32xbf16>
    %32 = arith.truncf %30 : vector<32x32xf32> to vector<32x32xbf16>
    %cst_16 = arith.constant dense<0.000000e+00> : vector<16x32xf32>
    %33 = tpu.matmul %31, %32, %cst_16 {dimension_numbers = #tpu.dot_dimension_numbers<[1], [0], [0], [1], [0, 0, 1, 1], [], []>} : vector<16x32xbf16>, vector<32x32xbf16>, vector<16x32xf32> -> vector<16x32xf32>
    %34 = arith.truncf %1 : vector<16x16xf32> to vector<16x16xbf16>
    %35 = arith.truncf %33 : vector<16x32xf32> to vector<16x32xbf16>
    %cst_17 = arith.constant dense<0.000000e+00> : vector<16x32xf32>
    %36 = tpu.matmul %34, %35, %cst_17 {dimension_numbers = #tpu.dot_dimension_numbers<[1], [0], [0], [1], [0, 0, 1, 1], [], []>} : vector<16x16xbf16>, vector<16x32xbf16>, vector<16x32xf32> -> vector<16x32xf32>
    %c0_18 = arith.constant 0 : index
    %c0_19 = arith.constant 0 : index
    %37 = vector.load %arg12[%c0_18, %c0_19] : memref<1x32xf32, #tpu.memory_space<vmem>>, vector<1x32xf32>
    %38 = vector.broadcast %37 : vector<1x32xf32> to vector<16x32xf32>
    %39 = arith.addf %36, %38 : vector<16x32xf32>
    %cst_20 = arith.constant dense<0.000000e+00> : vector<32xf32>
    %40 = vector.multi_reduction <add>, %39, %cst_20 [0] : vector<16x32xf32> to vector<32xf32>
    %41 = vector.shape_cast %40 : vector<32xf32> to vector<1x32xf32>
    %cst_21 = arith.constant 1.600000e+01 : f32
    %42 = vector.broadcast %cst_21 : f32 to vector<1x32xf32>
    %43 = arith.divf %41, %42 : vector<1x32xf32>
    %44 = vector.broadcast %43 : vector<1x32xf32> to vector<16x32xf32>
    %45 = arith.subf %39, %44 : vector<16x32xf32>
    %46 = arith.mulf %45, %45 : vector<16x32xf32>
    %cst_22 = arith.constant dense<0.000000e+00> : vector<32xf32>
    %47 = vector.multi_reduction <add>, %46, %cst_22 [0] : vector<16x32xf32> to vector<32xf32>
    %48 = vector.shape_cast %47 : vector<32xf32> to vector<1x32xf32>
    %cst_23 = arith.constant 1.600000e+01 : f32
    %49 = vector.broadcast %cst_23 : f32 to vector<1x32xf32>
    %50 = arith.divf %48, %49 : vector<1x32xf32>
    %cst_24 = arith.constant 9.99999974E-6 : f32
    %51 = vector.broadcast %cst_24 : f32 to vector<1x32xf32>
    %52 = arith.addf %50, %51 : vector<1x32xf32>
    %53 = math.rsqrt %52 : vector<1x32xf32>
    %54 = vector.broadcast %53 : vector<1x32xf32> to vector<16x32xf32>
    %55 = arith.mulf %45, %54 : vector<16x32xf32>
    %cst_25 = arith.constant 0.000000e+00 : f32
    %56 = vector.broadcast %cst_25 : f32 to vector<16x32xf32>
    %57 = arith.maximumf %55, %56 : vector<16x32xf32>
    %c0_26 = arith.constant 0 : index
    %c0_27 = arith.constant 0 : index
    %58 = vector.load %arg5[%c0_26, %c0_27] : memref<8x16xf32, #tpu.memory_space<vmem>>, vector<8x16xf32>
    %cst_28 = arith.constant dense<0.000000e+00> : vector<8x32xf32>
    %59 = tpu.matmul %58, %57, %cst_28 {dimension_numbers = #tpu.dot_dimension_numbers<[1], [0], [0], [1], [0, 0, 1, 1], [], []>} : vector<8x16xf32>, vector<16x32xf32>, vector<8x32xf32> -> vector<8x32xf32>
    %c0_29 = arith.constant 0 : index
    %c0_30 = arith.constant 0 : index
    %60 = vector.load %arg6[%c0_29, %c0_30] : memref<8x16xf32, #tpu.memory_space<vmem>>, vector<8x16xf32>
    %cst_31 = arith.constant dense<0.000000e+00> : vector<8x32xf32>
    %61 = tpu.matmul %60, %57, %cst_31 {dimension_numbers = #tpu.dot_dimension_numbers<[1], [0], [0], [1], [0, 0, 1, 1], [], []>} : vector<8x16xf32>, vector<16x32xf32>, vector<8x32xf32> -> vector<8x32xf32>
    %62 = arith.mulf %59, %61 : vector<8x32xf32>
    %c0_32 = arith.constant 0 : index
    %c0_33 = arith.constant 0 : index
    %63 = vector.load %arg3[%c0_32, %c0_33] : memref<256x16xf32, #tpu.memory_space<vmem>>, vector<256x16xf32>
    %cst_34 = arith.constant dense<0.000000e+00> : vector<256x32xf32>
    %64 = tpu.matmul %63, %57, %cst_34 {dimension_numbers = #tpu.dot_dimension_numbers<[1], [0], [0], [1], [0, 0, 1, 1], [], []>} : vector<256x16xf32>, vector<16x32xf32>, vector<256x32xf32> -> vector<256x32xf32>
    %c0_35 = arith.constant 0 : index
    %c0_36 = arith.constant 0 : index
    %65 = vector.load %arg4[%c0_35, %c0_36] : memref<256x16xf32, #tpu.memory_space<vmem>>, vector<256x16xf32>
    %cst_37 = arith.constant dense<0.000000e+00> : vector<256x32xf32>
    %66 = tpu.matmul %65, %57, %cst_37 {dimension_numbers = #tpu.dot_dimension_numbers<[1], [0], [0], [1], [0, 0, 1, 1], [], []>} : vector<256x16xf32>, vector<16x32xf32>, vector<256x32xf32> -> vector<256x32xf32>
    %67 = tpu.concatenate %64, %66 in 1 : vector<256x32xf32>, vector<256x32xf32> -> vector<256x64xf32>
    %c0_38 = arith.constant 0 : index
    %c0_39 = arith.constant 0 : index
    %68 = vector.load %arg2[%c0_38, %c0_39] : memref<256x1xf32, #tpu.memory_space<vmem>>, vector<256x1xf32>
    %c0_40 = arith.constant 0 : index
    %c0_41 = arith.constant 0 : index
    %69 = vector.load %arg13[%c0_40, %c0_41] : memref<64x32xf32, #tpu.memory_space<vmem>>, vector<64x32xf32>
    %70 = arith.truncf %67 : vector<256x64xf32> to vector<256x64xbf16>
    %71 = arith.truncf %69 : vector<64x32xf32> to vector<64x32xbf16>
    %cst_42 = arith.constant dense<0.000000e+00> : vector<256x32xf32>
    %72 = tpu.matmul %70, %71, %cst_42 {dimension_numbers = #tpu.dot_dimension_numbers<[1], [0], [0], [1], [0, 0, 1, 1], [], []>} : vector<256x64xbf16>, vector<64x32xbf16>, vector<256x32xf32> -> vector<256x32xf32>
    %c0_43 = arith.constant 0 : index
    %c0_44 = arith.constant 0 : index
    %73 = vector.load %arg14[%c0_43, %c0_44] : memref<1x32xf32, #tpu.memory_space<vmem>>, vector<1x32xf32>
    %74 = vector.broadcast %73 : vector<1x32xf32> to vector<256x32xf32>
    %75 = arith.addf %72, %74 : vector<256x32xf32>
    %cst_45 = arith.constant 0.000000e+00 : f32
    %76 = vector.broadcast %cst_45 : f32 to vector<256x32xf32>
    %77 = arith.maximumf %75, %76 : vector<256x32xf32>
    %78 = vector.broadcast %68 : vector<256x1xf32> to vector<256x32xf32>
    %79 = arith.mulf %77, %78 : vector<256x32xf32>
    %c0_46 = arith.constant 0 : index
    %c0_47 = arith.constant 0 : index
    %80 = vector.load %arg15[%c0_46, %c0_47] : memref<64x32xf32, #tpu.memory_space<vmem>>, vector<64x32xf32>
    %81 = arith.truncf %67 : vector<256x64xf32> to vector<256x64xbf16>
    %82 = arith.truncf %80 : vector<64x32xf32> to vector<64x32xbf16>
    %cst_48 = arith.constant dense<0.000000e+00> : vector<256x32xf32>
    %83 = tpu.matmul %81, %82, %cst_48 {dimension_numbers = #tpu.dot_dimension_numbers<[1], [0], [0], [1], [0, 0, 1, 1], [], []>} : vector<256x64xbf16>, vector<64x32xbf16>, vector<256x32xf32> -> vector<256x32xf32>
    %c0_49 = arith.constant 0 : index
    %c0_50 = arith.constant 0 : index
    %84 = vector.load %arg16[%c0_49, %c0_50] : memref<1x32xf32, #tpu.memory_space<vmem>>, vector<1x32xf32>
    %85 = vector.broadcast %84 : vector<1x32xf32> to vector<256x32xf32>
    %86 = arith.addf %83, %85 : vector<256x32xf32>
    %cst_51 = arith.constant 0.000000e+00 : f32
    %87 = vector.broadcast %cst_51 : f32 to vector<256x32xf32>
    %88 = arith.maximumf %86, %87 : vector<256x32xf32>
    %89 = vector.broadcast %68 : vector<256x1xf32> to vector<256x32xf32>
    %90 = arith.mulf %88, %89 : vector<256x32xf32>
    %91 = vector.broadcast %68 : vector<256x1xf32> to vector<256x32xf32>
    %92 = arith.mulf %79, %91 : vector<256x32xf32>
    %93 = tpu.concatenate %92, %68 in 1 : vector<256x32xf32>, vector<256x1xf32> -> vector<256x33xf32>
    %94 = vector.shape_cast %93 : vector<256x33xf32> to vector<16x16x33xf32>
    %95 = tpu.concatenate %90, %68 in 1 : vector<256x32xf32>, vector<256x1xf32> -> vector<256x33xf32>
    %96 = vector.shape_cast %95 : vector<256x33xf32> to vector<16x16x33xf32>
    %cst_52 = arith.constant 0.000000e+00 : f32
    %97 = vector.broadcast %cst_52 : f32 to vector<16x16x33xf32>
    %98 = vector.extract_strided_slice %94 {offsets = [0, 0, 0], sizes = [16, 1, 33], strides = [1, 1, 1]} : vector<16x16x33xf32> to vector<16x1x33xf32>
    %99 = vector.extract_strided_slice %96 {offsets = [0, 0, 0], sizes = [1, 16, 33], strides = [1, 1, 1]} : vector<16x16x33xf32> to vector<1x16x33xf32>
    %100 = vector.broadcast %98 : vector<16x1x33xf32> to vector<16x16x33xf32>
    %101 = vector.broadcast %99 : vector<1x16x33xf32> to vector<16x16x33xf32>
    %102 = arith.mulf %100, %101 : vector<16x16x33xf32>
    %103 = arith.addf %97, %102 : vector<16x16x33xf32>
    %104 = vector.extract_strided_slice %94 {offsets = [0, 1, 0], sizes = [16, 1, 33], strides = [1, 1, 1]} : vector<16x16x33xf32> to vector<16x1x33xf32>
    %105 = vector.extract_strided_slice %96 {offsets = [1, 0, 0], sizes = [1, 16, 33], strides = [1, 1, 1]} : vector<16x16x33xf32> to vector<1x16x33xf32>
    %106 = vector.broadcast %104 : vector<16x1x33xf32> to vector<16x16x33xf32>
    %107 = vector.broadcast %105 : vector<1x16x33xf32> to vector<16x16x33xf32>
    %108 = arith.mulf %106, %107 : vector<16x16x33xf32>
    %109 = arith.addf %103, %108 : vector<16x16x33xf32>
    %110 = vector.extract_strided_slice %94 {offsets = [0, 2, 0], sizes = [16, 1, 33], strides = [1, 1, 1]} : vector<16x16x33xf32> to vector<16x1x33xf32>
    %111 = vector.extract_strided_slice %96 {offsets = [2, 0, 0], sizes = [1, 16, 33], strides = [1, 1, 1]} : vector<16x16x33xf32> to vector<1x16x33xf32>
    %112 = vector.broadcast %110 : vector<16x1x33xf32> to vector<16x16x33xf32>
    %113 = vector.broadcast %111 : vector<1x16x33xf32> to vector<16x16x33xf32>
    %114 = arith.mulf %112, %113 : vector<16x16x33xf32>
    %115 = arith.addf %109, %114 : vector<16x16x33xf32>
    %116 = vector.extract_strided_slice %94 {offsets = [0, 3, 0], sizes = [16, 1, 33], strides = [1, 1, 1]} : vector<16x16x33xf32> to vector<16x1x33xf32>
    %117 = vector.extract_strided_slice %96 {offsets = [3, 0, 0], sizes = [1, 16, 33], strides = [1, 1, 1]} : vector<16x16x33xf32> to vector<1x16x33xf32>
    %118 = vector.broadcast %116 : vector<16x1x33xf32> to vector<16x16x33xf32>
    %119 = vector.broadcast %117 : vector<1x16x33xf32> to vector<16x16x33xf32>
    %120 = arith.mulf %118, %119 : vector<16x16x33xf32>
    %121 = arith.addf %115, %120 : vector<16x16x33xf32>
    %122 = vector.extract_strided_slice %94 {offsets = [0, 4, 0], sizes = [16, 1, 33], strides = [1, 1, 1]} : vector<16x16x33xf32> to vector<16x1x33xf32>
    %123 = vector.extract_strided_slice %96 {offsets = [4, 0, 0], sizes = [1, 16, 33], strides = [1, 1, 1]} : vector<16x16x33xf32> to vector<1x16x33xf32>
    %124 = vector.broadcast %122 : vector<16x1x33xf32> to vector<16x16x33xf32>
    %125 = vector.broadcast %123 : vector<1x16x33xf32> to vector<16x16x33xf32>
    %126 = arith.mulf %124, %125 : vector<16x16x33xf32>
    %127 = arith.addf %121, %126 : vector<16x16x33xf32>
    %128 = vector.extract_strided_slice %94 {offsets = [0, 5, 0], sizes = [16, 1, 33], strides = [1, 1, 1]} : vector<16x16x33xf32> to vector<16x1x33xf32>
    %129 = vector.extract_strided_slice %96 {offsets = [5, 0, 0], sizes = [1, 16, 33], strides = [1, 1, 1]} : vector<16x16x33xf32> to vector<1x16x33xf32>
    %130 = vector.broadcast %128 : vector<16x1x33xf32> to vector<16x16x33xf32>
    %131 = vector.broadcast %129 : vector<1x16x33xf32> to vector<16x16x33xf32>
    %132 = arith.mulf %130, %131 : vector<16x16x33xf32>
    %133 = arith.addf %127, %132 : vector<16x16x33xf32>
    %134 = vector.extract_strided_slice %94 {offsets = [0, 6, 0], sizes = [16, 1, 33], strides = [1, 1, 1]} : vector<16x16x33xf32> to vector<16x1x33xf32>
    %135 = vector.extract_strided_slice %96 {offsets = [6, 0, 0], sizes = [1, 16, 33], strides = [1, 1, 1]} : vector<16x16x33xf32> to vector<1x16x33xf32>
    %136 = vector.broadcast %134 : vector<16x1x33xf32> to vector<16x16x33xf32>
    %137 = vector.broadcast %135 : vector<1x16x33xf32> to vector<16x16x33xf32>
    %138 = arith.mulf %136, %137 : vector<16x16x33xf32>
    %139 = arith.addf %133, %138 : vector<16x16x33xf32>
    %140 = vector.extract_strided_slice %94 {offsets = [0, 7, 0], sizes = [16, 1, 33], strides = [1, 1, 1]} : vector<16x16x33xf32> to vector<16x1x33xf32>
    %141 = vector.extract_strided_slice %96 {offsets = [7, 0, 0], sizes = [1, 16, 33], strides = [1, 1, 1]} : vector<16x16x33xf32> to vector<1x16x33xf32>
    %142 = vector.broadcast %140 : vector<16x1x33xf32> to vector<16x16x33xf32>
    %143 = vector.broadcast %141 : vector<1x16x33xf32> to vector<16x16x33xf32>
    %144 = arith.mulf %142, %143 : vector<16x16x33xf32>
    %145 = arith.addf %139, %144 : vector<16x16x33xf32>
    %146 = vector.extract_strided_slice %94 {offsets = [0, 8, 0], sizes = [16, 1, 33], strides = [1, 1, 1]} : vector<16x16x33xf32> to vector<16x1x33xf32>
    %147 = vector.extract_strided_slice %96 {offsets = [8, 0, 0], sizes = [1, 16, 33], strides = [1, 1, 1]} : vector<16x16x33xf32> to vector<1x16x33xf32>
    %148 = vector.broadcast %146 : vector<16x1x33xf32> to vector<16x16x33xf32>
    %149 = vector.broadcast %147 : vector<1x16x33xf32> to vector<16x16x33xf32>
    %150 = arith.mulf %148, %149 : vector<16x16x33xf32>
    %151 = arith.addf %145, %150 : vector<16x16x33xf32>
    %152 = vector.extract_strided_slice %94 {offsets = [0, 9, 0], sizes = [16, 1, 33], strides = [1, 1, 1]} : vector<16x16x33xf32> to vector<16x1x33xf32>
    %153 = vector.extract_strided_slice %96 {offsets = [9, 0, 0], sizes = [1, 16, 33], strides = [1, 1, 1]} : vector<16x16x33xf32> to vector<1x16x33xf32>
    %154 = vector.broadcast %152 : vector<16x1x33xf32> to vector<16x16x33xf32>
    %155 = vector.broadcast %153 : vector<1x16x33xf32> to vector<16x16x33xf32>
    %156 = arith.mulf %154, %155 : vector<16x16x33xf32>
    %157 = arith.addf %151, %156 : vector<16x16x33xf32>
    %158 = vector.extract_strided_slice %94 {offsets = [0, 10, 0], sizes = [16, 1, 33], strides = [1, 1, 1]} : vector<16x16x33xf32> to vector<16x1x33xf32>
    %159 = vector.extract_strided_slice %96 {offsets = [10, 0, 0], sizes = [1, 16, 33], strides = [1, 1, 1]} : vector<16x16x33xf32> to vector<1x16x33xf32>
    %160 = vector.broadcast %158 : vector<16x1x33xf32> to vector<16x16x33xf32>
    %161 = vector.broadcast %159 : vector<1x16x33xf32> to vector<16x16x33xf32>
    %162 = arith.mulf %160, %161 : vector<16x16x33xf32>
    %163 = arith.addf %157, %162 : vector<16x16x33xf32>
    %164 = vector.extract_strided_slice %94 {offsets = [0, 11, 0], sizes = [16, 1, 33], strides = [1, 1, 1]} : vector<16x16x33xf32> to vector<16x1x33xf32>
    %165 = vector.extract_strided_slice %96 {offsets = [11, 0, 0], sizes = [1, 16, 33], strides = [1, 1, 1]} : vector<16x16x33xf32> to vector<1x16x33xf32>
    %166 = vector.broadcast %164 : vector<16x1x33xf32> to vector<16x16x33xf32>
    %167 = vector.broadcast %165 : vector<1x16x33xf32> to vector<16x16x33xf32>
    %168 = arith.mulf %166, %167 : vector<16x16x33xf32>
    %169 = arith.addf %163, %168 : vector<16x16x33xf32>
    %170 = vector.extract_strided_slice %94 {offsets = [0, 12, 0], sizes = [16, 1, 33], strides = [1, 1, 1]} : vector<16x16x33xf32> to vector<16x1x33xf32>
    %171 = vector.extract_strided_slice %96 {offsets = [12, 0, 0], sizes = [1, 16, 33], strides = [1, 1, 1]} : vector<16x16x33xf32> to vector<1x16x33xf32>
    %172 = vector.broadcast %170 : vector<16x1x33xf32> to vector<16x16x33xf32>
    %173 = vector.broadcast %171 : vector<1x16x33xf32> to vector<16x16x33xf32>
    %174 = arith.mulf %172, %173 : vector<16x16x33xf32>
    %175 = arith.addf %169, %174 : vector<16x16x33xf32>
    %176 = vector.extract_strided_slice %94 {offsets = [0, 13, 0], sizes = [16, 1, 33], strides = [1, 1, 1]} : vector<16x16x33xf32> to vector<16x1x33xf32>
    %177 = vector.extract_strided_slice %96 {offsets = [13, 0, 0], sizes = [1, 16, 33], strides = [1, 1, 1]} : vector<16x16x33xf32> to vector<1x16x33xf32>
    %178 = vector.broadcast %176 : vector<16x1x33xf32> to vector<16x16x33xf32>
    %179 = vector.broadcast %177 : vector<1x16x33xf32> to vector<16x16x33xf32>
    %180 = arith.mulf %178, %179 : vector<16x16x33xf32>
    %181 = arith.addf %175, %180 : vector<16x16x33xf32>
    %182 = vector.extract_strided_slice %94 {offsets = [0, 14, 0], sizes = [16, 1, 33], strides = [1, 1, 1]} : vector<16x16x33xf32> to vector<16x1x33xf32>
    %183 = vector.extract_strided_slice %96 {offsets = [14, 0, 0], sizes = [1, 16, 33], strides = [1, 1, 1]} : vector<16x16x33xf32> to vector<1x16x33xf32>
    %184 = vector.broadcast %182 : vector<16x1x33xf32> to vector<16x16x33xf32>
    %185 = vector.broadcast %183 : vector<1x16x33xf32> to vector<16x16x33xf32>
    %186 = arith.mulf %184, %185 : vector<16x16x33xf32>
    %187 = arith.addf %181, %186 : vector<16x16x33xf32>
    %188 = vector.extract_strided_slice %94 {offsets = [0, 15, 0], sizes = [16, 1, 33], strides = [1, 1, 1]} : vector<16x16x33xf32> to vector<16x1x33xf32>
    %189 = vector.extract_strided_slice %96 {offsets = [15, 0, 0], sizes = [1, 16, 33], strides = [1, 1, 1]} : vector<16x16x33xf32> to vector<1x16x33xf32>
    %190 = vector.broadcast %188 : vector<16x1x33xf32> to vector<16x16x33xf32>
    %191 = vector.broadcast %189 : vector<1x16x33xf32> to vector<16x16x33xf32>
    %192 = arith.mulf %190, %191 : vector<16x16x33xf32>
    %193 = arith.addf %187, %192 : vector<16x16x33xf32>
    %194 = vector.shape_cast %193 : vector<16x16x33xf32> to vector<256x33xf32>
    %195 = vector.extract_strided_slice %194 {offsets = [0, 32], sizes = [256, 1], strides = [1, 1]} : vector<256x33xf32> to vector<256x1xf32>
    %196 = arith.addf %195, %68 : vector<256x1xf32>
    %cst_53 = arith.constant 0.000000e+00 : f32
    %197 = vector.broadcast %cst_53 : f32 to vector<256x1xf32>
    %198 = arith.cmpf ogt, %196, %197 : vector<256x1xf32>
    %199 = arith.extui %198 : vector<256x1xi1> to vector<256x1xi32>
    %200 = arith.sitofp %199 : vector<256x1xi32> to vector<256x1xf32>
    %201 = vector.extract_strided_slice %194 {offsets = [0, 0], sizes = [256, 32], strides = [1, 1]} : vector<256x33xf32> to vector<256x32xf32>
    %202 = tpu.concatenate %201, %68 in 1 : vector<256x32xf32>, vector<256x1xf32> -> vector<256x33xf32>
    %c0_54 = arith.constant 0 : index
    %c0_55 = arith.constant 0 : index
    %203 = vector.load %arg17[%c0_54, %c0_55] : memref<33x32xf32, #tpu.memory_space<vmem>>, vector<33x32xf32>
    %204 = arith.truncf %202 : vector<256x33xf32> to vector<256x33xbf16>
    %205 = arith.truncf %203 : vector<33x32xf32> to vector<33x32xbf16>
    %cst_56 = arith.constant dense<0.000000e+00> : vector<256x32xf32>
    %206 = tpu.matmul %204, %205, %cst_56 {dimension_numbers = #tpu.dot_dimension_numbers<[1], [0], [0], [1], [0, 0, 1, 1], [], []>} : vector<256x33xbf16>, vector<33x32xbf16>, vector<256x32xf32> -> vector<256x32xf32>
    %c0_57 = arith.constant 0 : index
    %c0_58 = arith.constant 0 : index
    %207 = vector.load %arg18[%c0_57, %c0_58] : memref<1x32xf32, #tpu.memory_space<vmem>>, vector<1x32xf32>
    %208 = vector.broadcast %207 : vector<1x32xf32> to vector<256x32xf32>
    %209 = arith.addf %206, %208 : vector<256x32xf32>
    %210 = vector.broadcast %200 : vector<256x1xf32> to vector<256x32xf32>
    %211 = arith.mulf %209, %210 : vector<256x32xf32>
    %cst_59 = arith.constant dense<0.000000e+00> : vector<1xf32>
    %212 = vector.multi_reduction <add>, %200, %cst_59 [0] : vector<256x1xf32> to vector<1xf32>
    %213 = vector.shape_cast %212 : vector<1xf32> to vector<1x1xf32>
    %cst_60 = arith.constant 1.000000e+00 : f32
    %214 = vector.broadcast %cst_60 : f32 to vector<1x1xf32>
    %215 = arith.maximumf %213, %214 : vector<1x1xf32>
    %cst_61 = arith.constant dense<0.000000e+00> : vector<32xf32>
    %216 = vector.multi_reduction <add>, %211, %cst_61 [0] : vector<256x32xf32> to vector<32xf32>
    %217 = vector.shape_cast %216 : vector<32xf32> to vector<1x32xf32>
    %218 = vector.broadcast %215 : vector<1x1xf32> to vector<1x32xf32>
    %219 = arith.divf %217, %218 : vector<1x32xf32>
    %220 = vector.broadcast %219 : vector<1x32xf32> to vector<256x32xf32>
    %221 = arith.subf %211, %220 : vector<256x32xf32>
    %222 = vector.broadcast %200 : vector<256x1xf32> to vector<256x32xf32>
    %223 = arith.mulf %221, %222 : vector<256x32xf32>
    %224 = arith.mulf %223, %223 : vector<256x32xf32>
    %cst_62 = arith.constant dense<0.000000e+00> : vector<32xf32>
    %225 = vector.multi_reduction <add>, %224, %cst_62 [0] : vector<256x32xf32> to vector<32xf32>
    %226 = vector.shape_cast %225 : vector<32xf32> to vector<1x32xf32>
    %227 = vector.broadcast %215 : vector<1x1xf32> to vector<1x32xf32>
    %228 = arith.divf %226, %227 : vector<1x32xf32>
    %cst_63 = arith.constant 9.99999974E-6 : f32
    %229 = vector.broadcast %cst_63 : f32 to vector<1x32xf32>
    %230 = arith.addf %228, %229 : vector<1x32xf32>
    %231 = math.rsqrt %230 : vector<1x32xf32>
    %232 = vector.broadcast %231 : vector<1x32xf32> to vector<256x32xf32>
    %233 = arith.mulf %223, %232 : vector<256x32xf32>
    %cst_64 = arith.constant 0.000000e+00 : f32
    %234 = vector.broadcast %cst_64 : f32 to vector<256x32xf32>
    %235 = arith.maximumf %233, %234 : vector<256x32xf32>
    %236 = vector.broadcast %200 : vector<256x1xf32> to vector<256x32xf32>
    %237 = arith.mulf %235, %236 : vector<256x32xf32>
    %c0_65 = arith.constant 0 : index
    %c0_66 = arith.constant 0 : index
    %238 = vector.load %arg7[%c0_65, %c0_66] : memref<8x256xf32, #tpu.memory_space<vmem>>, vector<8x256xf32>
    %cst_67 = arith.constant dense<0.000000e+00> : vector<8x32xf32>
    %239 = tpu.matmul %238, %237, %cst_67 {dimension_numbers = #tpu.dot_dimension_numbers<[1], [0], [0], [1], [0, 0, 1, 1], [], []>} : vector<8x256xf32>, vector<256x32xf32>, vector<8x32xf32> -> vector<8x32xf32>
    %c0_68 = arith.constant 0 : index
    %c0_69 = arith.constant 0 : index
    %240 = vector.load %arg8[%c0_68, %c0_69] : memref<8x256xf32, #tpu.memory_space<vmem>>, vector<8x256xf32>
    %cst_70 = arith.constant dense<0.000000e+00> : vector<8x32xf32>
    %241 = tpu.matmul %240, %237, %cst_70 {dimension_numbers = #tpu.dot_dimension_numbers<[1], [0], [0], [1], [0, 0, 1, 1], [], []>} : vector<8x256xf32>, vector<256x32xf32>, vector<8x32xf32> -> vector<8x32xf32>
    %242 = arith.mulf %239, %241 : vector<8x32xf32>
    %243 = tpu.concatenate %242, %62 in 1 : vector<8x32xf32>, vector<8x32xf32> -> vector<8x64xf32>
    %c0_71 = arith.constant 0 : index
    %c0_72 = arith.constant 0 : index
    %244 = vector.load %arg19[%c0_71, %c0_72] : memref<1x64xf32, #tpu.memory_space<vmem>>, vector<1x64xf32>
    %245 = vector.broadcast %244 : vector<1x64xf32> to vector<8x64xf32>
    %246 = arith.mulf %243, %245 : vector<8x64xf32>
    %cst_73 = arith.constant dense<0.000000e+00> : vector<8xf32>
    %247 = vector.multi_reduction <add>, %246, %cst_73 [1] : vector<8x64xf32> to vector<8xf32>
    %248 = vector.shape_cast %247 : vector<8xf32> to vector<8x1xf32>
    %c0_74 = arith.constant 0 : index
    %c0_75 = arith.constant 0 : index
    %249 = vector.load %arg20[%c0_74, %c0_75] : memref<1x1xf32, #tpu.memory_space<vmem>>, vector<1x1xf32>
    %250 = vector.broadcast %249 : vector<1x1xf32> to vector<8x1xf32>
    %251 = arith.addf %248, %250 : vector<8x1xf32>
    %c0_76 = arith.constant 0 : index
    %c0_77 = arith.constant 0 : index
    %252 = vector.load %arg21[%c0_76, %c0_77] : memref<8x1xf32, #tpu.memory_space<vmem>>, vector<8x1xf32>
    tpu.vector_store %arg21[%c0_76, %c0_77], %251 {strides = array<i32>} : memref<8x1xf32, #tpu.memory_space<vmem>>, vector<8x1xf32>,
    return
  }
}

</mosaic_0001>

<bundles_post_ra>
// kernel: local_fwl_forward.1
= control target key start
LH: loop header
LB: loop body
LE: loop exit
PB: predicated region body
PF: predicated region fallthrough
CT: control target
= control target key end

     0   :  { %v10531_v0 = vmov 0.0   ;;  %vm6347_vm0 = vmmov 0   ;;  %vm82_vm1 = vcmask 261120   ;;  %vm136_vm2 = vcmask 130048   ;;  %s10505_s9 = inlined_call_operand.vmem [shape: f32[32,32], index: 9, kind: input, shape index: {}]   ;;  %s10506_s0 = inlined_call_operand.vmem [shape: f32[16,32], index: 0, kind: input, shape index: {}]   ;;  %s10507_s1 = inlined_call_operand.vmem [shape: f32[16,16], index: 1, kind: input, shape index: {}]   ;;  %s10508_s11 = inlined_call_operand.vmem [shape: f32[32,32], index: 11, kind: input, shape index: {}]   ;;  %s10509_s10 = inlined_call_operand.vmem [shape: f32[1,32], index: 10, kind: input, shape index: {}]   ;;  %s10510_s12 = inlined_call_operand.vmem [shape: f32[1,32], index: 12, kind: input, shape index: {}]   ;;  %s10511_s5 = inlined_call_operand.vmem [shape: f32[8,16], index: 5, kind: input, shape index: {}]   ;;  %s10512_s6 = inlined_call_operand.vmem [shape: f32[8,16], index: 6, kind: input, shape index: {}]   ;;  %s10513_s3 = inlined_call_operand.vmem [shape: f32[256,16], index: 3, kind: input, shape index: {}]   ;;  %s10514_s4 = inlined_call_operand.vmem [shape: f32[256,16], index: 4, kind: input, shape index: {}]   ;;  %s10515_s15 = inlined_call_operand.vmem [shape: f32[64,32], index: 15, kind: input, shape index: {}]   ;;  %s10516_s13 = inlined_call_operand.vmem [shape: f32[64,32], index: 13, kind: input, shape index: {}]   ;;  %s10517_s2 = inlined_call_operand.vmem [shape: f32[256,1], index: 2, kind: input, shape index: {}]   ;;  %s10518_s14 = inlined_call_operand.vmem [shape: f32[1,32], index: 14, kind: input, shape index: {}]   ;;  %s10519_s16 = inlined_call_operand.vmem [shape: f32[1,32], index: 16, kind: input, shape index: {}]   ;;  %s10520_s17 = inlined_call_operand.vmem [shape: f32[33,32], index: 17, kind: input, shape index: {}]   ;;  %s10521_s18 = inlined_call_operand.vmem [shape: f32[1,32], index: 18, kind: input, shape index: {}]   ;;  %s10522_s7 = inlined_call_operand.vmem [shape: f32[8,256], index: 7, kind: input, shape index: {}]   ;;  %s10523_s8 = inlined_call_operand.vmem [shape: f32[8,256], index: 8, kind: input, shape index: {}]   ;;  %s10524_s20 = inlined_call_operand.<no memory space> [shape: f32[1,1], index: 20, kind: input, shape index: {}]   ;;  %s10525_s19 = inlined_call_operand.vmem [shape: f32[1,64], index: 19, kind: input, shape index: {}]   ;;  %s10526_s21 = inlined_call_operand.vmem [shape: f32[8,1], index: 21, kind: output, shape index: {}]  }
   0x1   :  { %10806 = sst [smem:[#allocation203_spill]] %s10505_s9  ;;  %5897 = vmatprep.subr.bf16.mxu0 %v10531_v0  ;;  %5901 = vmatprep.mubr.msk.bf16.mxu0 %vm6347_vm0, %v10531_v0  ;;  %vm1424_vm3 = vcmask 523264   ;;  %vm4582_vm4 = vcmask 1040384   ;;  %vm4941_vm5 = vcmask 269568   ;;  %vm4533_vm8 = vcmask 269312  }
   0x2   :  { %10807 = sst [smem:[#allocation204_spill]] %s10506_s0  ;;  %s10812_s26 = sld [smem:[#allocation203_spill]]  ;;  %5905 = vmatprep.subr.bf16.mxu1 %v10531_v0  ;;  %5907 = vmatprep.mubr.msk.bf16.mxu1 %vm6347_vm0, %v10531_v0 }
   0x3   :  { %10808 = sst [smem:[#allocation205_spill]] %s10507_s1  ;;  %s10813_s22 = sld [smem:[#allocation204_spill]] }
   0x4   :  { %10809 = sst [smem:[#allocation206_spill]] %s10508_s11  ;;  %s10814_s25 = sld [smem:[#allocation205_spill]] }
   0x5   :  { %10810 = sst [smem:[#allocation207_spill]] %s10509_s10  ;;  %s10815_s29 = sld [smem:[#allocation206_spill]] }
   0x6   :  { %10811 = sst [smem:[#allocation208_spill]] %s10510_s12  ;;  %s10816_s1 = sld [smem:[#allocation207_spill]] }
   0x7   :  { %s10817_s27 = sld [smem:[#allocation208_spill]] }
   0x8   :  { %v75_v1 = vld [vmem:[%s10812_s26] sm:$0xff]  ;;  %v76_v2 = vld [vmem:[%s10812_s26 + $0x8] sm:$0xff]  ;;  %v77_v3 = vld [vmem:[%s10812_s26 + $0x10] sm:$0xff] }
   0x9   :  { %v80_v4 = vpack.c.bf16 %v76_v2, %v75_v1  ;;  %v78_v5 = vld [vmem:[%s10812_s26 + $0x18] sm:$0xff]  ;;  %v71_v7 = vld [vmem:[%s10813_s22] sm:$0xff]  ;;  %v72_v8 = vld [vmem:[%s10813_s22 + $0x8] sm:$0xff] }
   0xa   :  { %v81_v6 = vpack.c.bf16 %v78_v5, %v77_v3  ;;  %v79_v9 = vpack.c.bf16 %v72_v8, %v71_v7  ;;  %v73_v12 = vld [vmem:[%s10814_s25] sm:$0xff]  ;;  %v74_v13 = vld [vmem:[%s10814_s25 + $0x8] sm:$0xff] }
   0xb   :  { %5898 = vmatpush3.bf16.msra.mxu0 %v80_v4  ;;  %v6497_v17 = vpack.c.bf16 %v74_v13, %v73_v12  ;;  %v212_v18 = vld [vmem:[%s10815_s29] sm:$0xff]  ;;  %v213_v19 = vld [vmem:[%s10815_s29 + $0x8] sm:$0xff]  ;;  %v214_v21 = vld [vmem:[%s10815_s29 + $0x10] sm:$0xff]  ;;  %v6348_v4 = vmov 0.0|0.0  }
   0xc   :  { %5899 = vmatprep.subr.bf16.mxu0 %v10531_v0  ;;  %v217_v20 = vpack.c.bf16 %v213_v19, %v212_v18  ;;  %v215_v22 = vld [vmem:[%s10815_s29 + $0x18] sm:$0xff]  ;;  %v5528_v24 = vld [vmem:[%s10816_s1] ss:$0 sm:$0xff] }
   0xd   :  { %v218_v23 = vpack.c.bf16 %v215_v22, %v214_v21  ;;  %v5531_v5 = vld [vmem:[%s10817_s27] ss:$0 sm:$0xff] }
   0xf   :  { %5900 = vmatpush3.bf16.msra.mxu0 %v81_v6 }
  0x10   :  { %5919 = vmatprep.subr.bf16.mxu0 %v10531_v0 }
  0x12   :  { %5902 = vmatmul.mubr.msk.bf16.vlgmr.msra.gmra.mrb[0].mxu0 %vm82_vm1, %v79_v9 }
  0x13   :  { %5921 = vmatprep.mubr.msk.bf16.mxu0 %vm6347_vm0, %v10531_v0 }
  0xe5   :  { %v120_v10 = vpop.f32.mrb[0].mxu0 }
  0xe6   :  { %v5903_v11 = vpop.f32.mrb[1].mxu0 }
  0xe7   :  { %v123_v14 = vpop.f32.mrb[2].mxu0 }
  0xe8   :  { %v128_v15 = vpack.c.bf16 %v123_v14, %v120_v10  ;;  %v5904_v16 = vpop.f32.mrb[3].mxu0 }
  0xea   :  { %5906 = vmatpush3.bf16.msra.mxu1 %v128_v15 }
  0xeb   :  { %5911 = vmatprep.subr.bf16.mxu1 %v10531_v0 }
  0xed   :  { %5908 = vmatmul.mubr.msk.bf16.vlgmr.msra.gmra.mrb[0].mxu1 %vm136_vm2, %v6497_v17 }
  0xee   :  { %5915 = vmatprep.mubr.msk.bf16.mxu1 %vm6347_vm0, %v10531_v0  ;;  %5912 = vmatpush3.bf16.msra.mxu1 %v217_v20 }
  0xef   :  { %5913 = vmatprep.subr.bf16.mxu1 %v10531_v0 }
  0xf2   :  { %5914 = vmatpush3.bf16.msra.mxu1 %v218_v23 }
  0xf3   :  { %6161 = vmatprep.subr.bf16.mxu1 %v6348_v4 }
 0x1c0   :  { %v174_v25 = vpop.f32.mrb[0].mxu1 }
 0x1c1   :  { %v175_v26 = vadd.f32 %v5528_v24, %v174_v25  ;;  %v5909_v27 = vpop.f32.mrb[1].mxu1 }
 0x1c2   :  { %v177_v28 = vpop.f32.mrb[2].mxu1 }
 0x1c3   :  { %v178_v29 = vadd.f32 %v5528_v24, %v177_v28  ;;  %v5910_v30 = vpop.f32.mrb[3].mxu1  ;;  %v181_v31 = vsel %vm82_vm1, %v175_v26, 0.0 }
 0x1c5   :  { %v182_v32 = vsel %vm82_vm1, %v178_v29, 0.0 }
 0x1c6   :  { %v183_v33 = vadd.f32 %v182_v32, %v181_v31 }
 0x1c8   :  { %v184_v34 = vrot.slane %v183_v33, 4 }
 0x1ca   :  { %v185_v35 = vadd.f32 %v184_v34, %v183_v33 }
 0x1cc   :  { %v186_v36 = vrot.slane %v185_v35, 2 }
 0x1ce   :  { %v187_v37 = vadd.f32 %v186_v36, %v185_v35 }
 0x1d0   :  { %v188_v38 = vrot.slane %v187_v37, 1 }
 0x1d2   :  { %v189_v39 = vadd.f32 %v188_v38, %v187_v37 }
 0x1d4   :  { %v191_v40 = vmul.f32 0.0625, %v189_v39 }
 0x1d6   :  { %v192_v41 = vsub.f32 %v175_v26, %v191_v40  ;;  %v193_v42 = vsub.f32 %v178_v29, %v191_v40 }
 0x1d8   :  { %v194_v43 = vmul.f32 %v192_v41, %v192_v41  ;;  %v195_v44 = vmul.f32 %v193_v42, %v193_v42 }
 0x1da   :  { %v196_v45 = vsel %vm82_vm1, %v194_v43, 0.0  ;;  %v197_v46 = vsel %vm82_vm1, %v195_v44, 0.0  ;;  %v342_v43 = vld [vmem:[%s10511_s5] sm:$0xff] }
 0x1db   :  { %v198_v47 = vadd.f32 %v197_v46, %v196_v45  ;;  %v416_v44 = vld [vmem:[%s10512_s6] sm:$0xff]  ;;  %v497_v46 = vld [vmem:[%s10513_s3 + $0x30] sm:$0xff] }
 0x1dc   :  { %v491_v45 = vld [vmem:[%s10513_s3] sm:$0xff] }
 0x1dd   :  { %v199_v48 = vrot.slane %v198_v47, 4 }
 0x1df   :  { %v200_v49 = vadd.f32 %v199_v48, %v198_v47  ;;  %v492_v47 = vld [vmem:[%s10513_s3 + $0x8] sm:$0xff]  ;;  %v498_v48 = vld [vmem:[%s10513_s3 + $0x38] sm:$0xff] }
 0x1e1   :  { %v201_v50 = vrot.slane %v200_v49, 2 }
 0x1e3   :  { %v202_v51 = vadd.f32 %v201_v50, %v200_v49  ;;  %v493_v49 = vld [vmem:[%s10513_s3 + $0x10] sm:$0xff]  ;;  %v499_v50 = vld [vmem:[%s10513_s3 + $0x40] sm:$0xff] }
 0x1e5   :  { %v203_v52 = vrot.slane %v202_v51, 1 }
 0x1e7   :  { %v204_v53 = vadd.f32 %v203_v52, %v202_v51  ;;  %v494_v51 = vld [vmem:[%s10513_s3 + $0x18] sm:$0xff]  ;;  %v500_v52 = vld [vmem:[%s10513_s3 + $0x48] sm:$0xff] }
 0x1e9   :  { %v205_v54 = vmul.f32 0.0625, %v204_v53  ;;  %v495_v53 = vld [vmem:[%s10513_s3 + $0x20] sm:$0xff] }
 0x1eb   :  { %v206_v55 = vadd.f32 1e-05, %v205_v54  ;;  %v501_v54 = vld [vmem:[%s10513_s3 + $0x50] sm:$0xff] }
 0x1ed   :  { %6336 = vrsqrt.f32 %v206_v55  ;;  %v496_v55 = vld [vmem:[%s10513_s3 + $0x28] sm:$0xff] }
 0x1f7   :  { %v6337_v56 = vpop.eup %6336 }
 0x1f8   :  { %v208_v57 = vmul.f32 %v6337_v56, %v192_v41  ;;  %v209_v58 = vmul.f32 %v6337_v56, %v193_v42  ;;  %v502_v56 = vld [vmem:[%s10513_s3 + $0x58] sm:$0xff] }
 0x1fa   :  { %v210_v59 = vmax.f32 %v208_v57, 0.0  ;;  %v211_v60 = vmax.f32 %v209_v58, 0.0  ;;  %v844_v57 = vld [vmem:[%s10514_s4] sm:$0xff] }
 0x1fb   :  { %v503_v58 = vld [vmem:[%s10513_s3 + $0x60] sm:$0xff] }
 0x1fc   :  { %v216_v61 = vpack.c.bf16 %v211_v60, %v210_v59  ;;  %v845_v59 = vld [vmem:[%s10514_s4 + $0x8] sm:$0xff] }
 0x1fd   :  { %v504_v60 = vld [vmem:[%s10513_s3 + $0x68] sm:$0xff] }
 0x1fe   :  { %5916 = vmatmul.mubr.msk.bf16.vlgmr.msra.gmra.mrb[4].mxu1 %vm82_vm1, %v216_v61  ;;  %v846_v61 = vld [vmem:[%s10514_s4 + $0x10] sm:$0xff] }
 0x1ff   :  { %5929 = vmatprep.mubr.msk.f32.mxu1 %vm6347_vm0, %v10531_v0 }
 0x2d1   :  { %v256_v62 = vpop.f32.mrb[4].mxu1 }
 0x2d2   :  { %v5917_v63 = vpop.f32.mrb[5].mxu1 }
 0x2d3   :  { %v259_v1 = vpop.f32.mrb[6].mxu1  ;;  %v847_v63 = vld [vmem:[%s10514_s4 + $0x18] sm:$0xff] }
 0x2d4   :  { %v263_v2 = vpack.c.bf16 %v259_v1, %v256_v62  ;;  %v5918_v3 = vpop.f32.mrb[7].mxu1  ;;  %v505_v62 = vld [vmem:[%s10513_s3 + $0x70] sm:$0xff]  ;;  %v506_v1 = vld [vmem:[%s10513_s3 + $0x78] sm:$0xff] }
 0x2d5   :  { %v507_v3 = vld [vmem:[%s10513_s3 + $0x80] sm:$0xff] }
 0x2d6   :  { %5920 = vmatpush3.bf16.msra.mxu0 %v263_v2  ;;  %v848_v2 = vld [vmem:[%s10514_s4 + $0x20] sm:$0xff] }
 0x2d7   :  { %6164 = vmatprep.subr.bf16.mxu0 %v6348_v4  ;;  %v849_v4 = vld [vmem:[%s10514_s4 + $0x28] sm:$0xff] }
 0x2d9   :  { %5922 = vmatmul.mubr.msk.bf16.vlgmr.msra.gmra.mrb[4].mxu0 %vm136_vm2, %v6497_v17 }
 0x2da   :  { %5936 = vmatprep.mubr.msk.f32.mxu0 %vm6347_vm0, %v10531_v0 }
 0x3ac   :  { %v305_v6 = vpop.f32.mrb[4].mxu0 }
 0x3ad   :  { %v306_v7 = vadd.f32 %v5531_v5, %v305_v6  ;;  %v5923_v8 = vpop.f32.mrb[5].mxu0  ;;  %v850_v6 = vld [vmem:[%s10514_s4 + $0x30] sm:$0xff] }
 0x3ae   :  { %v308_v9 = vpop.f32.mrb[6].mxu0  ;;  %v851_v8 = vld [vmem:[%s10514_s4 + $0x38] sm:$0xff] }
 0x3af   :  { %v309_v10 = vadd.f32 %v5531_v5, %v308_v9  ;;  %v5924_v11 = vpop.f32.mrb[7].mxu0  ;;  %v312_v12 = vsel %vm82_vm1, %v306_v7, 0.0  ;;  %v508_v5 = vld [vmem:[%s10513_s3 + $0x88] sm:$0xff]  ;;  %v510_v9 = vld [vmem:[%s10513_s3 + $0x98] sm:$0xff] }
 0x3b0   :  { %v511_v11 = vld [vmem:[%s10513_s3 + $0xa0] sm:$0xff] }
 0x3b1   :  { %v313_v13 = vsel %vm82_vm1, %v309_v10, 0.0 }
 0x3b2   :  { %v314_v14 = vadd.f32 %v313_v13, %v312_v12  ;;  %v853_v12 = vld [vmem:[%s10514_s4 + $0x48] sm:$0xff] }
 0x3b3   :  { %v512_v13 = vld [vmem:[%s10513_s3 + $0xa8] sm:$0xff] }
 0x3b4   :  { %v315_v15 = vrot.slane %v314_v14, 4 }
 0x3b6   :  { %v316_v16 = vadd.f32 %v315_v15, %v314_v14  ;;  %v854_v14 = vld [vmem:[%s10514_s4 + $0x50] sm:$0xff] }
 0x3b7   :  { %v513_v15 = vld [vmem:[%s10513_s3 + $0xb0] sm:$0xff] }
 0x3b8   :  { %v317_v17 = vrot.slane %v316_v16, 2 }
 0x3ba   :  { %v318_v18 = vadd.f32 %v317_v17, %v316_v16  ;;  %v855_v16 = vld [vmem:[%s10514_s4 + $0x58] sm:$0xff] }
 0x3bb   :  { %v514_v17 = vld [vmem:[%s10513_s3 + $0xb8] sm:$0xff] }
 0x3bc   :  { %v319_v19 = vrot.slane %v318_v18, 1 }
 0x3be   :  { %v320_v20 = vadd.f32 %v319_v19, %v318_v18  ;;  %v856_v18 = vld [vmem:[%s10514_s4 + $0x60] sm:$0xff] }
 0x3bf   :  { %v515_v19 = vld [vmem:[%s10513_s3 + $0xc0] sm:$0xff] }
 0x3c0   :  { %v321_v21 = vmul.f32 0.0625, %v320_v20  ;;  %v857_v20 = vld [vmem:[%s10514_s4 + $0x68] sm:$0xff] }
 0x3c2   :  { %v322_v22 = vsub.f32 %v306_v7, %v321_v21  ;;  %v323_v23 = vsub.f32 %v309_v10, %v321_v21  ;;  %v509_v7 = vld [vmem:[%s10513_s3 + $0x90] sm:$0xff]  ;;  %v852_v10 = vld [vmem:[%s10514_s4 + $0x40] sm:$0xff]  ;;  %v516_v21 = vld [vmem:[%s10513_s3 + $0xc8] sm:$0xff] }
 0x3c4   :  { %v324_v24 = vmul.f32 %v322_v22, %v322_v22  ;;  %v325_v25 = vmul.f32 %v323_v23, %v323_v23 }
 0x3c6   :  { %v326_v26 = vsel %vm82_vm1, %v324_v24, 0.0  ;;  %v327_v27 = vsel %vm82_vm1, %v325_v25, 0.0  ;;  %v859_v24 = vld [vmem:[%s10514_s4 + $0x78] sm:$0xff] }
 0x3c7   :  { %v328_v28 = vadd.f32 %v327_v27, %v326_v26  ;;  %v518_v25 = vld [vmem:[%s10513_s3 + $0xd8] sm:$0xff]  ;;  %v860_v26 = vld [vmem:[%s10514_s4 + $0x80] sm:$0xff] }
 0x3c8   :  { %v519_v27 = vld [vmem:[%s10513_s3 + $0xe0] sm:$0xff] }
 0x3c9   :  { %v329_v29 = vrot.slane %v328_v28, 4 }
 0x3cb   :  { %v330_v30 = vadd.f32 %v329_v29, %v328_v28  ;;  %v861_v28 = vld [vmem:[%s10514_s4 + $0x88] sm:$0xff] }
 0x3cc   :  { %v520_v29 = vld [vmem:[%s10513_s3 + $0xe8] sm:$0xff] }
 0x3cd   :  { %v331_v31 = vrot.slane %v330_v30, 2 }
 0x3cf   :  { %v332_v32 = vadd.f32 %v331_v31, %v330_v30  ;;  %v862_v30 = vld [vmem:[%s10514_s4 + $0x90] sm:$0xff] }
 0x3d0   :  { %v521_v31 = vld [vmem:[%s10513_s3 + $0xf0] sm:$0xff] }
 0x3d1   :  { %v333_v33 = vrot.slane %v332_v32, 1 }
 0x3d3   :  { %v334_v34 = vadd.f32 %v333_v33, %v332_v32  ;;  %v863_v32 = vld [vmem:[%s10514_s4 + $0x98] sm:$0xff] }
 0x3d4   :  { %v522_v33 = vld [vmem:[%s10513_s3 + $0xf8] sm:$0xff] }
 0x3d5   :  { %v335_v35 = vmul.f32 0.0625, %v334_v34  ;;  %v864_v34 = vld [vmem:[%s10514_s4 + $0xa0] sm:$0xff] }
 0x3d7   :  { %v336_v36 = vadd.f32 1e-05, %v335_v35  ;;  %v865_v35 = vld [vmem:[%s10514_s4 + $0xa8] sm:$0xff] }
 0x3d9   :  { %6338 = vrsqrt.f32 %v336_v36  ;;  %v866_v36 = vld [vmem:[%s10514_s4 + $0xb0] sm:$0xff] }
 0x3e3   :  { %v6339_v37 = vpop.eup %6338 }
 0x3e4   :  { %v338_v38 = vmul.f32 %v6339_v37, %v322_v22  ;;  %v339_v39 = vmul.f32 %v6339_v37, %v323_v23  ;;  %v858_v22 = vld [vmem:[%s10514_s4 + $0x70] sm:$0xff]  ;;  %v867_v37 = vld [vmem:[%s10514_s4 + $0xb8] sm:$0xff] }
 0x3e5   :  { %v517_v23 = vld [vmem:[%s10513_s3 + $0xd0] sm:$0xff] }
 0x3e6   :  { %v340_v40 = vmax.f32 %v338_v38, 0.0  ;;  %v341_v41 = vmax.f32 %v339_v39, 0.0  ;;  %v868_v38 = vld [vmem:[%s10514_s4 + $0xc0] sm:$0xff]  ;;  %v869_v39 = vld [vmem:[%s10514_s4 + $0xc8] sm:$0xff] }
 0x3e8   :  { %v6162_v42 = vpack.c.bf16 %v341_v41, %v340_v40  ;;  %v870_v40 = vld [vmem:[%s10514_s4 + $0xd0] sm:$0xff]  ;;  %v871_v41 = vld [vmem:[%s10514_s4 + $0xd8] sm:$0xff] }
 0x3ea   :  { %6163 = vmatpush3.bf16.msra.mxu1 %v6162_v42  ;;  %6166 = vmatpush3.bf16.msra.mxu0 %v6162_v42 }
 0x3eb   :  { %6168 = vmatprep.subr.bf16.mxu0 %v6162_v42  ;;  %6239 = vmatprep.subr.bf16.mxu1 %v6162_v42 }
 0x3ed   :  { %5930 = vmatmul.mubr.msk.f32.vlgmr.msra.gmra.mrb[8].mxu1 %vm136_vm2, %v342_v43  ;;  %5937 = vmatmul.mubr.msk.f32.vlgmr.msra.gmra.mrb[8].mxu0 %vm136_vm2, %v416_v44  ;;  %v873_v43 = vld [vmem:[%s10514_s4 + $0xe8] sm:$0xff]  ;;  %v874_v44 = vld [vmem:[%s10514_s4 + $0xf0] sm:$0xff] }
 0x3ee   :  { %6170 = vmatpush3.bf16.msra.mxu0 %v6162_v42  ;;  %6240 = vmatpush3.bf16.msra.mxu1 %v6162_v42 }
 0x3ef   :  { %6172 = vmatprep.subr.bf16.mxu0 %v6162_v42  ;;  %5943 = vmatprep.mubr.msk.f32.mxu0 %vm136_vm2, %v491_v45  ;;  %v875_v45 = vld [vmem:[%s10514_s4 + $0xf8] sm:$0xff] }
 0x3f0   :  { %5952 = vmatprep.mubr.msk.f32.mxu1 %vm136_vm2, %v497_v46  ;;  %v6349_v46 = vmov 0  }
 0x3f1   :  { %5944 = vmatmul.mubr.msk.f32.vlgmr.msra.gmra.mrb[10].mxu0 %vm136_vm2, %v492_v47  ;;  %5953 = vmatmul.mubr.msk.f32.vlgmr.msra.gmra.mrb[10].mxu1 %vm136_vm2, %v498_v48  ;;  %v1858_v47 = vld [vmem:[%s10515_s15] sm:$0xff]  ;;  %v1859_v48 = vld [vmem:[%s10515_s15 + $0x8] sm:$0xff] }
 0x3f2   :  { %6174 = vmatpush3.bf16.msra.mxu0 %v6162_v42  ;;  %5946 = vmatprep.mubr.msk.f32.mxu0 %vm136_vm2, %v493_v49  ;;  %v872_v42 = vld [vmem:[%s10514_s4 + $0xe0] sm:$0xff]  ;;  %v1866_v49 = vpack.c.bf16 %v1859_v48, %v1858_v47 }
 0x3f3   :  { %5955 = vmatprep.mubr.msk.f32.mxu1 %vm136_vm2, %v499_v50  ;;  %6327 = vset.pattern.permute.xlu0 %v6349_v46  ;;  %v1860_v50 = vld [vmem:[%s10515_s15 + $0x10] sm:$0xff] }
 0x3f4   :  { %6328 = vset.pattern.permute.xlu1 %v6349_v46  ;;  %6083 = vmatprep.subr.bf16.mxu0 %v1866_v49 }
 0x3f5   :  { %5947 = vmatmul.mubr.msk.f32.gmra.mrb[12].mxu0 %vm136_vm2, %v494_v51  ;;  %5956 = vmatmul.mubr.msk.f32.gmra.mrb[12].mxu1 %vm136_vm2, %v500_v52  ;;  %v1861_v51 = vld [vmem:[%s10515_s15 + $0x18] sm:$0xff] }
 0x3f6   :  { %5949 = vmatprep.mubr.msk.f32.mxu0 %vm136_vm2, %v495_v53  ;;  %5958 = vmatprep.mubr.msk.f32.mxu1 %vm136_vm2, %v501_v54  ;;  %v1867_v52 = vpack.c.bf16 %v1861_v51, %v1860_v50  ;;  %v1389_v53 = vld [vmem:[%s10516_s13] sm:$0xff]  ;;  %v1390_v54 = vld [vmem:[%s10516_s13 + $0x8] sm:$0xff] }
 0x3f9   :  { %5950 = vmatmul.mubr.msk.f32.gmra.mrb[14].mxu0 %vm136_vm2, %v496_v55  ;;  %5959 = vmatmul.mubr.msk.f32.gmra.mrb[14].mxu1 %vm136_vm2, %v502_v56  ;;  %v1413_v55 = vpack.c.bf16 %v1390_v54, %v1389_v53 }
 0x3fa   :  { %5995 = vmatprep.mubr.msk.f32.mxu0 %vm136_vm2, %v844_v57  ;;  %5961 = vmatprep.mubr.msk.f32.mxu1 %vm136_vm2, %v503_v58  ;;  %v1391_v58 = vld [vmem:[%s10516_s13 + $0x10] sm:$0xff] }
 0x3fb   :  { %6043 = vmatprep.subr.bf16.mxu1 %v1413_v55 }
 0x3fc   :  { %6044 = vmatpush3.bf16.msra.mxu1 %v1413_v55 }
 0x3fd   :  { %5996 = vmatmul.mubr.msk.f32.vlgmr.msra.gmra.mrb[16].mxu0 %vm136_vm2, %v845_v59  ;;  %5962 = vmatmul.mubr.msk.f32.gmra.mrb[16].mxu1 %vm136_vm2, %v504_v60  ;;  %v1392_v59 = vld [vmem:[%s10516_s13 + $0x18] sm:$0xff] }
 0x3fe   :  { %5998 = vmatprep.mubr.msk.f32.mxu0 %vm136_vm2, %v846_v61  ;;  %5964 = vmatprep.mubr.msk.f32.mxu1 %vm136_vm2, %v505_v62  ;;  %v1414_v62 = vpack.c.bf16 %v1392_v59, %v1391_v58 }
 0x3ff   :  { %6084 = vmatpush3.bf16.msra.mxu0 %v1866_v49 }
 0x400   :  { %6085 = vmatprep.subr.bf16.mxu0 %v1867_v52  ;;  %6045 = vmatprep.subr.bf16.mxu1 %v1414_v62 }
 0x401   :  { %5999 = vmatmul.mubr.msk.f32.gmra.mrb[18].mxu0 %vm136_vm2, %v847_v63  ;;  %5965 = vmatmul.mubr.msk.f32.gmra.mrb[18].mxu1 %vm136_vm2, %v506_v1 }
 0x402   :  { %6001 = vmatprep.mubr.msk.f32.mxu0 %vm136_vm2, %v848_v2  ;;  %5967 = vmatprep.mubr.msk.f32.mxu1 %vm136_vm2, %v507_v3  ;;  %v1393_v3 = vld [vmem:[%s10516_s13 + $0x20] sm:$0xff] }
 0x403   :  { %6086 = vmatpush3.bf16.msra.mxu0 %v1867_v52  ;;  %6046 = vmatpush3.bf16.msra.mxu1 %v1414_v62 }
 0x405   :  { %6002 = vmatmul.mubr.msk.f32.gmra.mrb[20].mxu0 %vm136_vm2, %v849_v4  ;;  %5968 = vmatmul.mubr.msk.f32.gmra.mrb[20].mxu1 %vm136_vm2, %v508_v5  ;;  %v1394_v4 = vld [vmem:[%s10516_s13 + $0x28] sm:$0xff]  ;;  %v1862_v5 = vld [vmem:[%s10515_s15 + $0x20] sm:$0xff] }
 0x406   :  { %6004 = vmatprep.mubr.msk.f32.mxu0 %vm136_vm2, %v850_v6  ;;  %5970 = vmatprep.mubr.msk.f32.mxu1 %vm136_vm2, %v509_v7  ;;  %v1415_v6 = vpack.c.bf16 %v1394_v4, %v1393_v3  ;;  %v1863_v7 = vld [vmem:[%s10515_s15 + $0x28] sm:$0xff] }
 0x408   :  { %6047 = vmatprep.subr.bf16.mxu1 %v1415_v6 }
 0x409   :  { %6005 = vmatmul.mubr.msk.f32.gmra.mrb[22].mxu0 %vm136_vm2, %v851_v8  ;;  %5971 = vmatmul.mubr.msk.f32.gmra.mrb[22].mxu1 %vm136_vm2, %v510_v9  ;;  %v1868_v8 = vpack.c.bf16 %v1863_v7, %v1862_v5 }
 0x40a   :  { %6007 = vmatprep.mubr.msk.f32.mxu0 %vm136_vm2, %v852_v10  ;;  %5973 = vmatprep.mubr.msk.f32.mxu1 %vm136_vm2, %v511_v11  ;;  %v1395_v11 = vld [vmem:[%s10516_s13 + $0x30] sm:$0xff] }
 0x40b   :  { %6087 = vmatprep.subr.bf16.mxu0 %v1868_v8  ;;  %6048 = vmatpush3.bf16.msra.mxu1 %v1415_v6 }
 0x40c   :  { %6088 = vmatpush3.bf16.msra.mxu0 %v1868_v8 }
 0x40d   :  { %6008 = vmatmul.mubr.msk.f32.gmra.mrb[24].mxu0 %vm136_vm2, %v853_v12  ;;  %5974 = vmatmul.mubr.msk.f32.gmra.mrb[24].mxu1 %vm136_vm2, %v512_v13  ;;  %v1396_v12 = vld [vmem:[%s10516_s13 + $0x38] sm:$0xff]  ;;  %v1864_v13 = vld [vmem:[%s10515_s15 + $0x30] sm:$0xff]  ;;  %s6350_s13 = smov 32  }
 0x40e   :  { %6010 = vmatprep.mubr.msk.f32.mxu0 %vm136_vm2, %v854_v14  ;;  %5976 = vmatprep.mubr.msk.f32.mxu1 %vm136_vm2, %v513_v15  ;;  %v1416_v14 = vpack.c.bf16 %v1396_v12, %v1395_v11  ;;  %v1865_v15 = vld [vmem:[%s10515_s15 + $0x38] sm:$0xff] }
 0x410   :  { %6049 = vmatprep.subr.bf16.mxu1 %v1416_v14 }
 0x411   :  { %6011 = vmatmul.mubr.msk.f32.gmra.mrb[26].mxu0 %vm136_vm2, %v855_v16  ;;  %5977 = vmatmul.mubr.msk.f32.gmra.mrb[26].mxu1 %vm136_vm2, %v514_v17  ;;  %v1869_v16 = vpack.c.bf16 %v1865_v15, %v1864_v13 }
 0x412   :  { %6013 = vmatprep.mubr.msk.f32.mxu0 %vm136_vm2, %v856_v18  ;;  %5979 = vmatprep.mubr.msk.f32.mxu1 %vm136_vm2, %v515_v19 }
 0x413   :  { %6089 = vmatprep.subr.bf16.mxu0 %v1869_v16  ;;  %6050 = vmatpush3.bf16.msra.mxu1 %v1416_v14 }
 0x414   :  { %6090 = vmatpush3.bf16.msra.mxu0 %v1869_v16 }
 0x415   :  { %6014 = vmatmul.mubr.msk.f32.gmra.mrb[28].mxu0 %vm136_vm2, %v857_v20  ;;  %5980 = vmatmul.mubr.msk.f32.gmra.mrb[28].mxu1 %vm136_vm2, %v516_v21 }
 0x416   :  { %6016 = vmatprep.mubr.msk.f32.mxu0 %vm136_vm2, %v858_v22  ;;  %5982 = vmatprep.mubr.msk.f32.mxu1 %vm136_vm2, %v517_v23 }
 0x419   :  { %6017 = vmatmul.mubr.msk.f32.gmra.mrb[30].mxu0 %vm136_vm2, %v859_v24  ;;  %5983 = vmatmul.mubr.msk.f32.gmra.mrb[30].mxu1 %vm136_vm2, %v518_v25 }
 0x41a   :  { %6019 = vmatprep.mubr.msk.f32.mxu0 %vm136_vm2, %v860_v26  ;;  %5985 = vmatprep.mubr.msk.f32.mxu1 %vm136_vm2, %v519_v27 }
 0x41d   :  { %6020 = vmatmul.mubr.msk.f32.gmra.mrb[32].mxu0 %vm136_vm2, %v861_v28  ;;  %5986 = vmatmul.mubr.msk.f32.gmra.mrb[32].mxu1 %vm136_vm2, %v520_v29 }
 0x41e   :  { %6022 = vmatprep.mubr.msk.f32.mxu0 %vm136_vm2, %v862_v30  ;;  %5988 = vmatprep.mubr.msk.f32.mxu1 %vm136_vm2, %v521_v31 }
 0x421   :  { %6023 = vmatmul.mubr.msk.f32.gmra.mrb[34].mxu0 %vm136_vm2, %v863_v32  ;;  %5989 = vmatmul.mubr.msk.f32.gmra.mrb[34].mxu1 %vm136_vm2, %v522_v33 }
 0x422   :  { %6025 = vmatprep.mubr.msk.f32.mxu0 %vm136_vm2, %v864_v34 }
 0x425   :  { %6026 = vmatmul.mubr.msk.f32.gmra.mrb[36].mxu0 %vm136_vm2, %v865_v35 }
 0x426   :  { %6028 = vmatprep.mubr.msk.f32.mxu0 %vm136_vm2, %v866_v36 }
 0x429   :  { %6029 = vmatmul.mubr.msk.f32.gmra.mrb[38].mxu0 %vm136_vm2, %v867_v37 }
 0x42a   :  { %6031 = vmatprep.mubr.msk.f32.mxu0 %vm136_vm2, %v868_v38 }
 0x42d   :  { %6032 = vmatmul.mubr.msk.f32.gmra.mrb[40].mxu0 %vm136_vm2, %v869_v39 }
 0x42e   :  { %6034 = vmatprep.mubr.msk.f32.mxu0 %vm136_vm2, %v870_v40 }
 0x431   :  { %6035 = vmatmul.mubr.msk.f32.gmra.mrb[42].mxu0 %vm136_vm2, %v871_v41 }
 0x432   :  { %6037 = vmatprep.mubr.msk.f32.mxu0 %vm136_vm2, %v872_v42 }
 0x435   :  { %6038 = vmatmul.mubr.msk.f32.gmra.mrb[44].mxu0 %vm136_vm2, %v873_v43 }
 0x436   :  { %6040 = vmatprep.mubr.msk.f32.mxu0 %vm136_vm2, %v874_v44 }
 0x439   :  { %6041 = vmatmul.mubr.msk.f32.gmra.mrb[46].mxu0 %vm136_vm2, %v875_v45 }
 0x4c0   :  { %v412_v56 = vpop.f32.mrb[8].mxu1  ;;  %v486_v57 = vpop.f32.mrb[8].mxu0 }
 0x4c1   :  { %v6828_v60 = vmul.f32 %v486_v57, %v412_v56  ;;  %v5938_v61 = vpop.f32.mrb[9].mxu0  ;;  %v5931_v63 = vpop.f32.mrb[9].mxu1 }
 0x4c3   :  { %10818 = vst [vmem:[#allocation3_spill] sm:$0xff] %v6828_v60 }
 0x4c4   :  { %v6830_v1 = vpop.f32.mrb[10].mxu0  ;;  %v6866_v21 = vpop.f32.mrb[10].mxu1 }
 0x4c5   :  { %v6832_v2 = vpop.f32.mrb[11].mxu0  ;;  %v6868_v23 = vpop.f32.mrb[11].mxu1 }
 0x4c8   :  { %v6846_v9 = vpop.f32.mrb[12].mxu0  ;;  %v6871_v27 = vpop.f32.mrb[12].mxu1 }
 0x4c9   :  { %v6848_v10 = vpop.f32.mrb[13].mxu0  ;;  %v6873_v28 = vpop.f32.mrb[13].mxu1 }
 0x4cc   :  { %v6862_v17 = vpop.f32.mrb[14].mxu0  ;;  %v6876_v32 = vpop.f32.mrb[14].mxu1 }
 0x4cd   :  { %v6864_v18 = vpop.f32.mrb[15].mxu0  ;;  %v6878_v33 = vpop.f32.mrb[15].mxu1 }
 0x4d0   :  { %v5997_v19 = vpop.f32.mrb[16].mxu0  ;;  %v6881_v37 = vpop.f32.mrb[16].mxu1 }
 0x4d1   :  { %v1038_v20 = vpop.f32.mrb[17].mxu0  ;;  %v6883_v38 = vpop.f32.mrb[17].mxu1 }
 0x4d2   :  { %v6247_v22 = vpack.i.bf16 %v5997_v19, %v1038_v20 }
 0x4d4   :  { %6248 = vrot.lane.b32.xlu0 %v6247_v22, %s6350_s13  ;;  %v6000_v24 = vpop.f32.mrb[18].mxu0  ;;  %v6886_v42 = vpop.f32.mrb[18].mxu1 }
 0x4d5   :  { %v1048_v25 = vpop.f32.mrb[19].mxu0  ;;  %v6888_v43 = vpop.f32.mrb[19].mxu1 }
 0x4d6   :  { %v6252_v26 = vpack.i.bf16 %v6000_v24, %v1048_v25 }
 0x4d8   :  { %6253 = vrot.lane.b32.xlu0 %v6252_v26, %s6350_s13  ;;  %v6003_v29 = vpop.f32.mrb[20].mxu0  ;;  %v6891_v48 = vpop.f32.mrb[20].mxu1 }
 0x4d9   :  { %v1058_v30 = vpop.f32.mrb[21].mxu0  ;;  %v6893_v49 = vpop.f32.mrb[21].mxu1 }
 0x4da   :  { %v6257_v31 = vpack.i.bf16 %v6003_v29, %v1058_v30 }
 0x4dc   :  { %6258 = vrot.lane.b32.xlu1 %v6257_v31, %s6350_s13  ;;  %v6006_v34 = vpop.f32.mrb[22].mxu0  ;;  %v6896_v53 = vpop.f32.mrb[22].mxu1 }
 0x4dd   :  { %v1068_v35 = vpop.f32.mrb[23].mxu0  ;;  %v6898_v54 = vpop.f32.mrb[23].mxu1 }
 0x4de   :  { %v6262_v36 = vpack.i.bf16 %v6006_v34, %v1068_v35 }
 0x4e0   :  { %6263 = vrot.lane.b32.xlu1 %v6262_v36, %s6350_s13  ;;  %v6009_v39 = vpop.f32.mrb[24].mxu0  ;;  %v6901_v58 = vpop.f32.mrb[24].mxu1 }
 0x4e1   :  { %v1078_v40 = vpop.f32.mrb[25].mxu0  ;;  %v6903_v59 = vpop.f32.mrb[25].mxu1 }
 0x4e2   :  { %v6267_v41 = vpack.i.bf16 %v6009_v39, %v1078_v40 }
 0x4e4   :  { %6268 = vrot.lane.b32.xlu0 %v6267_v41, %s6350_s13  ;;  %v6012_v44 = vpop.f32.mrb[26].mxu0  ;;  %v6906_v3 = vpop.f32.mrb[26].mxu1 }
 0x4e5   :  { %v1088_v45 = vpop.f32.mrb[27].mxu0  ;;  %v6908_v4 = vpop.f32.mrb[27].mxu1 }
 0x4e6   :  { %v6272_v47 = vpack.i.bf16 %v6012_v44, %v1088_v45 }
 0x4e8   :  { %6273 = vrot.lane.b32.xlu1 %v6272_v47, %s6350_s13  ;;  %v6015_v50 = vpop.f32.mrb[28].mxu0  ;;  %v6911_v8 = vpop.f32.mrb[28].mxu1 }
 0x4e9   :  { %v1098_v51 = vpop.f32.mrb[29].mxu0  ;;  %v6913_v11 = vpop.f32.mrb[29].mxu1 }
 0x4ea   :  { %v6277_v52 = vpack.i.bf16 %v6015_v50, %v1098_v51  ;;  %v1357_v50 = vld [vmem:[%s10517_s2] sm:$0xff] }
 0x4ec   :  { %6278 = vrot.lane.b32.xlu0 %v6277_v52, %s6350_s13  ;;  %v6018_v55 = vpop.f32.mrb[30].mxu0  ;;  %v6916_v15 = vpop.f32.mrb[30].mxu1  ;;  %v1360_v52 = vld [vmem:[%s10517_s2 + $0x18] sm:$0xff] }
 0x4ed   :  { %v1108_v56 = vpop.f32.mrb[31].mxu0  ;;  %v6918_v16 = vpop.f32.mrb[31].mxu1 }
 0x4ee   :  { %v6282_v57 = vpack.i.bf16 %v6018_v55, %v1108_v56  ;;  %v1359_v55 = vld [vmem:[%s10517_s2 + $0x10] sm:$0xff]  ;;  %v1362_v56 = vld [vmem:[%s10517_s2 + $0x28] sm:$0xff] }
 0x4f0   :  { %6283 = vrot.lane.b32.xlu1 %v6282_v57, %s6350_s13  ;;  %v6021_v61 = vpop.f32.mrb[32].mxu0  ;;  %v6921_v24 = vpop.f32.mrb[32].mxu1  ;;  %v1358_v57 = vld [vmem:[%s10517_s2 + $0x8] sm:$0xff] }
 0x4f1   :  { %v1118_v62 = vpop.f32.mrb[33].mxu0  ;;  %v6923_v25 = vpop.f32.mrb[33].mxu1 }
 0x4f2   :  { %v6287_v63 = vpack.i.bf16 %v6021_v61, %v1118_v62  ;;  %v1364_v61 = vld [vmem:[%s10517_s2 + $0x38] sm:$0xff]  ;;  %v1361_v62 = vld [vmem:[%s10517_s2 + $0x20] sm:$0xff] }
 0x4f4   :  { %6288 = vrot.lane.b32.xlu0 %v6287_v63, %s6350_s13  ;;  %v6024_v5 = vpop.f32.mrb[34].mxu0  ;;  %v6926_v31 = vpop.f32.mrb[34].mxu1  ;;  %v1366_v63 = vld [vmem:[%s10517_s2 + $0x48] sm:$0xff] }
 0x4f5   :  { %v1128_v6 = vpop.f32.mrb[35].mxu0  ;;  %v6928_v34 = vpop.f32.mrb[35].mxu1 }
 0x4f6   :  { %v6292_v7 = vpack.i.bf16 %v6024_v5, %v1128_v6  ;;  %v1363_v5 = vld [vmem:[%s10517_s2 + $0x30] sm:$0xff] }
 0x4f7   :  { %v1367_v6 = vld [vmem:[%s10517_s2 + $0x50] sm:$0xff] }
 0x4f8   :  { %6293 = vrot.lane.b32.xlu1 %v6292_v7, %s6350_s13  ;;  %v6027_v12 = vpop.f32.mrb[36].mxu0  ;;  %v1365_v7 = vld [vmem:[%s10517_s2 + $0x40] sm:$0xff] }
 0x4f9   :  { %v1138_v13 = vpop.f32.mrb[37].mxu0 }
 0x4fa   :  { %v6297_v14 = vpack.i.bf16 %v6027_v12, %v1138_v13  ;;  %v1368_v12 = vld [vmem:[%s10517_s2 + $0x58] sm:$0xff]  ;;  %v1370_v13 = vld [vmem:[%s10517_s2 + $0x68] sm:$0xff] }
 0x4fc   :  { %6298 = vrot.lane.b32.xlu0 %v6297_v14, %s6350_s13  ;;  %v6030_v19 = vpop.f32.mrb[38].mxu0  ;;  %v6980_v14 = vld [vmem:[%s10517_s2 + $0x60] sm:$0xff] }
 0x4fd   :  { %v1148_v20 = vpop.f32.mrb[39].mxu0 }
 0x4fe   :  { %v6302_v22 = vpack.i.bf16 %v6030_v19, %v1148_v20  ;;  %v6987_v19 = vld [vmem:[%s10517_s2 + $0x78] sm:$0xff]  ;;  %v6994_v20 = vld [vmem:[%s10517_s2 + $0x70] sm:$0xff] }
 0x500   :  { %6303 = vrot.lane.b32.xlu1 %v6302_v22, %s6350_s13  ;;  %v6033_v26 = vpop.f32.mrb[40].mxu0  ;;  %v7001_v22 = vld [vmem:[%s10517_s2 + $0x88] sm:$0xff] }
 0x501   :  { %v1158_v29 = vpop.f32.mrb[41].mxu0 }
 0x502   :  { %v6307_v30 = vpack.i.bf16 %v6033_v26, %v1158_v29  ;;  %v7008_v26 = vld [vmem:[%s10517_s2 + $0x80] sm:$0xff]  ;;  %v7015_v29 = vld [vmem:[%s10517_s2 + $0x98] sm:$0xff] }
 0x504   :  { %6308 = vrot.lane.b32.xlu0 %v6307_v30, %s6350_s13  ;;  %v6036_v35 = vpop.f32.mrb[42].mxu0 }
 0x505   :  { %v1168_v36 = vpop.f32.mrb[43].mxu0 }
 0x506   :  { %v6312_v39 = vpack.i.bf16 %v6036_v35, %v1168_v36 }
 0x508   :  { %6313 = vrot.lane.b32.xlu1 %v6312_v39, %s6350_s13  ;;  %v6039_v40 = vpop.f32.mrb[44].mxu0 }
 0x509   :  { %v1178_v41 = vpop.f32.mrb[45].mxu0 }
 0x50a   :  { %v6317_v44 = vpack.i.bf16 %v6039_v40, %v1178_v41 }
 0x50c   :  { %6318 = vrot.lane.b32.xlu0 %v6317_v44, %s6350_s13  ;;  %v6042_v45 = vpop.f32.mrb[46].mxu0 }
 0x50d   :  { %v1188_v47 = vpop.f32.mrb[47].mxu0 }
 0x50e   :  { %v6322_v51 = vpack.i.bf16 %v6042_v45, %v1188_v47  ;;  %v7026_v45 = vld [vmem:[%s10517_s2 + $0x90] sm:$0xff] }
 0x510   :  { %1668 = vperm.xlu0 %6327, %v1357_v50   ;;  %6323 = vrot.lane.b32.xlu1 %v6322_v51, %s6350_s13 }
 0x514   :  { %1683 = vperm.xlu0 %6327, %v1360_v52   ;;  %1678 = vperm.xlu1 %6328, %v1359_v55  }
 0x518   :  { %1693 = vperm.xlu0 %6327, %v1362_v56   ;;  %1673 = vperm.xlu1 %6328, %v1358_v57  }
 0x51c   :  { %1703 = vperm.xlu0 %6327, %v1364_v61   ;;  %1688 = vperm.xlu1 %6328, %v1361_v62  }
 0x520   :  { %1713 = vperm.xlu0 %6327, %v1366_v63   ;;  %1698 = vperm.xlu1 %6328, %v1363_v5  }
 0x524   :  { %1718 = vperm.xlu0 %6327, %v1367_v6   ;;  %1708 = vperm.xlu1 %6328, %v1365_v7  }
 0x528   :  { %2138 = vrot.lane.b32.xlu0 %v1359_v55, %s6350_s13  ;;  %2134 = vrot.lane.b32.xlu1 %v1357_v50, %s6350_s13  ;;  %v7039_v55 = vld [vmem:[%s10517_s2 + $0xa8] sm:$0xff] }
 0x52c   :  { %2140 = vrot.lane.b32.xlu0 %v1360_v52, %s6350_s13  ;;  %1723 = vperm.xlu1 %6328, %v1368_v12  }
 0x530   :  { %1733 = vperm.xlu0 %6327, %v1370_v13   ;;  %2136 = vrot.lane.b32.xlu1 %v1358_v57, %s6350_s13 }
 0x534   :  { %2144 = vrot.lane.b32.xlu0 %v1362_v56, %s6350_s13  ;;  %1728 = vperm.xlu1 %6328, %v6980_v14  }
 0x538   :  { %1743 = vperm.xlu0 %6327, %v6987_v19   ;;  %2142 = vrot.lane.b32.xlu1 %v1361_v62, %s6350_s13 }
 0x53c   :  { %2148 = vrot.lane.b32.xlu0 %v1364_v61, %s6350_s13  ;;  %1738 = vperm.xlu1 %6328, %v6994_v20  }
 0x540   :  { %1753 = vperm.xlu0 %6327, %v7001_v22   ;;  %2146 = vrot.lane.b32.xlu1 %v1363_v5, %s6350_s13 }
 0x544   :  { %2152 = vrot.lane.b32.xlu0 %v1366_v63, %s6350_s13  ;;  %1748 = vperm.xlu1 %6328, %v7008_v26   ;;  %v7052_v63 = vld [vmem:[%s10517_s2 + $0xa0] sm:$0xff] }
 0x546   :  { %v6249_v30 = vpop.permute.xlu0 %6248 }
 0x547   :  { %v6251_v35 = vunpack.i.h.bf16 %v6249_v30  ;;  %v6250_v36 = vunpack.i.l.bf16 %v6249_v30  ;;  %v7065_v30 = vld [vmem:[%s10517_s2 + $0xb8] sm:$0xff] }
 0x548   :  { %1763 = vperm.xlu0 %6327, %v7015_v29   ;;  %2150 = vrot.lane.b32.xlu1 %v1365_v7, %s6350_s13 }
 0x549   :  { %v1326_v39 = vsel %vm82_vm1, %v6830_v1, %v6251_v35  ;;  %v1325_v40 = vsel %vm82_vm1, %v6832_v2, %v6250_v36 }
 0x54a   :  { %v6254_v41 = vpop.permute.xlu0 %6253  ;;  %v1397_v44 = vpack.c.bf16 %v1326_v39, %v1325_v40  ;;  %v7079_v40 = vld [vmem:[%s10517_s2 + $0xb0] sm:$0xff] }
 0x54b   :  { %v6256_v47 = vunpack.i.h.bf16 %v6254_v41  ;;  %v6255_v50 = vunpack.i.l.bf16 %v6254_v41 }
 0x54c   :  { %6051 = vmatprep.mubr.msk.bf16.mxu1 %vm1424_vm3, %v1397_v44  ;;  %6091 = vmatprep.mubr.msk.bf16.mxu0 %vm1424_vm3, %v1397_v44 }
 0x54d   :  { %v1328_v1 = vsel %vm82_vm1, %v6846_v9, %v6256_v47  ;;  %v1327_v2 = vsel %vm82_vm1, %v6848_v10, %v6255_v50  ;;  %2156 = vrot.lane.b32.xlu0 %v1368_v12, %s6350_s13  ;;  %1758 = vperm.xlu1 %6328, %v7026_v45   ;;  %v7093_v50 = vld [vmem:[%s10517_s2 + $0xc8] sm:$0xff] }
 0x54e   :  { %v1398_v51 = vpack.c.bf16 %v1328_v1, %v1327_v2  ;;  %v6259_v52 = vpop.permute.xlu1 %6258 }
 0x54f   :  { %v6261_v56 = vunpack.i.h.bf16 %v6259_v52  ;;  %v6260_v57 = vunpack.i.l.bf16 %v6259_v52  ;;  %v7107_v52 = vld [vmem:[%s10517_s2 + $0xc0] sm:$0xff] }
 0x550   :  { %6052 = vmatmul.mubr.msk.bf16.vlgmr.msra.gmra.mrb[36].mxu1 %vm1424_vm3, %v1398_v51  ;;  %6092 = vmatmul.mubr.msk.bf16.vlgmr.msra.gmra.mrb[48].mxu0 %vm1424_vm3, %v1398_v51 }
 0x551   :  { %v1330_v9 = vsel %vm82_vm1, %v6862_v17, %v6261_v56  ;;  %v1329_v10 = vsel %vm82_vm1, %v6864_v18, %v6260_v57  ;;  %1773 = vperm.xlu0 %6327, %v7039_v55   ;;  %2154 = vrot.lane.b32.xlu1 %v1367_v6, %s6350_s13 }
 0x552   :  { %v6264_v61 = vpop.permute.xlu1 %6263  ;;  %v1399_v62 = vpack.c.bf16 %v1330_v9, %v1329_v10  ;;  %v7121_v10 = vld [vmem:[%s10517_s2 + $0xd8] sm:$0xff] }
 0x553   :  { %v6266_v5 = vunpack.i.h.bf16 %v6264_v61  ;;  %v6265_v7 = vunpack.i.l.bf16 %v6264_v61 }
 0x554   :  { %6055 = vmatprep.mubr.msk.bf16.mxu1 %vm1424_vm3, %v1399_v62  ;;  %6095 = vmatprep.mubr.msk.bf16.mxu0 %vm1424_vm3, %v1399_v62 }
 0x555   :  { %v1331_v17 = vsel %vm82_vm1, %v6868_v23, %v6265_v7  ;;  %v1332_v18 = vsel %vm82_vm1, %v6866_v21, %v6266_v5  ;;  %2160 = vrot.lane.b32.xlu0 %v1370_v13, %s6350_s13  ;;  %1768 = vperm.xlu1 %6328, %v7052_v63   ;;  %v7135_v7 = vld [vmem:[%s10517_s2 + $0xd0] sm:$0xff] }
 0x556   :  { %v1400_v6 = vpack.c.bf16 %v1332_v18, %v1331_v17  ;;  %v6269_v12 = vpop.permute.xlu0 %6268 }
 0x557   :  { %v6271_v35 = vunpack.i.h.bf16 %v6269_v12  ;;  %v6270_v36 = vunpack.i.l.bf16 %v6269_v12  ;;  %v7149_v12 = vld [vmem:[%s10517_s2 + $0xe8] sm:$0xff] }
 0x558   :  { %6056 = vmatmul.mubr.msk.bf16.gmra.mrb[40].mxu1 %vm1424_vm3, %v1400_v6  ;;  %6096 = vmatmul.mubr.msk.bf16.gmra.mrb[52].mxu0 %vm1424_vm3, %v1400_v6 }
 0x559   :  { %v1333_v21 = vsel %vm82_vm1, %v6873_v28, %v6270_v36  ;;  %v1334_v23 = vsel %vm82_vm1, %v6871_v27, %v6271_v35  ;;  %1783 = vperm.xlu0 %6327, %v7065_v30   ;;  %2158 = vrot.lane.b32.xlu1 %v6980_v14, %s6350_s13 }
 0x55a   :  { %v1401_v13 = vpack.c.bf16 %v1334_v23, %v1333_v21  ;;  %v6274_v39 = vpop.permute.xlu1 %6273  ;;  %v1385_v23 = vld [vmem:[%s10517_s2 + $0xe0] sm:$0xff] }
 0x55b   :  { %v6276_v41 = vunpack.i.h.bf16 %v6274_v39  ;;  %v6275_v44 = vunpack.i.l.bf16 %v6274_v39 }
 0x55c   :  { %6059 = vmatprep.mubr.msk.bf16.mxu1 %vm1424_vm3, %v1401_v13  ;;  %6099 = vmatprep.mubr.msk.bf16.mxu0 %vm1424_vm3, %v1401_v13 }
 0x55d   :  { %v1335_v27 = vsel %vm82_vm1, %v6878_v33, %v6275_v44  ;;  %v1336_v28 = vsel %vm82_vm1, %v6876_v32, %v6276_v41  ;;  %2164 = vrot.lane.b32.xlu0 %v6987_v19, %s6350_s13  ;;  %1778 = vperm.xlu1 %6328, %v7079_v40   ;;  %v1388_v44 = vld [vmem:[%s10517_s2 + $0xf8] sm:$0xff] }
 0x55e   :  { %v1402_v14 = vpack.c.bf16 %v1336_v28, %v1335_v27  ;;  %v6279_v47 = vpop.permute.xlu0 %6278 }
 0x55f   :  { %v6281_v1 = vunpack.i.h.bf16 %v6279_v47  ;;  %v6280_v2 = vunpack.i.l.bf16 %v6279_v47  ;;  %v1387_v47 = vld [vmem:[%s10517_s2 + $0xf0] sm:$0xff] }
 0x560   :  { %6060 = vmatmul.mubr.msk.bf16.gmra.mrb[44].mxu1 %vm1424_vm3, %v1402_v14  ;;  %6100 = vmatmul.mubr.msk.bf16.gmra.mrb[56].mxu0 %vm1424_vm3, %v1402_v14 }
 0x561   :  { %v1337_v32 = vsel %vm82_vm1, %v6883_v38, %v6280_v2  ;;  %v1338_v33 = vsel %vm82_vm1, %v6881_v37, %v6281_v1  ;;  %1793 = vperm.xlu0 %6327, %v7093_v50   ;;  %2162 = vrot.lane.b32.xlu1 %v6994_v20, %s6350_s13 }
 0x562   :  { %v1403_v19 = vpack.c.bf16 %v1338_v33, %v1337_v32  ;;  %v6284_v51 = vpop.permute.xlu1 %6283 }
 0x563   :  { %v6286_v56 = vunpack.i.h.bf16 %v6284_v51  ;;  %v6285_v57 = vunpack.i.l.bf16 %v6284_v51 }
 0x564   :  { %6063 = vmatprep.mubr.msk.bf16.mxu1 %vm1424_vm3, %v1403_v19  ;;  %6103 = vmatprep.mubr.msk.bf16.mxu0 %vm1424_vm3, %v1403_v19 }
 0x565   :  { %v1339_v37 = vsel %vm82_vm1, %v6888_v43, %v6285_v57  ;;  %v1340_v38 = vsel %vm82_vm1, %v6886_v42, %v6286_v56  ;;  %2168 = vrot.lane.b32.xlu0 %v7001_v22, %s6350_s13  ;;  %1788 = vperm.xlu1 %6328, %v7107_v52  }
 0x566   :  { %v1404_v20 = vpack.c.bf16 %v1340_v38, %v1339_v37  ;;  %v6289_v9 = vpop.permute.xlu0 %6288 }
 0x567   :  { %v6291_v61 = vunpack.i.h.bf16 %v6289_v9  ;;  %v6290_v62 = vunpack.i.l.bf16 %v6289_v9 }
 0x568   :  { %6064 = vmatmul.mubr.msk.bf16.gmra.mrb[48].mxu1 %vm1424_vm3, %v1404_v20  ;;  %6104 = vmatmul.mubr.msk.bf16.gmra.mrb[60].mxu0 %vm1424_vm3, %v1404_v20 }
 0x569   :  { %v1341_v42 = vsel %vm82_vm1, %v6893_v49, %v6290_v62  ;;  %v1342_v43 = vsel %vm82_vm1, %v6891_v48, %v6291_v61  ;;  %1803 = vperm.xlu0 %6327, %v7121_v10   ;;  %2166 = vrot.lane.b32.xlu1 %v7008_v26, %s6350_s13 }
 0x56a   :  { %v1405_v22 = vpack.c.bf16 %v1342_v43, %v1341_v42  ;;  %v6294_v5 = vpop.permute.xlu1 %6293 }
 0x56b   :  { %v6296_v17 = vunpack.i.h.bf16 %v6294_v5  ;;  %v6295_v18 = vunpack.i.l.bf16 %v6294_v5 }
 0x56c   :  { %6067 = vmatprep.mubr.msk.bf16.mxu1 %vm1424_vm3, %v1405_v22  ;;  %6107 = vmatprep.mubr.msk.bf16.mxu0 %vm1424_vm3, %v1405_v22 }
 0x56d   :  { %v1343_v48 = vsel %vm82_vm1, %v6898_v54, %v6295_v18  ;;  %v1344_v49 = vsel %vm82_vm1, %v6896_v53, %v6296_v17  ;;  %2172 = vrot.lane.b32.xlu0 %v7015_v29, %s6350_s13  ;;  %1798 = vperm.xlu1 %6328, %v7135_v7  }
 0x56e   :  { %v1406_v26 = vpack.c.bf16 %v1344_v49, %v1343_v48  ;;  %v6299_v6 = vpop.permute.xlu0 %6298 }
 0x56f   :  { %v6301_v35 = vunpack.i.h.bf16 %v6299_v6  ;;  %v6300_v36 = vunpack.i.l.bf16 %v6299_v6 }
 0x570   :  { %6068 = vmatmul.mubr.msk.bf16.gmra.mrb[52].mxu1 %vm1424_vm3, %v1406_v26  ;;  %6108 = vmatmul.mubr.msk.bf16.gmra.mrb[64].mxu0 %vm1424_vm3, %v1406_v26 }
 0x571   :  { %v1345_v53 = vsel %vm82_vm1, %v6903_v59, %v6300_v36  ;;  %v1346_v54 = vsel %vm82_vm1, %v6901_v58, %v6301_v35  ;;  %1813 = vperm.xlu0 %6327, %v7149_v12   ;;  %2170 = vrot.lane.b32.xlu1 %v7026_v45, %s6350_s13  ;;  %v4502_v36 = vld [vmem:[%s10520_s17] sm:$0xff] }
 0x572   :  { %v1407_v29 = vpack.c.bf16 %v1346_v54, %v1345_v53  ;;  %v6304_v21 = vpop.permute.xlu1 %6303  ;;  %v4503_v53 = vld [vmem:[%s10520_s17 + $0x8] sm:$0xff]  ;;  %v7275_v54 = vld [vmem:[%s10518_s14] ss:$0 sm:$0xff] }
 0x573   :  { %v6306_v13 = vunpack.i.h.bf16 %v6304_v21  ;;  %v6305_v39 = vunpack.i.l.bf16 %v6304_v21  ;;  %v4523_v21 = vpack.c.bf16 %v4503_v53, %v4502_v36 }
 0x574   :  { %6071 = vmatprep.mubr.msk.bf16.mxu1 %vm1424_vm3, %v1407_v29  ;;  %6111 = vmatprep.mubr.msk.bf16.mxu0 %vm1424_vm3, %v1407_v29  ;;  %v7280_v29 = vld [vmem:[%s10519_s16] ss:$0 sm:$0xff] }
 0x575   :  { %v1347_v58 = vsel %vm82_vm1, %v6908_v4, %v6305_v39  ;;  %v1348_v59 = vsel %vm82_vm1, %v6906_v3, %v6306_v13  ;;  %2176 = vrot.lane.b32.xlu0 %v7039_v55, %s6350_s13  ;;  %1808 = vperm.xlu1 %6328, %v1385_v23   ;;  %v7287_v39 = vsel %vm4582_vm4, 65535, %v6349_v46 }
 0x576   :  { %v1408_v45 = vpack.c.bf16 %v1348_v59, %v1347_v58  ;;  %v6309_v41 = vpop.permute.xlu0 %6308  ;;  %10827 = vst [vmem:[#allocation12_spill] sm:$0xff] %v7287_v39  ;;  %6123 = vmatprep.subr.bf16.mxu1 %v4523_v21 }
 0x577   :  { %v6311_v27 = vunpack.i.h.bf16 %v6309_v41  ;;  %v6310_v28 = vunpack.i.l.bf16 %v6309_v41  ;;  %6124 = vmatpush3.bf16.msra.mxu1 %v4523_v21 }
 0x578   :  { %6072 = vmatmul.mubr.msk.bf16.gmra.mrb[56].mxu1 %vm1424_vm3, %v1408_v45  ;;  %6112 = vmatmul.mubr.msk.bf16.gmra.mrb[68].mxu0 %vm1424_vm3, %v1408_v45 }
 0x579   :  { %v1349_v4 = vsel %vm82_vm1, %v6913_v11, %v6310_v28  ;;  %v1350_v3 = vsel %vm82_vm1, %v6911_v8, %v6311_v27  ;;  %1823 = vperm.xlu0 %6327, %v1388_v44   ;;  %2174 = vrot.lane.b32.xlu1 %v7052_v63, %s6350_s13 }
 0x57a   :  { %v1409_v55 = vpack.c.bf16 %v1350_v3, %v1349_v4  ;;  %v6314_v14 = vpop.permute.xlu1 %6313 }
 0x57b   :  { %v6316_v1 = vunpack.i.h.bf16 %v6314_v14  ;;  %v6315_v2 = vunpack.i.l.bf16 %v6314_v14 }
 0x57c   :  { %6075 = vmatprep.mubr.msk.bf16.mxu1 %vm1424_vm3, %v1409_v55  ;;  %6115 = vmatprep.mubr.msk.bf16.mxu0 %vm1424_vm3, %v1409_v55 }
 0x57d   :  { %v1351_v11 = vsel %vm82_vm1, %v6918_v16, %v6315_v2  ;;  %v1352_v8 = vsel %vm82_vm1, %v6916_v15, %v6316_v1  ;;  %1818 = vperm.xlu1 %6328, %v1387_v47   ;;  %2180 = vrot.lane.b32.xlu0 %v7065_v30, %s6350_s13 }
 0x57e   :  { %v1410_v63 = vpack.c.bf16 %v1352_v8, %v1351_v11  ;;  %v6319_v32 = vpop.permute.xlu0 %6318 }
 0x57f   :  { %v6321_v33 = vunpack.i.h.bf16 %v6319_v32  ;;  %v6320_v19 = vunpack.i.l.bf16 %v6319_v32 }
 0x580   :  { %6076 = vmatmul.mubr.msk.bf16.gmra.mrb[60].mxu1 %vm1424_vm3, %v1410_v63  ;;  %6116 = vmatmul.mubr.msk.bf16.gmra.mrb[72].mxu0 %vm1424_vm3, %v1410_v63 }
 0x581   :  { %v1353_v51 = vsel %vm82_vm1, %v6923_v25, %v6320_v19  ;;  %v1354_v16 = vsel %vm82_vm1, %v6921_v24, %v6321_v33  ;;  %2178 = vrot.lane.b32.xlu1 %v7079_v40, %s6350_s13  ;;  %2184 = vrot.lane.b32.xlu0 %v7093_v50, %s6350_s13 }
 0x582   :  { %v1411_v15 = vpack.c.bf16 %v1354_v16, %v1353_v51  ;;  %v6324_v30 = vpop.permute.xlu1 %6323 }
 0x583   :  { %v6326_v56 = vunpack.i.h.bf16 %v6324_v30  ;;  %v6325_v57 = vunpack.i.l.bf16 %v6324_v30 }
 0x584   :  { %6079 = vmatprep.mubr.msk.bf16.mxu1 %vm1424_vm3, %v1411_v15  ;;  %6119 = vmatprep.mubr.msk.bf16.mxu0 %vm1424_vm3, %v1411_v15 }
 0x585   :  { %v1355_v25 = vsel %vm82_vm1, %v6928_v34, %v6325_v57  ;;  %v1356_v24 = vsel %vm82_vm1, %v6926_v31, %v6326_v56  ;;  %2182 = vrot.lane.b32.xlu1 %v7107_v52, %s6350_s13  ;;  %2188 = vrot.lane.b32.xlu0 %v7121_v10, %s6350_s13 }
 0x586   :  { %v1412_v40 = vpack.c.bf16 %v1356_v24, %v1355_v25 }
 0x588   :  { %6080 = vmatmul.mubr.msk.bf16.gmra.mrb[64].mxu1 %vm1424_vm3, %v1412_v40  ;;  %6120 = vmatmul.mubr.msk.bf16.gmra.mrb[76].mxu0 %vm1424_vm3, %v1412_v40 }
 0x589   :  { %2186 = vrot.lane.b32.xlu1 %v7135_v7, %s6350_s13  ;;  %2192 = vrot.lane.b32.xlu0 %v7149_v12, %s6350_s13  ;;  %v2294_v12 = vlaneseq }
 0x58b   :  { %v2295_v35 = vshrl.u32 %v2294_v12, 7 }
 0x58d   :  { %2190 = vrot.lane.b32.xlu1 %v1385_v23, %s6350_s13  ;;  %2196 = vrot.lane.b32.xlu0 %v1388_v44, %s6350_s13  ;;  %v7290_v41 = vsub.s32 0, %v2295_v35  ;;  %v7292_v44 = vsub.s32 1, %v2295_v35  ;;  %v7295_v3 = vsub.s32 2, %v2295_v35  ;;  %v7297_v55 = vsub.s32 3, %v2295_v35 }
 0x58f   :  { %v7226_v50 = vpop.permute.xlu0 %1668  ;;  %10828 = vst [vmem:[#allocation13_spill] sm:$0xff] %v7290_v41  ;;  %10829 = vst [vmem:[#allocation14_spill] sm:$0xff] %v7292_v44 }
 0x590   :  { %10830 = vst [vmem:[#allocation15_spill] sm:$0xff] %v7295_v3  ;;  %10831 = vst [vmem:[#allocation16_spill] sm:$0xff] %v7297_v55 }
 0x591   :  { %2194 = vrot.lane.b32.xlu1 %v1387_v47, %s6350_s13 }
 0x593   :  { %v7222_v31 = vpop.permute.xlu1 %1678  ;;  %v7230_v37 = vpop.permute.xlu0 %1683 }
 0x597   :  { %v7224_v34 = vpop.permute.xlu1 %1673  ;;  %v7234_v20 = vpop.permute.xlu0 %1693 }
 0x59b   :  { %v7228_v52 = vpop.permute.xlu1 %1688  ;;  %v7238_v10 = vpop.permute.xlu0 %1703 }
 0x59f   :  { %v7232_v38 = vpop.permute.xlu1 %1698  ;;  %v7242_v62 = vpop.permute.xlu0 %1713 }
 0x5a3   :  { %v7236_v9 = vpop.permute.xlu1 %1708  ;;  %v7246_v43 = vpop.permute.xlu0 %1718 }
 0x5a7   :  { %v7240_v61 = vpop.permute.xlu1 %2134  ;;  %v7250_v5 = vpop.permute.xlu0 %2138 }
 0x5a8   :  { %10819 = vst [vmem:[#allocation4_spill] sm:$0xff] %v7240_v61  ;;  %10821 = vst [vmem:[#allocation6_spill] sm:$0xff] %v7250_v5 }
 0x5ab   :  { %v7244_v42 = vpop.permute.xlu1 %1723  ;;  %v7254_v17 = vpop.permute.xlu0 %2140 }
 0x5ac   :  { %10822 = vst [vmem:[#allocation7_spill] sm:$0xff] %v7254_v17 }
 0x5af   :  { %v7248_v22 = vpop.permute.xlu1 %2136  ;;  %v7258_v48 = vpop.permute.xlu0 %1733 }
 0x5b0   :  { %10820 = vst [vmem:[#allocation5_spill] sm:$0xff] %v7248_v22 }
 0x5b3   :  { %v7252_v7 = vpop.permute.xlu1 %1728  ;;  %v7262_v26 = vpop.permute.xlu0 %2144 }
 0x5b4   :  { %10824 = vst [vmem:[#allocation9_spill] sm:$0xff] %v7262_v26 }
 0x5b7   :  { %v7256_v18 = vpop.permute.xlu1 %2142  ;;  %v7282_v23 = vpop.permute.xlu0 %1743 }
 0x5b8   :  { %10823 = vst [vmem:[#allocation8_spill] sm:$0xff] %v7256_v18 }
 0x5bb   :  { %v7260_v49 = vpop.permute.xlu1 %1738  ;;  %v7309_v53 = vpop.permute.xlu0 %2148 }
 0x5bc   :  { %10832 = vst [vmem:[#allocation17_spill] sm:$0xff] %v7309_v53 }
 0x5bf   :  { %v7264_v6 = vpop.permute.xlu1 %2146 }
 0x5c0   :  { %10825 = vst [vmem:[#allocation10_spill] sm:$0xff] %v7264_v6 }
 0x5c3   :  { %v7284_v13 = vpop.permute.xlu1 %1748 }
 0x5c4   :  { %10826 = vst [vmem:[#allocation11_spill] sm:$0xff] %v7284_v13 }
 0x5c7   :  { %v7311_v21 = vpop.permute.xlu1 %2150 }
 0x5c8   :  { %10833 = vst [vmem:[#allocation18_spill] sm:$0xff] %v7311_v21 }
 0x623   :  { %v6053_v58 = vpop.f32.mrb[36].mxu1  ;;  %v6093_v59 = vpop.f32.mrb[48].mxu0 }
 0x624   :  { %v1516_v45 = vadd.f32 %v6053_v58, %v7275_v54  ;;  %v1920_v27 = vadd.f32 %v6093_v59, %v7280_v29  ;;  %v1507_v28 = vpop.f32.mrb[37].mxu1  ;;  %v1911_v4 = vpop.f32.mrb[49].mxu0  ;;  %v7314_v59 = vsub.s32 4, %v2295_v35 }
 0x625   :  { %v1508_v46 = vadd.f32 %v7275_v54, %v1507_v28  ;;  %v1912_v14 = vadd.f32 %v7280_v29, %v1911_v4  ;;  %v6054_v47 = vpop.f32.mrb[38].mxu1  ;;  %v6094_v1 = vpop.f32.mrb[50].mxu0  ;;  %v7318_v28 = vsub.s32 5, %v2295_v35  ;;  %v7320_v4 = vsub.s32 6, %v2295_v35 }
 0x626   :  { %v1636_v2 = vmax.f32 %v1516_v45, 0.0  ;;  %v2040_v11 = vmax.f32 %v1920_v27, 0.0  ;;  %v1519_v8 = vadd.f32 %v6054_v47, %v7275_v54  ;;  %v1923_v63 = vadd.f32 %v6094_v1, %v7280_v29  ;;  %v1510_v32 = vpop.f32.mrb[39].mxu1  ;;  %v1914_v33 = vpop.f32.mrb[51].mxu0  ;;  %10834 = vst [vmem:[#allocation19_spill] sm:$0xff] %v7314_v59 }
 0x627   :  { %v1634_v19 = vmax.f32 %v1508_v46, 0.0  ;;  %v2038_v51 = vmax.f32 %v1912_v14, 0.0  ;;  %v1511_v16 = vadd.f32 %v7275_v54, %v1510_v32  ;;  %v1915_v15 = vadd.f32 %v7280_v29, %v1914_v33  ;;  %10835 = vst [vmem:[#allocation20_spill] sm:$0xff] %v7318_v28 }
 0x628   :  { %v1828_v30 = vmul.f32 %v7222_v31, %v1636_v2  ;;  %v2072_v56 = vmul.f32 %v2040_v11, %v7222_v31  ;;  %v1637_v57 = vmax.f32 %v1519_v8, 0.0  ;;  %v2041_v25 = vmax.f32 %v1923_v63, 0.0 }
 0x629   :  { %v1826_v24 = vmul.f32 %v7226_v50, %v1634_v19  ;;  %v2070_v40 = vmul.f32 %v2038_v51, %v7226_v50  ;;  %v1635_v12 = vmax.f32 %v1511_v16, 0.0  ;;  %v2039_v36 = vmax.f32 %v1915_v15, 0.0 }
 0x62a   :  { %v2104_v58 = vmul.f32 %v1828_v30, %v7222_v31  ;;  %v1829_v45 = vmul.f32 %v7230_v37, %v1637_v57  ;;  %v2073_v27 = vmul.f32 %v2041_v25, %v7230_v37  ;;  %v7323_v14 = vsub.s32 7, %v2295_v35 }
 0x62b   :  { %v2102_v46 = vmul.f32 %v1826_v24, %v7226_v50  ;;  %v6057_v47 = vpop.f32.mrb[40].mxu1  ;;  %v6097_v1 = vpop.f32.mrb[52].mxu0  ;;  %v7331_v31 = vsel %vm82_vm1, %v2072_v56, %v7250_v5  ;;  %v7335_v11 = vsel %vm82_vm1, %v2070_v40, %v7240_v61  ;;  %v1827_v8 = vmul.f32 %v7224_v34, %v1635_v12 }
 0x62c   :  { %v7327_v2 = vsel %vm82_vm1, %v2104_v58, %v7250_v5  ;;  %v1523_v63 = vpop.f32.mrb[41].mxu1  ;;  %v1927_v50 = vpop.f32.mrb[53].mxu0  ;;  %v2105_v35 = vmul.f32 %v1829_v45, %v7230_v37  ;;  %v7341_v32 = vsel %vm82_vm1, %v2073_v27, %v7254_v17  ;;  %v2071_v33 = vmul.f32 %v2039_v36, %v7224_v34 }
 0x62d   :  { %10836 = vst [vmem:[#allocation21_spill] sm:$0xff] %v7327_v2  ;;  %v1532_v19 = vadd.f32 %v6057_v47, %v7275_v54  ;;  %v6058_v51 = vpop.f32.mrb[42].mxu1  ;;  %v6098_v16 = vpop.f32.mrb[54].mxu0  ;;  %v7347_v15 = vrot.slane %v7327_v2, %v7290_v41  ;;  %v7351_v30 = vrot.slane %v7327_v2, %v7292_v44  ;;  %v7355_v37 = vrot.slane %v7327_v2, %v7295_v3 }
 0x62e   :  { %v2230_v56 = vsel %vm82_vm1, %v2102_v46, %v7240_v61  ;;  %v1526_v57 = vpop.f32.mrb[43].mxu1  ;;  %v1930_v25 = vpop.f32.mrb[55].mxu0  ;;  %v7361_v24 = vrot.slane %v7327_v2, %v7297_v55  ;;  %v7365_v40 = vrot.slane %v7327_v2, %v7314_v59  ;;  %v7369_v12 = vrot.slane %v7327_v2, %v7318_v28 }
 0x62f   :  { %10837 = vst [vmem:[#allocation22_spill] sm:$0xff] %v7347_v15  ;;  %10838 = vst [vmem:[#allocation23_spill] sm:$0xff] %v7351_v30  ;;  %v7373_v36 = vrot.slane %v7327_v2, %v7320_v4  ;;  %v7376_v58 = vrot.slane %v2230_v56, %v7290_v41  ;;  %v7379_v45 = vrot.slane %v2230_v56, %v7292_v44  ;;  %v7397_v5 = vpop.permute.xlu0 %1753  ;;  %v7399_v2 = vpop.permute.xlu1 %1758 }
 0x630   :  { %10839 = vst [vmem:[#allocation24_spill] sm:$0xff] %v7355_v37  ;;  %10840 = vst [vmem:[#allocation25_spill] sm:$0xff] %v7361_v24  ;;  %v7382_v27 = vrot.slane %v2230_v56, %v7295_v3  ;;  %v7385_v46 = vrot.slane %v2230_v56, %v7297_v55  ;;  %v7388_v47 = vrot.slane %v2230_v56, %v7314_v59 }
 0x631   :  { %10841 = vst [vmem:[#allocation26_spill] sm:$0xff] %v7365_v40  ;;  %10842 = vst [vmem:[#allocation27_spill] sm:$0xff] %v7369_v12  ;;  %v7391_v0 = vrot.slane %v2230_v56, %v7318_v28  ;;  %v7394_v60 = vrot.slane %v2230_v56, %v7320_v4  ;;  %v2103_v61 = vmul.f32 %v1827_v8, %v7224_v34 }
 0x632   :  { %10843 = vst [vmem:[#allocation28_spill] sm:$0xff] %v7373_v36  ;;  %10844 = vst [vmem:[#allocation29_spill] sm:$0xff] %v7376_v58  ;;  %v1640_v36 = vmax.f32 %v1532_v19, 0.0  ;;  %v1936_v12 = vadd.f32 %v6097_v1, %v7280_v29  ;;  %v1524_v40 = vadd.f32 %v7275_v54, %v1523_v63  ;;  %v1928_v24 = vadd.f32 %v7280_v29, %v1927_v50 }
 0x633   :  { %10845 = vst [vmem:[#allocation30_spill] sm:$0xff] %v7379_v45  ;;  %10846 = vst [vmem:[#allocation31_spill] sm:$0xff] %v7382_v27  ;;  %v1527_v34 = vadd.f32 %v7275_v54, %v1526_v57  ;;  %v7410_v8 = vpop.f32.mrb[44].mxu1  ;;  %v7416_v1 = vmul.f32 %v7379_v45, %v7331_v31  ;;  %v7420_v63 = vsel %vm82_vm1, %v2103_v61, %v7248_v22 }
 0x634   :  { %10847 = vst [vmem:[#allocation32_spill] sm:$0xff] %v7385_v46  ;;  %10848 = vst [vmem:[#allocation33_spill] sm:$0xff] %v7388_v47  ;;  %v7405_v47 = vrot.slane %v2230_v56, %v7323_v14  ;;  %v7412_v46 = vpop.f32.mrb[56].mxu0  ;;  %v1832_v50 = vmul.f32 %v7232_v38, %v1640_v36  ;;  %v2044_v19 = vmax.f32 %v1936_v12, 0.0  ;;  %v1638_v56 = vmax.f32 %v1524_v40, 0.0 }
 0x635   :  { %10849 = vst [vmem:[#allocation34_spill] sm:$0xff] %v7391_v0  ;;  %10850 = vst [vmem:[#allocation35_spill] sm:$0xff] %v7394_v60  ;;  %v1535_v0 = vadd.f32 %v6058_v51, %v7275_v54  ;;  %v1939_v60 = vadd.f32 %v6098_v16, %v7280_v29  ;;  %v7423_v51 = vpop.f32.mrb[45].mxu1  ;;  %v7425_v16 = vpop.f32.mrb[57].mxu0  ;;  %v2042_v57 = vmax.f32 %v1928_v24, 0.0  ;;  %v1639_v45 = vmax.f32 %v1527_v34, 0.0 }
 0x636   :  { %10851 = vst [vmem:[#allocation36_spill] sm:$0xff] %v7397_v5  ;;  %10852 = vst [vmem:[#allocation37_spill] sm:$0xff] %v7399_v2  ;;  %v7427_v27 = vpop.f32.mrb[46].mxu1  ;;  %v7429_v30 = vpop.f32.mrb[58].mxu0  ;;  %v2076_v61 = vmul.f32 %v2044_v19, %v7232_v38  ;;  %v7434_v36 = vadd.f32 %v7280_v29, %v1930_v25  ;;  %v7450_v24 = vsel %vm82_vm1, %v2071_v33, %v7248_v22 }
 0x637   :  { %10853 = vst [vmem:[#allocation38_spill] sm:$0xff] %v7405_v47  ;;  %10854 = vst [vmem:[#allocation39_spill] sm:$0xff] %v7416_v1  ;;  %v1641_v47 = vmax.f32 %v1535_v0, 0.0  ;;  %v2045_v37 = vmax.f32 %v1939_v60, 0.0  ;;  %v2108_v1 = vmul.f32 %v1832_v50, %v7232_v38  ;;  %v7436_v12 = vpop.f32.mrb[47].mxu1  ;;  %v7438_v15 = vpop.f32.mrb[59].mxu0  ;;  %v7442_v0 = vsel %vm82_vm1, %v2105_v35, %v7254_v17 }
 0x638   :  { %10855 = vst [vmem:[#allocation40_spill] sm:$0xff] %v7420_v63  ;;  %10856 = vst [vmem:[#allocation41_spill] sm:$0xff] %v7442_v0  ;;  %v7446_v60 = vrot.slane %v7420_v63, %v7290_v41  ;;  %v1830_v38 = vmul.f32 %v7228_v52, %v1638_v56  ;;  %v7455_v25 = vrot.slane %v7420_v63, %v7292_v44  ;;  %v7472_v17 = vpop.permute.xlu0 %2152  ;;  %v2043_v63 = vmax.f32 %v7434_v36, 0.0 }
 0x639   :  { %v7459_v40 = vsel %vm82_vm1, %v2108_v1, %v7264_v6  ;;  %v2074_v35 = vmul.f32 %v2042_v57, %v7228_v52  ;;  %v1833_v34 = vmul.f32 %v7238_v10, %v1641_v47  ;;  %v7469_v19 = vsel %vm82_vm1, %v2076_v61, %v7264_v6  ;;  %10861 = vst [vmem:[#allocation46_spill] sm:$0xff] %v7472_v17  ;;  %v7474_v1 = vpop.permute.xlu1 %2154 }
 0x63a   :  { %10857 = vst [vmem:[#allocation42_spill] sm:$0xff] %v7446_v60  ;;  %10858 = vst [vmem:[#allocation43_spill] sm:$0xff] %v7455_v25  ;;  %v2309_v50 = vrot.slane %v7459_v40, %v7290_v41  ;;  %v2437_v33 = vrot.slane %v7459_v40, %v7292_v44  ;;  %v2077_v56 = vmul.f32 %v2045_v37, %v7238_v10 }
 0x63b   :  { %10859 = vst [vmem:[#allocation44_spill] sm:$0xff] %v7459_v40  ;;  %10860 = vst [vmem:[#allocation45_spill] sm:$0xff] %v7469_v19  ;;  %v7478_v57 = vrot.slane %v7459_v40, %v7295_v3  ;;  %v2106_v47 = vmul.f32 %v1830_v38, %v7228_v52  ;;  %v1831_v22 = vmul.f32 %v7234_v20, %v1639_v45  ;;  %v7487_v60 = vpop.f32.mrb[48].mxu1  ;;  %v7489_v0 = vpop.f32.mrb[60].mxu0 }
 0x63c   :  { %10862 = vst [vmem:[#allocation47_spill] sm:$0xff] %v7474_v1  ;;  %v2364_v25 = vmul.f32 %v2309_v50, %v7335_v11  ;;  %v2365_v61 = vmul.f32 %v2309_v50, %v7450_v24  ;;  %v2492_v37 = vmul.f32 %v2437_v33, %v7331_v31  ;;  %v2493_v6 = vmul.f32 %v2437_v33, %v7341_v32  ;;  %v7505_v38 = vpop.f32.mrb[49].mxu1  ;;  %v7507_v50 = vpop.f32.mrb[61].mxu0 }
 0x63d   :  { %10863 = vst [vmem:[#allocation48_spill] sm:$0xff] %v7478_v57  ;;  %v7493_v57 = vrot.slane %v7459_v40, %v7297_v55  ;;  %v7497_v52 = vrot.slane %v7459_v40, %v7314_v59  ;;  %v7501_v45 = vrot.slane %v7459_v40, %v7318_v28  ;;  %v2234_v36 = vsel %vm82_vm1, %v2106_v47, %v7256_v18  ;;  %v7521_v58 = vpop.f32.mrb[62].mxu0 }
 0x63e   :  { %v7511_v33 = vrot.slane %v7459_v40, %v7320_v4  ;;  %v2433_v39 = vrot.slane %v2234_v36, %v7292_v44  ;;  %v7523_v47 = vadd.f32 %v2492_v37, %v2364_v25  ;;  %v7526_v5 = vrot.slane %v2234_v36, %v7297_v55  ;;  %v7535_v2 = vpop.f32.mrb[63].mxu0 }
 0x63f   :  { %10864 = vst [vmem:[#allocation49_spill] sm:$0xff] %v7493_v57  ;;  %10865 = vst [vmem:[#allocation50_spill] sm:$0xff] %v7497_v52  ;;  %v2305_v57 = vrot.slane %v2234_v36, %v7290_v41  ;;  %v7517_v52 = vsel %vm82_vm1, %v2074_v35, %v7256_v18  ;;  %v2109_v40 = vmul.f32 %v1833_v34, %v7238_v10 }
 0x640   :  { %10866 = vst [vmem:[#allocation51_spill] sm:$0xff] %v7501_v45  ;;  %10867 = vst [vmem:[#allocation52_spill] sm:$0xff] %v7511_v33  ;;  %v7519_v45 = vpop.f32.mrb[50].mxu1  ;;  %v7531_v33 = vsel %vm82_vm1, %v2077_v56, %v7309_v53  ;;  %v7537_v35 = vadd.f32 %v2493_v6, %v2365_v61  ;;  %v2490_v25 = vmul.f32 %v2433_v39, %v7331_v31 }
 0x641   :  { %10868 = vst [vmem:[#allocation53_spill] sm:$0xff] %v7517_v52  ;;  %10869 = vst [vmem:[#allocation54_spill] sm:$0xff] %v7523_v47  ;;  %v7533_v13 = vpop.f32.mrb[51].mxu1  ;;  %v2362_v18 = vmul.f32 %v2305_v57, %v7335_v11  ;;  %v7542_v37 = vrot.slane %v2234_v36, %v7295_v3  ;;  %v2363_v47 = vmul.f32 %v2305_v57, %v7450_v24 }
 0x642   :  { %10870 = vst [vmem:[#allocation55_spill] sm:$0xff] %v7526_v5  ;;  %10871 = vst [vmem:[#allocation56_spill] sm:$0xff] %v7537_v35  ;;  %v2491_v10 = vmul.f32 %v2433_v39, %v7341_v32  ;;  %v7547_v34 = vrot.slane %v2234_v36, %v7314_v59  ;;  %v7550_v56 = vrot.slane %v2234_v36, %v7318_v28  ;;  %v7565_v39 = vpop.permute.xlu1 %1768 }
 0x643   :  { %10872 = vst [vmem:[#allocation57_spill] sm:$0xff] %v7542_v37  ;;  %v7554_v6 = vmul.f32 %v7526_v5, %v7469_v19  ;;  %v7557_v61 = vrot.slane %v2234_v36, %v7320_v4  ;;  %v7560_v35 = vrot.slane %v2234_v36, %v7323_v14  ;;  %v2107_v57 = vmul.f32 %v1831_v22, %v7234_v20  ;;  %v7563_v37 = vpop.permute.xlu0 %1763  ;;  %v7585_v5 = vpop.f32.mrb[52].mxu1 }
 0x644   :  { %10873 = vst [vmem:[#allocation58_spill] sm:$0xff] %v7547_v34  ;;  %10874 = vst [vmem:[#allocation59_spill] sm:$0xff] %v7550_v56  ;;  %v1548_v34 = vadd.f32 %v7410_v8, %v7275_v54  ;;  %v1952_v56 = vadd.f32 %v7412_v46, %v7280_v29  ;;  %v7575_v36 = vadd.f32 %v2490_v25, %v2362_v18  ;;  %v7587_v46 = vpop.f32.mrb[64].mxu0  ;;  %v7596_v25 = vpop.f32.mrb[53].mxu1 }
 0x645   :  { %10875 = vst [vmem:[#allocation60_spill] sm:$0xff] %v7554_v6  ;;  %10876 = vst [vmem:[#allocation61_spill] sm:$0xff] %v7557_v61  ;;  %v1540_v6 = vadd.f32 %v7275_v54, %v7423_v51  ;;  %v1944_v61 = vadd.f32 %v7280_v29, %v7425_v16  ;;  %v7579_v22 = vsel %vm82_vm1, %v2109_v40, %v7309_v53  ;;  %v7598_v53 = vpop.f32.mrb[65].mxu0 }
 0x646   :  { %10877 = vst [vmem:[#allocation62_spill] sm:$0xff] %v7560_v35  ;;  %10878 = vst [vmem:[#allocation63_spill] sm:$0xff] %v7563_v37  ;;  %v1551_v35 = vadd.f32 %v7427_v27, %v7275_v54  ;;  %v1955_v8 = vadd.f32 %v7429_v30, %v7280_v29  ;;  %v7589_v51 = vadd.f32 %v2491_v10, %v2363_v47  ;;  %v1644_v40 = vmax.f32 %v1548_v34, 0.0  ;;  %v7602_v37 = vpop.f32.mrb[66].mxu0 }
 0x647   :  { %10879 = vst [vmem:[#allocation64_spill] sm:$0xff] %v7565_v39  ;;  %10880 = vst [vmem:[#allocation65_spill] sm:$0xff] %v7575_v36  ;;  %v7593_v18 = vsel %vm82_vm1, %v2107_v57, %v7262_v26  ;;  %v2075_v16 = vmul.f32 %v2043_v63, %v7234_v20  ;;  %v2048_v27 = vmax.f32 %v1952_v56, 0.0  ;;  %v2046_v30 = vmax.f32 %v1944_v61, 0.0  ;;  %v7600_v39 = vpop.f32.mrb[54].mxu1  ;;  %v7611_v34 = vpop.f32.mrb[67].mxu0 }
 0x648   :  { %10881 = vst [vmem:[#allocation66_spill] sm:$0xff] %v7579_v22  ;;  %10882 = vst [vmem:[#allocation67_spill] sm:$0xff] %v7589_v51  ;;  %v1642_v22 = vmax.f32 %v1540_v6, 0.0  ;;  %v1645_v36 = vmax.f32 %v1551_v35, 0.0  ;;  %v1836_v47 = vmul.f32 %v7246_v43, %v1644_v40  ;;  %v2049_v10 = vmax.f32 %v1955_v8, 0.0  ;;  %v7609_v63 = vpop.f32.mrb[55].mxu1 }
 0x649   :  { %10883 = vst [vmem:[#allocation68_spill] sm:$0xff] %v7593_v18  ;;  %10884 = vst [vmem:[#allocation69_spill] sm:$0xff] %v7596_v25  ;;  %v1543_v57 = vadd.f32 %v7275_v54, %v7436_v12  ;;  %v1947_v20 = vadd.f32 %v7280_v29, %v7438_v15  ;;  %v2080_v56 = vmul.f32 %v2048_v27, %v7246_v43  ;;  %v7632_v27 = vpop.permute.xlu0 %2156 }
 0x64a   :  { %10885 = vst [vmem:[#allocation70_spill] sm:$0xff] %v7598_v53  ;;  %10886 = vst [vmem:[#allocation71_spill] sm:$0xff] %v7600_v39  ;;  %v1834_v35 = vmul.f32 %v7236_v9, %v1642_v22  ;;  %v2078_v6 = vmul.f32 %v2046_v30, %v7236_v9  ;;  %v1837_v61 = vmul.f32 %v7244_v42, %v1645_v36 }
 0x64b   :  { %10887 = vst [vmem:[#allocation72_spill] sm:$0xff] %v7602_v37  ;;  %10888 = vst [vmem:[#allocation73_spill] sm:$0xff] %v7609_v63  ;;  %v2112_v8 = vmul.f32 %v1836_v47, %v7246_v43  ;;  %v2081_v40 = vmul.f32 %v2049_v10, %v7244_v42  ;;  %v1643_v12 = vmax.f32 %v1543_v57, 0.0  ;;  %v2047_v51 = vmax.f32 %v1947_v20, 0.0  ;;  %v7634_v43 = vpop.permute.xlu1 %2158 }
 0x64c   :  { %10889 = vst [vmem:[#allocation74_spill] sm:$0xff] %v7611_v34  ;;  %v7621_v15 = vrot.slane %v7593_v18, %v7290_v41  ;;  %v7625_v34 = vrot.slane %v7593_v18, %v7292_v44  ;;  %v7629_v22 = vsel %vm82_vm1, %v2075_v16, %v7262_v26  ;;  %v2110_v36 = vmul.f32 %v1834_v35, %v7236_v9 }
 0x64d   :  { %10892 = vst [vmem:[#allocation77_spill] sm:$0xff] %v7632_v27  ;;  %10893 = vst [vmem:[#allocation78_spill] sm:$0xff] %v7634_v43  ;;  %v7638_v30 = vrot.slane %v7593_v18, %v7295_v3  ;;  %v7642_v47 = vsel %vm82_vm1, %v2112_v8, %v7474_v1  ;;  %v7646_v10 = vsel %vm82_vm1, %v2080_v56, %v7474_v1  ;;  %v7661_v8 = vpop.f32.mrb[56].mxu1  ;;  %v7663_v56 = vpop.f32.mrb[68].mxu0 }
 0x64e   :  { %10890 = vst [vmem:[#allocation75_spill] sm:$0xff] %v7621_v15  ;;  %10891 = vst [vmem:[#allocation76_spill] sm:$0xff] %v7625_v34  ;;  %v7650_v16 = vsel %vm82_vm1, %v2078_v6, %v7311_v21  ;;  %v2317_v9 = vrot.slane %v7642_v47, %v7290_v41  ;;  %v2445_v57 = vrot.slane %v7642_v47, %v7292_v44 }
 0x64f   :  { %10894 = vst [vmem:[#allocation79_spill] sm:$0xff] %v7638_v30  ;;  %10895 = vst [vmem:[#allocation80_spill] sm:$0xff] %v7642_v47  ;;  %v2573_v20 = vrot.slane %v7642_v47, %v7295_v3  ;;  %v7659_v35 = vmul.f32 %v1837_v61, %v7244_v42  ;;  %v7667_v6 = vsel %vm82_vm1, %v2110_v36, %v7311_v21  ;;  %v7677_v30 = vpop.f32.mrb[57].mxu1  ;;  %v7679_v42 = vpop.f32.mrb[69].mxu0 }
 0x650   :  { %10896 = vst [vmem:[#allocation81_spill] sm:$0xff] %v7646_v10  ;;  %10897 = vst [vmem:[#allocation82_spill] sm:$0xff] %v7650_v16  ;;  %v7671_v1 = vsel %vm82_vm1, %v2081_v40, %v7632_v27  ;;  %v1835_v26 = vmul.f32 %v7242_v62, %v1643_v12  ;;  %v7675_v18 = vmul.f32 %v2047_v51, %v7242_v62  ;;  %v7685_v15 = vpop.f32.mrb[58].mxu1  ;;  %v7687_v40 = vpop.f32.mrb[70].mxu0 }
 0x651   :  { %10898 = vst [vmem:[#allocation83_spill] sm:$0xff] %v7661_v8  ;;  %10899 = vst [vmem:[#allocation84_spill] sm:$0xff] %v7663_v56  ;;  %v2368_v61 = vmul.f32 %v2317_v9, %v7335_v11  ;;  %v2369_v34 = vmul.f32 %v2317_v9, %v7450_v24  ;;  %v2496_v36 = vmul.f32 %v2445_v57, %v7331_v31 }
 0x652   :  { %10900 = vst [vmem:[#allocation85_spill] sm:$0xff] %v7671_v1  ;;  %10901 = vst [vmem:[#allocation86_spill] sm:$0xff] %v7677_v30  ;;  %v2497_v21 = vmul.f32 %v2445_v57, %v7341_v32  ;;  %v2624_v12 = vmul.f32 %v2573_v20, %v7517_v52  ;;  %v2701_v51 = vrot.slane %v7642_v47, %v7297_v55  ;;  %v7700_v30 = vpop.f32.mrb[59].mxu1  ;;  %v7702_v57 = vpop.f32.mrb[71].mxu0 }
 0x653   :  { %10902 = vst [vmem:[#allocation87_spill] sm:$0xff] %v7679_v42  ;;  %10903 = vst [vmem:[#allocation88_spill] sm:$0xff] %v7685_v15  ;;  %v7694_v42 = vrot.slane %v7642_v47, %v7314_v59  ;;  %v7698_v9 = vrot.slane %v7642_v47, %v7318_v28  ;;  %v2528_v15 = vadd.f32 %v2496_v36, %v2368_v61  ;;  %v7741_v53 = vpop.f32.mrb[72].mxu0 }
 0x654   :  { %10904 = vst [vmem:[#allocation89_spill] sm:$0xff] %v7687_v40  ;;  %10907 = vst [vmem:[#allocation92_spill] sm:$0xff] %v7700_v30  ;;  %v2529_v56 = vadd.f32 %v2497_v21, %v2369_v34  ;;  %v2313_v40 = vrot.slane %v7667_v6, %v7290_v41  ;;  %v2441_v8 = vrot.slane %v7667_v6, %v7292_v44 }
 0x655   :  { %10905 = vst [vmem:[#allocation90_spill] sm:$0xff] %v7694_v42  ;;  %10906 = vst [vmem:[#allocation91_spill] sm:$0xff] %v7698_v9  ;;  %v2625_v63 = vmul.f32 %v2573_v20, %v7629_v22  ;;  %v7711_v42 = vrot.slane %v7642_v47, %v7320_v4  ;;  %v2569_v9 = vrot.slane %v7667_v6, %v7295_v3  ;;  %v7723_v20 = vpop.permute.xlu1 %1778 }
 0x656   :  { %10908 = vst [vmem:[#allocation93_spill] sm:$0xff] %v7702_v57  ;;  %v2697_v57 = vrot.slane %v7667_v6, %v7297_v55  ;;  %v2656_v61 = vadd.f32 %v2624_v12, %v2528_v15  ;;  %v2366_v21 = vmul.f32 %v2313_v40, %v7335_v11  ;;  %v2367_v34 = vmul.f32 %v2313_v40, %v7450_v24 }
 0x657   :  { %10909 = vst [vmem:[#allocation94_spill] sm:$0xff] %v7711_v42  ;;  %v7721_v36 = vrot.slane %v7667_v6, %v7318_v28  ;;  %10911 = vst [vmem:[#allocation96_spill] sm:$0xff] %v7723_v20  ;;  %v2752_v47 = vmul.f32 %v2701_v51, %v7469_v19  ;;  %v7727_v42 = vmul.f32 %v2701_v51, %v7531_v33  ;;  %v7739_v20 = vpop.f32.mrb[60].mxu1 }
 0x658   :  { %v2494_v30 = vmul.f32 %v2441_v8, %v7331_v31  ;;  %v2495_v37 = vmul.f32 %v2441_v8, %v7341_v32  ;;  %v7731_v15 = vadd.f32 %v2625_v63, %v2529_v56  ;;  %v2622_v12 = vmul.f32 %v2569_v9, %v7517_v52  ;;  %v7746_v63 = vpop.f32.mrb[61].mxu1  ;;  %v7748_v56 = vpop.f32.mrb[73].mxu0 }
 0x659   :  { %10910 = vst [vmem:[#allocation95_spill] sm:$0xff] %v7721_v36  ;;  %10912 = vst [vmem:[#allocation97_spill] sm:$0xff] %v7727_v42  ;;  %v2623_v40 = vmul.f32 %v2569_v9, %v7629_v22  ;;  %v7737_v39 = vrot.slane %v7667_v6, %v7314_v59  ;;  %v7743_v51 = vadd.f32 %v2752_v47, %v2656_v61  ;;  %v7758_v61 = vpop.f32.mrb[62].mxu1 }
 0x65a   :  { %10913 = vst [vmem:[#allocation98_spill] sm:$0xff] %v7731_v15  ;;  %v2526_v42 = vadd.f32 %v2494_v30, %v2366_v21  ;;  %v2527_v25 = vadd.f32 %v2495_v37, %v2367_v34  ;;  %v2750_v8 = vmul.f32 %v2697_v57, %v7469_v19  ;;  %10916 = vst [vmem:[#allocation101_spill] sm:$0xff] %v7746_v63  ;;  %v7760_v37 = vpop.f32.mrb[74].mxu0 }
 0x65b   :  { %10914 = vst [vmem:[#allocation99_spill] sm:$0xff] %v7737_v39  ;;  %10915 = vst [vmem:[#allocation100_spill] sm:$0xff] %v7743_v51  ;;  %v2751_v9 = vmul.f32 %v2697_v57, %v7531_v33  ;;  %v7753_v15 = vmul.f32 %v7721_v36, %v7646_v10  ;;  %v2111_v39 = vmul.f32 %v1835_v26, %v7242_v62  ;;  %v7766_v51 = vpop.f32.mrb[63].mxu1 }
 0x65c   :  { %10917 = vst [vmem:[#allocation102_spill] sm:$0xff] %v7748_v56  ;;  %v1564_v47 = vadd.f32 %v7487_v60, %v7275_v54  ;;  %10919 = vst [vmem:[#allocation104_spill] sm:$0xff] %v7758_v61  ;;  %v2654_v30 = vadd.f32 %v2622_v12, %v2526_v42  ;;  %v2655_v21 = vadd.f32 %v2623_v40, %v2527_v25 }
 0x65d   :  { %10918 = vst [vmem:[#allocation103_spill] sm:$0xff] %v7753_v15  ;;  %10920 = vst [vmem:[#allocation105_spill] sm:$0xff] %v7760_v37  ;;  %v1968_v34 = vadd.f32 %v7489_v0, %v7280_v29  ;;  %v1556_v57 = vadd.f32 %v7275_v54, %v7505_v38  ;;  %v7768_v15 = vpop.f32.mrb[75].mxu0  ;;  %v7772_v62 = vrot.slane %v7667_v6, %v7320_v4 }
 0x65e   :  { %10921 = vst [vmem:[#allocation106_spill] sm:$0xff] %v7766_v51  ;;  %10922 = vst [vmem:[#allocation107_spill] sm:$0xff] %v7768_v15  ;;  %v1648_v26 = vmax.f32 %v1564_v47, 0.0  ;;  %v1960_v60 = vadd.f32 %v7280_v29, %v7507_v50  ;;  %v1567_v25 = vadd.f32 %v7519_v45, %v7275_v54  ;;  %v7780_v0 = vrot.slane %v7667_v6, %v7323_v14  ;;  %v7799_v47 = vpop.permute.xlu0 %1773 }
 0x65f   :  { %10923 = vst [vmem:[#allocation108_spill] sm:$0xff] %v7772_v62  ;;  %v7785_v38 = vsel %vm82_vm1, %v7659_v35, %v7632_v27  ;;  %v7789_v42 = vsel %vm82_vm1, %v2111_v39, %v7472_v17  ;;  %v7794_v50 = vsel %vm82_vm1, %v7675_v18, %v7472_v17  ;;  %v7796_v12 = vadd.f32 %v2750_v8, %v2654_v30 }
 0x660   :  { %10924 = vst [vmem:[#allocation109_spill] sm:$0xff] %v7780_v0  ;;  %10925 = vst [vmem:[#allocation110_spill] sm:$0xff] %v7785_v38  ;;  %v1840_v45 = vmul.f32 %v7260_v49, %v1648_v26  ;;  %v2052_v6 = vmax.f32 %v1968_v34, 0.0  ;;  %v1646_v40 = vmax.f32 %v1556_v57, 0.0  ;;  %v7801_v0 = vpop.permute.xlu1 %2162  ;;  %v7803_v35 = vadd.f32 %v2751_v9, %v2655_v21  ;;  %v7816_v57 = vpop.f32.mrb[64].mxu1 }
 0x661   :  { %10926 = vst [vmem:[#allocation111_spill] sm:$0xff] %v7789_v42  ;;  %10927 = vst [vmem:[#allocation112_spill] sm:$0xff] %v7794_v50  ;;  %v2050_v27 = vmax.f32 %v1960_v60, 0.0  ;;  %v1649_v39 = vmax.f32 %v1567_v25, 0.0  ;;  %v7807_v38 = vadd.f32 %v7521_v58, %v7280_v29  ;;  %v7814_v34 = vadd.f32 %v7275_v54, %v7533_v13  ;;  %v7818_v9 = vpop.f32.mrb[76].mxu0  ;;  %v7836_v26 = vpop.f32.mrb[65].mxu1 }
 0x662   :  { %10928 = vst [vmem:[#allocation113_spill] sm:$0xff] %v7796_v12  ;;  %10929 = vst [vmem:[#allocation114_spill] sm:$0xff] %v7801_v0  ;;  %v2116_v18 = vmul.f32 %v1840_v45, %v7260_v49  ;;  %v2084_v8 = vmul.f32 %v2052_v6, %v7260_v49  ;;  %v1838_v30 = vmul.f32 %v7252_v7, %v1646_v40  ;;  %v7838_v60 = vpop.f32.mrb[77].mxu0  ;;  %v7849_v17 = vpop.f32.mrb[66].mxu1 }
 0x663   :  { %10930 = vst [vmem:[#allocation115_spill] sm:$0xff] %v7803_v35  ;;  %10931 = vst [vmem:[#allocation116_spill] sm:$0xff] %v7816_v57  ;;  %v7822_v21 = vrot.slane %v7789_v42, %v7290_v41  ;;  %v7826_v58 = vrot.slane %v7789_v42, %v7292_v44  ;;  %v7830_v49 = vrot.slane %v7789_v42, %v7295_v3  ;;  %v7851_v42 = vpop.f32.mrb[78].mxu0  ;;  %v1647_v35 = vmax.f32 %v7814_v34, 0.0 }
 0x664   :  { %10932 = vst [vmem:[#allocation117_spill] sm:$0xff] %v7818_v9  ;;  %v7834_v13 = vadd.f32 %v7280_v29, %v7535_v2  ;;  %10936 = vst [vmem:[#allocation121_spill] sm:$0xff] %v7836_v26  ;;  %v7842_v25 = vsel %vm82_vm1, %v2116_v18, %v7801_v0  ;;  %v2114_v45 = vmul.f32 %v1838_v30, %v7252_v7 }
 0x665   :  { %10933 = vst [vmem:[#allocation118_spill] sm:$0xff] %v7822_v21  ;;  %10934 = vst [vmem:[#allocation119_spill] sm:$0xff] %v7826_v58  ;;  %v2082_v6 = vmul.f32 %v2050_v27, %v7252_v7  ;;  %v7847_v40 = vmul.f32 %v7282_v23, %v1649_v39  ;;  %v2325_v2 = vrot.slane %v7842_v25, %v7290_v41  ;;  %v7861_v7 = vpop.f32.mrb[67].mxu1  ;;  %v7863_v27 = vpop.f32.mrb[79].mxu0  ;;  %v2053_v21 = vmax.f32 %v7807_v38, 0.0 }
 0x666   :  { %10935 = vst [vmem:[#allocation120_spill] sm:$0xff] %v7830_v49  ;;  %10937 = vst [vmem:[#allocation122_spill] sm:$0xff] %v7838_v60  ;;  %v2453_v49 = vrot.slane %v7842_v25, %v7292_v44  ;;  %v2581_v18 = vrot.slane %v7842_v25, %v7295_v3  ;;  %v2709_v30 = vrot.slane %v7842_v25, %v7297_v55  ;;  %v2051_v34 = vmax.f32 %v7834_v13, 0.0 }
 0x667   :  { %10938 = vst [vmem:[#allocation123_spill] sm:$0xff] %v7842_v25  ;;  %10939 = vst [vmem:[#allocation124_spill] sm:$0xff] %v7849_v17  ;;  %v7867_v39 = vsel %vm82_vm1, %v2084_v8, %v7801_v0  ;;  %v2242_v58 = vsel %vm82_vm1, %v2114_v45, %v7634_v43  ;;  %v2372_v62 = vmul.f32 %v2325_v2, %v7335_v11 }
 0x668   :  { %10940 = vst [vmem:[#allocation125_spill] sm:$0xff] %v7851_v42  ;;  %10941 = vst [vmem:[#allocation126_spill] sm:$0xff] %v7861_v7  ;;  %v2373_v36 = vmul.f32 %v2325_v2, %v7450_v24  ;;  %v2500_v12 = vmul.f32 %v2453_v49, %v7331_v31  ;;  %v2501_v7 = vmul.f32 %v2453_v49, %v7341_v32  ;;  %v7890_v2 = vpop.permute.xlu0 %2160 }
 0x669   :  { %10942 = vst [vmem:[#allocation127_spill] sm:$0xff] %v7863_v27  ;;  %v7877_v27 = vpop.permute.xlu1 %1788  ;;  %v2837_v8 = vrot.slane %v7842_v25, %v7314_v59  ;;  %v7883_v45 = vrot.slane %v7842_v25, %v7318_v28  ;;  %v7887_v38 = vrot.slane %v7842_v25, %v7320_v4  ;;  %10946 = vst [vmem:[#allocation131_spill] sm:$0xff] %v7890_v2 }
 0x66a   :  { %10943 = vst [vmem:[#allocation128_spill] sm:$0xff] %v7877_v27  ;;  %v2532_v0 = vadd.f32 %v2500_v12, %v2372_v62  ;;  %v2628_v49 = vmul.f32 %v2581_v18, %v7517_v52  ;;  %v2629_v42 = vmul.f32 %v2581_v18, %v7629_v22  ;;  %v2756_v17 = vmul.f32 %v2709_v30, %v7469_v19 }
 0x66b   :  { %10944 = vst [vmem:[#allocation129_spill] sm:$0xff] %v7883_v45  ;;  %10945 = vst [vmem:[#allocation130_spill] sm:$0xff] %v7887_v38  ;;  %v7896_v60 = vmul.f32 %v2709_v30, %v7531_v33  ;;  %v2321_v26 = vrot.slane %v2242_v58, %v7290_v41  ;;  %v2449_v9 = vrot.slane %v2242_v58, %v7292_v44 }
 0x66c   :  { %v2577_v38 = vrot.slane %v2242_v58, %v7295_v3  ;;  %v2533_v25 = vadd.f32 %v2501_v7, %v2373_v36  ;;  %v2660_v13 = vadd.f32 %v2628_v49, %v2532_v0  ;;  %v2705_v57 = vrot.slane %v2242_v58, %v7297_v55  ;;  %v7917_v61 = vpop.permute.xlu0 %1783 }
 0x66d   :  { %10947 = vst [vmem:[#allocation132_spill] sm:$0xff] %v7896_v60  ;;  %v2833_v62 = vrot.slane %v2242_v58, %v7314_v59  ;;  %v2370_v12 = vmul.f32 %v2321_v26, %v7335_v11  ;;  %v2371_v18 = vmul.f32 %v2321_v26, %v7450_v24  ;;  %v2498_v15 = vmul.f32 %v2449_v9, %v7331_v31  ;;  %v7913_v0 = vpop.permute.xlu1 %2166 }
 0x66e   :  { %v2499_v30 = vmul.f32 %v2449_v9, %v7341_v32  ;;  %v2788_v60 = vadd.f32 %v2756_v17, %v2660_v13  ;;  %v2884_v51 = vmul.f32 %v2837_v8, %v7650_v16  ;;  %v7909_v37 = vmul.f32 %v2837_v8, %v7794_v50  ;;  %10949 = vst [vmem:[#allocation134_spill] sm:$0xff] %v7913_v0 }
 0x66f   :  { %v3012_v36 = vmul.f32 %v7883_v45, %v7646_v10  ;;  %v2530_v7 = vadd.f32 %v2498_v15, %v2370_v12  ;;  %v2626_v27 = vmul.f32 %v2577_v38, %v7517_v52  ;;  %v2627_v26 = vmul.f32 %v2577_v38, %v7629_v22 }
 0x670   :  { %10948 = vst [vmem:[#allocation133_spill] sm:$0xff] %v7909_v37  ;;  %v2531_v49 = vadd.f32 %v2499_v30, %v2371_v18  ;;  %v7919_v9 = vadd.f32 %v2629_v42, %v2533_v25  ;;  %v2916_v17 = vadd.f32 %v2884_v51, %v2788_v60  ;;  %v2754_v13 = vmul.f32 %v2705_v57, %v7469_v19 }
 0x671   :  { %v2961_v8 = vrot.slane %v2242_v58, %v7318_v28  ;;  %v2658_v37 = vadd.f32 %v2626_v27, %v2530_v7  ;;  %v2755_v45 = vmul.f32 %v2705_v57, %v7531_v33  ;;  %v2882_v15 = vmul.f32 %v2833_v62, %v7650_v16  ;;  %v7945_v7 = vpop.permute.xlu1 %1798 }
 0x672   :  { %10950 = vst [vmem:[#allocation135_spill] sm:$0xff] %v7919_v9  ;;  %v2659_v56 = vadd.f32 %v2627_v26, %v2531_v49  ;;  %v2883_v12 = vmul.f32 %v2833_v62, %v7794_v50  ;;  %v7927_v18 = vrot.slane %v2242_v58, %v7320_v4  ;;  %v7930_v38 = vrot.slane %v2242_v58, %v7323_v14 }
 0x673   :  { %v7934_v51 = vsel %vm82_vm1, %v2082_v6, %v7634_v43  ;;  %v7936_v42 = vadd.f32 %v3012_v36, %v2916_v17  ;;  %v2786_v60 = vadd.f32 %v2754_v13, %v2658_v37  ;;  %v2117_v57 = vmul.f32 %v7847_v40, %v7282_v23  ;;  %10955 = vst [vmem:[#allocation140_spill] sm:$0xff] %v7945_v7  ;;  %v7951_v40 = vpop.permute.xlu0 %2164 }
 0x674   :  { %10951 = vst [vmem:[#allocation136_spill] sm:$0xff] %v7927_v18  ;;  %10952 = vst [vmem:[#allocation137_spill] sm:$0xff] %v7930_v38  ;;  %v2787_v25 = vadd.f32 %v2755_v45, %v2659_v56  ;;  %v3010_v27 = vmul.f32 %v2961_v8, %v7646_v10  ;;  %v3011_v62 = vmul.f32 %v2961_v8, %v7671_v1 }
 0x675   :  { %10953 = vst [vmem:[#allocation138_spill] sm:$0xff] %v7934_v51  ;;  %10954 = vst [vmem:[#allocation139_spill] sm:$0xff] %v7936_v42  ;;  %v1839_v30 = vmul.f32 %v7258_v48, %v1647_v35  ;;  %v1580_v58 = vadd.f32 %v7585_v5, %v7275_v54  ;;  %v2914_v6 = vadd.f32 %v2882_v15, %v2786_v60  ;;  %v10957_v35 = vld [vmem:[#allocation69_spill] sm:$0xff] }
 0x676   :  { %v2085_v36 = vmul.f32 %v2053_v21, %v7282_v23  ;;  %v2083_v37 = vmul.f32 %v2051_v34, %v7258_v48  ;;  %v1984_v56 = vadd.f32 %v7587_v46, %v7280_v29  ;;  %10956 = vst [vmem:[#allocation141_spill] sm:$0xff] %v7951_v40  ;;  %v2915_v45 = vadd.f32 %v2883_v12, %v2787_v25  ;;  %v10960_v34 = vld [vmem:[#allocation70_spill] sm:$0xff]  ;;  %v10963_v12 = vld [vmem:[#allocation71_spill] sm:$0xff] }
 0x677   :  { %v2115_v49 = vmul.f32 %v1839_v30, %v7258_v48  ;;  %v1652_v26 = vmax.f32 %v1580_v58, 0.0  ;;  %v1572_v17 = vadd.f32 %v7275_v54, %v10957_v35  ;;  %v7958_v5 = vmul.f32 %v7930_v38, %v7867_v39  ;;  %v10962_v48 = vld [vmem:[#allocation37_spill] sm:$0xff]  ;;  %v7992_v35 = vpop.permute.xlu1 %2170 }
 0x678   :  { %v7962_v23 = vsel %vm82_vm1, %v2117_v57, %v7951_v40  ;;  %v2056_v21 = vmax.f32 %v1984_v56, 0.0  ;;  %v1976_v46 = vadd.f32 %v7280_v29, %v10960_v34  ;;  %v1583_v60 = vadd.f32 %v10963_v12, %v7275_v54 }
 0x679   :  { %10958 = vst [vmem:[#allocation69_spill] sm:$0xff] %v7958_v5  ;;  %10959 = vst [vmem:[#allocation142_spill] sm:$0xff] %v7962_v23  ;;  %v7968_v13 = vsel %vm82_vm1, %v2115_v49, %v7890_v2  ;;  %v1844_v8 = vmul.f32 %v10962_v48, %v1652_v26  ;;  %v1650_v15 = vmax.f32 %v1572_v17, 0.0  ;;  %v7973_v25 = vadd.f32 %v3010_v27, %v2914_v6  ;;  %v10968_v27 = vld [vmem:[#allocation11_spill] sm:$0xff] }
 0x67a   :  { %10961 = vst [vmem:[#allocation70_spill] sm:$0xff] %v7968_v13  ;;  %v7977_v57 = vsel %vm82_vm1, %v2085_v36, %v7951_v40  ;;  %v7981_v30 = vsel %vm82_vm1, %v2083_v37, %v7890_v2  ;;  %v2088_v58 = vmul.f32 %v2056_v21, %v10962_v48  ;;  %v7984_v56 = vadd.f32 %v3011_v62, %v2915_v45  ;;  %v10977_v40 = vld [vmem:[#allocation74_spill] sm:$0xff] }
 0x67b   :  { %10964 = vst [vmem:[#allocation37_spill] sm:$0xff] %v7973_v25  ;;  %10965 = vst [vmem:[#allocation71_spill] sm:$0xff] %v7977_v57  ;;  %v7988_v49 = vrot.slane %v7968_v13, %v7290_v41  ;;  %v2120_v26 = vmul.f32 %v1844_v8, %v10962_v48  ;;  %v1842_v6 = vmul.f32 %v10968_v27, %v1650_v15  ;;  %v2054_v62 = vmax.f32 %v1976_v46, 0.0  ;;  %v10974_v48 = vld [vmem:[#allocation72_spill] sm:$0xff]  ;;  %v8015_v15 = vpop.permute.xlu0 %1793 }
 0x67c   :  { %10966 = vst [vmem:[#allocation143_spill] sm:$0xff] %v7984_v56  ;;  %10969 = vst [vmem:[#allocation11_spill] sm:$0xff] %v7992_v35  ;;  %v7996_v36 = vrot.slane %v7968_v13, %v7292_v44  ;;  %v8000_v37 = vrot.slane %v7968_v13, %v7295_v3  ;;  %v1653_v45 = vmax.f32 %v1583_v60, 0.0  ;;  %v8008_v21 = vsel %vm82_vm1, %v2088_v58, %v7992_v35 }
 0x67d   :  { %10967 = vst [vmem:[#allocation144_spill] sm:$0xff] %v7988_v49  ;;  %v8004_v17 = vsel %vm82_vm1, %v2120_v26, %v7992_v35  ;;  %10973 = vst [vmem:[#allocation148_spill] sm:$0xff] %v8008_v21  ;;  %v2118_v34 = vmul.f32 %v1842_v6, %v10968_v27  ;;  %v8013_v8 = vadd.f32 %v10974_v48, %v7280_v29  ;;  %v10976_v48 = vld [vmem:[#allocation73_spill] sm:$0xff] }
 0x67e   :  { %10970 = vst [vmem:[#allocation145_spill] sm:$0xff] %v7996_v36  ;;  %10971 = vst [vmem:[#allocation146_spill] sm:$0xff] %v8000_v37  ;;  %v2333_v46 = vrot.slane %v8004_v17, %v7290_v41  ;;  %v2461_v12 = vrot.slane %v8004_v17, %v7292_v44  ;;  %v2589_v60 = vrot.slane %v8004_v17, %v7295_v3 }
 0x67f   :  { %10972 = vst [vmem:[#allocation147_spill] sm:$0xff] %v8004_v17  ;;  %10975 = vst [vmem:[#allocation72_spill] sm:$0xff] %v8015_v15  ;;  %v2717_v58 = vrot.slane %v8004_v17, %v7297_v55  ;;  %v2845_v26 = vrot.slane %v8004_v17, %v7314_v59  ;;  %v2246_v6 = vsel %vm82_vm1, %v2118_v34, %v7913_v0  ;;  %v8061_v38 = vpop.permute.xlu0 %2168 }
 0x680   :  { %v8031_v35 = vadd.f32 %v7275_v54, %v10976_v48  ;;  %v8035_v42 = vadd.f32 %v7280_v29, %v10977_v40  ;;  %v2376_v2 = vmul.f32 %v2333_v46, %v7335_v11  ;;  %v2377_v43 = vmul.f32 %v2333_v46, %v7450_v24  ;;  %v10980_v40 = vld [vmem:[#allocation63_spill] sm:$0xff]  ;;  %10982 = vst [vmem:[#allocation149_spill] sm:$0xff] %v8061_v38 }
 0x681   :  { %v2504_v23 = vmul.f32 %v2461_v12, %v7331_v31  ;;  %v2505_v9 = vmul.f32 %v2461_v12, %v7341_v32  ;;  %v8043_v13 = vrot.slane %v8004_v17, %v7318_v28  ;;  %v8047_v34 = vrot.slane %v8004_v17, %v7320_v4 }
 0x682   :  { %v8050_v48 = vmul.f32 %v2054_v62, %v10968_v27  ;;  %v1845_v37 = vmul.f32 %v10980_v40, %v1653_v45  ;;  %v2632_v46 = vmul.f32 %v2589_v60, %v7517_v52  ;;  %v2633_v36 = vmul.f32 %v2589_v60, %v7629_v22 }
 0x683   :  { %10978 = vst [vmem:[#allocation73_spill] sm:$0xff] %v8043_v13  ;;  %10979 = vst [vmem:[#allocation74_spill] sm:$0xff] %v8047_v34  ;;  %v2536_v5 = vadd.f32 %v2504_v23, %v2376_v2  ;;  %v2760_v12 = vmul.f32 %v2717_v58, %v7469_v19  ;;  %v2537_v49 = vadd.f32 %v2505_v9, %v2377_v43 }
 0x684   :  { %v8057_v56 = vmul.f32 %v2717_v58, %v7531_v33  ;;  %v2329_v25 = vrot.slane %v2246_v6, %v7290_v41  ;;  %v2457_v17 = vrot.slane %v2246_v6, %v7292_v44  ;;  %v2888_v62 = vmul.f32 %v2845_v26, %v7650_v16  ;;  %v8070_v58 = vpop.permute.xlu1 %1808 }
 0x685   :  { %v2664_v27 = vadd.f32 %v2632_v46, %v2536_v5  ;;  %v2585_v2 = vrot.slane %v2246_v6, %v7295_v3  ;;  %v2713_v23 = vrot.slane %v2246_v6, %v7297_v55  ;;  %10983 = vst [vmem:[#allocation150_spill] sm:$0xff] %v8070_v58  ;;  %v8073_v18 = vmul.f32 %v2845_v26, %v7794_v50 }
 0x686   :  { %10981 = vst [vmem:[#allocation63_spill] sm:$0xff] %v8057_v56  ;;  %v2374_v45 = vmul.f32 %v2329_v25, %v7335_v11  ;;  %v2375_v43 = vmul.f32 %v2329_v25, %v7450_v24  ;;  %v2502_v9 = vmul.f32 %v2457_v17, %v7331_v31  ;;  %v2503_v60 = vmul.f32 %v2457_v17, %v7341_v32 }
 0x687   :  { %v2792_v56 = vadd.f32 %v2760_v12, %v2664_v27  ;;  %10984 = vst [vmem:[#allocation151_spill] sm:$0xff] %v8073_v18  ;;  %v3016_v5 = vmul.f32 %v8043_v13, %v7646_v10  ;;  %v2630_v46 = vmul.f32 %v2585_v2, %v7517_v52  ;;  %v2631_v7 = vmul.f32 %v2585_v2, %v7629_v22 }
 0x688   :  { %v2534_v15 = vadd.f32 %v2502_v9, %v2374_v45  ;;  %v2535_v21 = vadd.f32 %v2503_v60, %v2375_v43  ;;  %v2841_v25 = vrot.slane %v2246_v6, %v7314_v59  ;;  %v3144_v17 = vmul.f32 %v8047_v34, %v7934_v51  ;;  %v8086_v45 = vpop.permute.xlu0 %1803 }
 0x689   :  { %v2920_v63 = vadd.f32 %v2888_v62, %v2792_v56  ;;  %v2969_v12 = vrot.slane %v2246_v6, %v7318_v28  ;;  %v3097_v26 = vrot.slane %v2246_v6, %v7320_v4  ;;  %v2758_v13 = vmul.f32 %v2713_v23, %v7469_v19 }
 0x68a   :  { %v2662_v27 = vadd.f32 %v2630_v46, %v2534_v15  ;;  %v2663_v18 = vadd.f32 %v2631_v7, %v2535_v21  ;;  %v2759_v58 = vmul.f32 %v2713_v23, %v7531_v33  ;;  %v8088_v43 = vadd.f32 %v2633_v36, %v2537_v49  ;;  %v8094_v7 = vpop.permute.xlu1 %2174 }
 0x68b   :  { %v2886_v2 = vmul.f32 %v2841_v25, %v7650_v16  ;;  %v2887_v56 = vmul.f32 %v2841_v25, %v7794_v50  ;;  %v3225_v62 = vrot.slane %v2246_v6, %v7323_v14  ;;  %v3048_v9 = vadd.f32 %v3016_v5, %v2920_v63  ;;  %10986 = vst [vmem:[#allocation153_spill] sm:$0xff] %v8094_v7  ;;  %v10988_v6 = vld [vmem:[#allocation83_spill] sm:$0xff]  ;;  %v10989_v5 = vld [vmem:[#allocation84_spill] sm:$0xff] }
 0x68c   :  { %10985 = vst [vmem:[#allocation152_spill] sm:$0xff] %v8088_v43  ;;  %v2790_v60 = vadd.f32 %v2758_v13, %v2662_v27  ;;  %v2791_v34 = vadd.f32 %v2759_v58, %v2663_v18  ;;  %v3014_v15 = vmul.f32 %v2969_v12, %v7646_v10  ;;  %v3015_v21 = vmul.f32 %v2969_v12, %v7671_v1 }
 0x68d   :  { %v3142_v23 = vmul.f32 %v3097_v26, %v7934_v51  ;;  %v3143_v49 = vmul.f32 %v3097_v26, %v7981_v30  ;;  %v2121_v36 = vmul.f32 %v1845_v37, %v10980_v40  ;;  %v2057_v25 = vmax.f32 %v8013_v8, 0.0  ;;  %v10992_v8 = vld [vmem:[#allocation36_spill] sm:$0xff] }
 0x68e   :  { %v2918_v46 = vadd.f32 %v2886_v2, %v2790_v60  ;;  %v2919_v43 = vadd.f32 %v2887_v56, %v2791_v34  ;;  %v1651_v63 = vmax.f32 %v8031_v35, 0.0  ;;  %v8103_v18 = vmul.f32 %v3225_v62, %v7867_v39  ;;  %v8116_v35 = vpop.permute.xlu0 %2172 }
 0x68f   :  { %v2055_v13 = vmax.f32 %v8035_v42, 0.0  ;;  %v1596_v58 = vadd.f32 %v10988_v6, %v7275_v54  ;;  %v2000_v12 = vadd.f32 %v10989_v5, %v7280_v29  ;;  %v8110_v26 = vadd.f32 %v3144_v17, %v3048_v9  ;;  %10993 = vst [vmem:[#allocation36_spill] sm:$0xff] %v8116_v35  ;;  %v10994_v42 = vld [vmem:[#allocation86_spill] sm:$0xff]  ;;  %v11000_v5 = vld [vmem:[#allocation87_spill] sm:$0xff] }
 0x690   :  { %10987 = vst [vmem:[#allocation154_spill] sm:$0xff] %v8103_v18  ;;  %v3046_v37 = vadd.f32 %v3014_v15, %v2918_v46  ;;  %v8113_v34 = vmul.f32 %v3225_v62, %v7977_v57  ;;  %v1843_v27 = vmul.f32 %v10992_v8, %v1651_v63  ;;  %v3047_v2 = vadd.f32 %v3015_v21, %v2919_v43  ;;  %v8131_v15 = vpop.permute.xlu1 %1818  ;;  %v10998_v46 = vld [vmem:[#allocation96_spill] sm:$0xff] }
 0x691   :  { %10990 = vst [vmem:[#allocation83_spill] sm:$0xff] %v8110_v26  ;;  %v1656_v56 = vmax.f32 %v1596_v58, 0.0  ;;  %v2060_v60 = vmax.f32 %v2000_v12, 0.0  ;;  %v1588_v18 = vadd.f32 %v7275_v54, %v10994_v42  ;;  %v8123_v6 = vsel %vm82_vm1, %v8050_v48, %v7913_v0  ;;  %10996 = vst [vmem:[#allocation155_spill] sm:$0xff] %v8131_v15  ;;  %v11002_v12 = vld [vmem:[#allocation89_spill] sm:$0xff] }
 0x692   :  { %10991 = vst [vmem:[#allocation84_spill] sm:$0xff] %v8113_v34  ;;  %v8127_v17 = vsel %vm82_vm1, %v2121_v36, %v8116_v35  ;;  %v2089_v62 = vmul.f32 %v2057_v25, %v10980_v40  ;;  %v2119_v9 = vmul.f32 %v1843_v27, %v10992_v8  ;;  %v8133_v43 = vadd.f32 %v3142_v23, %v3046_v37  ;;  %v11001_v40 = vld [vmem:[#allocation88_spill] sm:$0xff] }
 0x693   :  { %10995 = vst [vmem:[#allocation86_spill] sm:$0xff] %v8127_v17  ;;  %v2087_v21 = vmul.f32 %v2055_v13, %v10992_v8  ;;  %v1848_v63 = vmul.f32 %v10998_v46, %v1656_v56  ;;  %v1654_v58 = vmax.f32 %v1588_v18, 0.0  ;;  %v1992_v36 = vadd.f32 %v7280_v29, %v11000_v5  ;;  %v11005_v8 = vld [vmem:[#allocation64_spill] sm:$0xff] }
 0x694   :  { %10997 = vst [vmem:[#allocation156_spill] sm:$0xff] %v8133_v43  ;;  %v8139_v48 = vsel %vm82_vm1, %v2119_v9, %v8061_v38  ;;  %v1599_v25 = vadd.f32 %v11001_v40, %v7275_v54  ;;  %v2003_v27 = vadd.f32 %v11002_v12, %v7280_v29  ;;  %v8147_v23 = vadd.f32 %v3143_v49, %v3047_v2  ;;  %v8167_v49 = vld [vmem:[%s10518_s14] ss:$0 sm:$0xff]  ;;  %v11008_v2 = vld [vmem:[#allocation92_spill] sm:$0xff] }
 0x695   :  { %10999 = vst [vmem:[#allocation96_spill] sm:$0xff] %v8139_v48  ;;  %v8151_v13 = vrot.slane %v8139_v48, %v7290_v41  ;;  %v2124_v18 = vmul.f32 %v1848_v63, %v10998_v46  ;;  %v2092_v37 = vmul.f32 %v2060_v60, %v10998_v46  ;;  %v1846_v56 = vmul.f32 %v11005_v8, %v1654_v58  ;;  %v8174_v46 = vld [vmem:[%s10519_s16] ss:$0 sm:$0xff]  ;;  %v11009_v63 = vld [vmem:[#allocation93_spill] sm:$0xff]  ;;  %v8178_v58 = vpop.permute.xlu1 %2178 }
 0x696   :  { %11003 = vst [vmem:[#allocation87_spill] sm:$0xff] %v8147_v23  ;;  %v2058_v42 = vmax.f32 %v1992_v36, 0.0  ;;  %v1657_v9 = vmax.f32 %v1599_v25, 0.0  ;;  %v2061_v5 = vmax.f32 %v2003_v27, 0.0  ;;  %v8158_v54 = vsel %vm82_vm1, %v2089_v62, %v8116_v35  ;;  %11010 = vst [vmem:[#allocation92_spill] sm:$0xff] %v8178_v58  ;;  %v8208_v35 = vpop.permute.xlu0 %1813 }
 0x697   :  { %11004 = vst [vmem:[#allocation88_spill] sm:$0xff] %v8151_v13  ;;  %11006 = vst [vmem:[#allocation89_spill] sm:$0xff] %v8158_v54  ;;  %v8162_v29 = vsel %vm82_vm1, %v2087_v21, %v8061_v38  ;;  %v1591_v60 = vadd.f32 %v8167_v49, %v11008_v2  ;;  %v1995_v62 = vadd.f32 %v8174_v46, %v11009_v63 }
 0x698   :  { %11007 = vst [vmem:[#allocation64_spill] sm:$0xff] %v8162_v29  ;;  %v8182_v21 = vrot.slane %v8139_v48, %v7292_v44  ;;  %v2122_v36 = vmul.f32 %v1846_v56, %v11005_v8  ;;  %v2090_v40 = vmul.f32 %v2058_v42, %v11005_v8  ;;  %v8188_v25 = vsel %vm82_vm1, %v2124_v18, %v8178_v58 }
 0x699   :  { %v8192_v12 = vmul.f32 %v8151_v13, %v8123_v6  ;;  %v8196_v27 = vrot.slane %v8139_v48, %v7295_v3  ;;  %v1849_v2 = vmul.f32 %v7917_v61, %v1657_v9  ;;  %v8200_v63 = vmul.f32 %v2061_v5, %v7917_v61  ;;  %11015 = vst [vmem:[#allocation160_spill] sm:$0xff] %v8208_v35 }
 0x69a   :  { %11011 = vst [vmem:[#allocation93_spill] sm:$0xff] %v8182_v21  ;;  %v2250_v8 = vsel %vm82_vm1, %v2122_v36, %v8094_v7  ;;  %v1655_v56 = vmax.f32 %v1591_v60, 0.0  ;;  %v2059_v42 = vmax.f32 %v1995_v62, 0.0  ;;  %v8206_v18 = vsel %vm82_vm1, %v2092_v37, %v8178_v58 }
 0x69b   :  { %11012 = vst [vmem:[#allocation157_spill] sm:$0xff] %v8192_v12  ;;  %11013 = vst [vmem:[#allocation158_spill] sm:$0xff] %v8196_v27  ;;  %v2337_v26 = vrot.slane %v2250_v8, %v7290_v41  ;;  %v2465_v38 = vrot.slane %v2250_v8, %v7292_v44  ;;  %v2593_v9 = vrot.slane %v2250_v8, %v7295_v3 }
 0x69c   :  { %11014 = vst [vmem:[#allocation159_spill] sm:$0xff] %v8206_v18  ;;  %v2341_v5 = vrot.slane %v8188_v25, %v7290_v41  ;;  %v2721_v0 = vrot.slane %v2250_v8, %v7297_v55  ;;  %v2849_v60 = vrot.slane %v2250_v8, %v7314_v59  ;;  %v2977_v62 = vrot.slane %v2250_v8, %v7318_v28 }
 0x69d   :  { %v8220_v37 = vsel %vm82_vm1, %v2090_v40, %v8094_v7  ;;  %v2378_v36 = vmul.f32 %v2337_v26, %v7335_v11  ;;  %v2379_v58 = vmul.f32 %v2337_v26, %v7450_v24  ;;  %v2506_v17 = vmul.f32 %v2465_v38, %v7331_v31 }
 0x69e   :  { %11016 = vst [vmem:[#allocation161_spill] sm:$0xff] %v8220_v37  ;;  %v2507_v48 = vmul.f32 %v2465_v38, %v7341_v32  ;;  %v3105_v27 = vrot.slane %v2250_v8, %v7320_v4  ;;  %v3233_v21 = vrot.slane %v2250_v8, %v7323_v14  ;;  %v2125_v12 = vmul.f32 %v1849_v2, %v7917_v61  ;;  %v8237_v8 = vpop.permute.xlu0 %2176 }
 0x69f   :  { %v2469_v13 = vrot.slane %v8188_v25, %v7292_v44  ;;  %v2538_v34 = vadd.f32 %v2506_v17, %v2378_v36  ;;  %v2634_v7 = vmul.f32 %v2593_v9, %v7517_v52  ;;  %v2635_v23 = vmul.f32 %v2593_v9, %v7629_v22  ;;  %11017 = vst [vmem:[#allocation162_spill] sm:$0xff] %v8237_v8 }
 0x6a0   :  { %v2539_v40 = vadd.f32 %v2507_v48, %v2379_v58  ;;  %v2762_v26 = vmul.f32 %v2721_v0, %v7469_v19  ;;  %v2763_v43 = vmul.f32 %v2721_v0, %v7531_v33  ;;  %v2890_v38 = vmul.f32 %v2849_v60, %v7650_v16 }
 0x6a1   :  { %v2891_v18 = vmul.f32 %v2849_v60, %v7794_v50  ;;  %v2666_v61 = vadd.f32 %v2634_v7, %v2538_v34  ;;  %v3018_v35 = vmul.f32 %v2977_v62, %v7646_v10  ;;  %v3019_v17 = vmul.f32 %v2977_v62, %v7671_v1 }
 0x6a2   :  { %v2667_v2 = vadd.f32 %v2635_v23, %v2539_v40  ;;  %v3146_v48 = vmul.f32 %v3105_v27, %v7934_v51  ;;  %v1847_v58 = vmul.f32 %v7799_v47, %v1655_v56  ;;  %v2380_v9 = vmul.f32 %v2341_v5, %v7335_v11 }
 0x6a3   :  { %v2381_v0 = vmul.f32 %v2341_v5, %v7450_v24  ;;  %v2794_v36 = vadd.f32 %v2762_v26, %v2666_v61  ;;  %v2508_v60 = vmul.f32 %v2469_v13, %v7331_v31  ;;  %v2509_v37 = vmul.f32 %v2469_v13, %v7341_v32 }
 0x6a4   :  { %v2795_v15 = vadd.f32 %v2763_v43, %v2667_v2  ;;  %v2123_v7 = vmul.f32 %v1847_v58, %v7799_v47  ;;  %v2091_v34 = vmul.f32 %v2059_v42, %v7799_v47  ;;  %v2597_v23 = vrot.slane %v8188_v25, %v7295_v3  ;;  %v8262_v42 = vpop.permute.xlu0 %1823 }
 0x6a5   :  { %v2725_v56 = vrot.slane %v8188_v25, %v7297_v55  ;;  %v2922_v62 = vadd.f32 %v2890_v38, %v2794_v36  ;;  %v2540_v54 = vadd.f32 %v2508_v60, %v2380_v9  ;;  %v2541_v5 = vadd.f32 %v2509_v37, %v2381_v0 }
 0x6a6   :  { %v2923_v40 = vadd.f32 %v2891_v18, %v2795_v15  ;;  %v3147_v43 = vmul.f32 %v3105_v27, %v7981_v30  ;;  %v8255_v26 = vmul.f32 %v3233_v21, %v7867_v39  ;;  %v8259_v13 = vsel %vm82_vm1, %v2123_v7, %v8237_v8 }
 0x6a7   :  { %11019 = vst [vmem:[#allocation164_spill] sm:$0xff] %v8259_v13  ;;  %v2636_v47 = vmul.f32 %v2597_v23, %v7517_v52  ;;  %v3050_v61 = vadd.f32 %v3018_v35, %v2922_v62  ;;  %v8265_v38 = vmul.f32 %v3233_v21, %v7977_v57  ;;  %v2637_v15 = vmul.f32 %v2597_v23, %v7629_v22 }
 0x6a8   :  { %11018 = vst [vmem:[#allocation163_spill] sm:$0xff] %v8255_v26  ;;  %v3051_v2 = vadd.f32 %v3019_v17, %v2923_v40  ;;  %v3361_v27 = vrot.slane %v8259_v13, %v7290_v41  ;;  %v8272_v18 = vsel %vm82_vm1, %v2091_v34, %v8237_v8  ;;  %v2764_v58 = vmul.f32 %v2725_v56, %v7469_v19  ;;  %v11035_v8 = vld [vmem:[#allocation102_spill] sm:$0xff] }
 0x6a9   :  { %11020 = vst [vmem:[#allocation165_spill] sm:$0xff] %v8265_v38  ;;  %11021 = vst [vmem:[#allocation166_spill] sm:$0xff] %v8272_v18  ;;  %v2668_v37 = vadd.f32 %v2636_v47, %v2540_v54  ;;  %v8277_v9 = vrot.slane %v8259_v13, %v7292_v44  ;;  %v8281_v35 = vrot.slane %v8259_v13, %v7295_v3 }
 0x6aa   :  { %v2669_v21 = vadd.f32 %v2637_v15, %v2541_v5  ;;  %v2765_v17 = vmul.f32 %v2725_v56, %v7531_v33  ;;  %v8284_v0 = vadd.f32 %v3146_v48, %v3050_v61  ;;  %v2853_v60 = vrot.slane %v8188_v25, %v7314_v59  ;;  %v8298_v48 = vpop.permute.xlu0 %2180 }
 0x6ab   :  { %11022 = vst [vmem:[#allocation167_spill] sm:$0xff] %v8277_v9  ;;  %11023 = vst [vmem:[#allocation168_spill] sm:$0xff] %v8281_v35  ;;  %v2796_v36 = vadd.f32 %v2764_v58, %v2668_v37  ;;  %v2981_v54 = vrot.slane %v8188_v25, %v7318_v28  ;;  %v8290_v7 = vadd.f32 %v3147_v43, %v3051_v2  ;;  %v11040_v9 = vld [vmem:[#allocation105_spill] sm:$0xff] }
 0x6ac   :  { %11024 = vst [vmem:[#allocation169_spill] sm:$0xff] %v8284_v0  ;;  %v3109_v34 = vrot.slane %v8188_v25, %v7320_v4  ;;  %v3237_v23 = vrot.slane %v8188_v25, %v7323_v14  ;;  %v1612_v56 = vadd.f32 %v8167_v49, %v7739_v20  ;;  %11026 = vst [vmem:[#allocation171_spill] sm:$0xff] %v8298_v48 }
 0x6ad   :  { %11025 = vst [vmem:[#allocation170_spill] sm:$0xff] %v8290_v7  ;;  %v8301_v62 = vmul.f32 %v3361_v27, %v8123_v6  ;;  %v8304_v40 = vmul.f32 %v3361_v27, %v8162_v29  ;;  %v2892_v5 = vmul.f32 %v2853_v60, %v7650_v16  ;;  %v8309_v43 = vsel %vm82_vm1, %v2125_v12, %v8298_v48 }
 0x6ae   :  { %11029 = vst [vmem:[#allocation174_spill] sm:$0xff] %v8309_v43  ;;  %v2797_v47 = vadd.f32 %v2765_v17, %v2669_v21  ;;  %v2893_v25 = vmul.f32 %v2853_v60, %v7794_v50  ;;  %v3020_v61 = vmul.f32 %v2981_v54, %v7646_v10  ;;  %v3021_v20 = vmul.f32 %v2981_v54, %v7671_v1  ;;  %v11032_v17 = vld [vmem:[#allocation101_spill] sm:$0xff] }
 0x6af   :  { %11027 = vst [vmem:[#allocation172_spill] sm:$0xff] %v8301_v62  ;;  %11028 = vst [vmem:[#allocation173_spill] sm:$0xff] %v8304_v40  ;;  %v2924_v2 = vadd.f32 %v2892_v5, %v2796_v36  ;;  %v3148_v15 = vmul.f32 %v3109_v34, %v7934_v51  ;;  %v8316_v37 = vmul.f32 %v3109_v34, %v7981_v30  ;;  %v1660_v27 = vmax.f32 %v1612_v56, 0.0  ;;  %v11034_v5 = vld [vmem:[#allocation140_spill] sm:$0xff] }
 0x6b0   :  { %v3276_v58 = vmul.f32 %v3237_v23, %v7867_v39  ;;  %v8321_v12 = vrot.slane %v8309_v43, %v7290_v41  ;;  %v2016_v21 = vadd.f32 %v8174_v46, %v7741_v53  ;;  %v1604_v60 = vadd.f32 %v8167_v49, %v11032_v17 }
 0x6b1   :  { %11030 = vst [vmem:[#allocation175_spill] sm:$0xff] %v8316_v37  ;;  %v3052_v54 = vadd.f32 %v3020_v61, %v2924_v2  ;;  %v8328_v36 = vmul.f32 %v3237_v23, %v7977_v57  ;;  %v1852_v34 = vmul.f32 %v11034_v5, %v1660_v27  ;;  %v2008_v56 = vadd.f32 %v8174_v46, %v11035_v8  ;;  %v8333_v37 = vpop.permute.xlu1 %2182  ;;  %v11039_v8 = vld [vmem:[#allocation128_spill] sm:$0xff] }
 0x6b2   :  { %11031 = vst [vmem:[#allocation176_spill] sm:$0xff] %v8321_v12  ;;  %11036 = vst [vmem:[#allocation140_spill] sm:$0xff] %v8333_v37  ;;  %v2925_v13 = vadd.f32 %v2893_v25, %v2797_v47  ;;  %v3404_v40 = vmul.f32 %v8321_v12, %v8123_v6  ;;  %v8339_v53 = vrot.slane %v8309_v43, %v7292_v44  ;;  %v1658_v17 = vmax.f32 %v1604_v60, 0.0  ;;  %v11041_v25 = vld [vmem:[#allocation106_spill] sm:$0xff] }
 0x6b3   :  { %11033 = vst [vmem:[#allocation101_spill] sm:$0xff] %v8328_v36  ;;  %v3180_v61 = vadd.f32 %v3148_v15, %v3052_v54  ;;  %v2064_v2 = vmax.f32 %v2016_v21, 0.0  ;;  %v2062_v23 = vmax.f32 %v2008_v56, 0.0  ;;  %v11038_v36 = vld [vmem:[#allocation104_spill] sm:$0xff]  ;;  %v2128_v62 = vmul.f32 %v1852_v34, %v11034_v5  ;;  %v11042_v15 = vld [vmem:[#allocation107_spill] sm:$0xff] }
 0x6b4   :  { %11037 = vst [vmem:[#allocation102_spill] sm:$0xff] %v8339_v53  ;;  %v1615_v27 = vadd.f32 %v8167_v49, %v11038_v36  ;;  %v1850_v35 = vmul.f32 %v11039_v8, %v1658_v17  ;;  %v2019_v47 = vadd.f32 %v8174_v46, %v11040_v9  ;;  %v1607_v12 = vadd.f32 %v8167_v49, %v11041_v25 }
 0x6b5   :  { %v3308_v38 = vadd.f32 %v3276_v58, %v3180_v61  ;;  %v2094_v43 = vmul.f32 %v2062_v23, %v11039_v8  ;;  %v2011_v21 = vadd.f32 %v8174_v46, %v11042_v15  ;;  %v8355_v54 = vsel %vm82_vm1, %v8200_v63, %v8298_v48  ;;  %v11046_v58 = vld [vmem:[#allocation148_spill] sm:$0xff] }
 0x6b6   :  { %v1661_v60 = vmax.f32 %v1615_v27, 0.0  ;;  %11043 = vst [vmem:[#allocation104_spill] sm:$0xff] %v8355_v54  ;;  %v2126_v36 = vmul.f32 %v1850_v35, %v11039_v8  ;;  %v2065_v34 = vmax.f32 %v2019_v47, 0.0  ;;  %v1659_v56 = vmax.f32 %v1607_v12, 0.0  ;;  %v8367_v27 = vpop.permute.xlu1 %2186  ;;  %v11081_v54 = vld [vmem:[#allocation127_spill] sm:$0xff] }
 0x6b7   :  { %v8358_v9 = vadd.f32 %v3021_v20, %v2925_v13  ;;  %v8360_v17 = vadd.f32 %v3404_v40, %v3308_v38  ;;  %v8364_v61 = vmul.f32 %v8339_v53, %v11046_v58  ;;  %v2096_v23 = vmul.f32 %v2064_v2, %v11034_v5  ;;  %11048 = vst [vmem:[#allocation107_spill] sm:$0xff] %v8367_v27 }
 0x6b8   :  { %v1853_v25 = vmul.f32 %v8086_v45, %v1661_v60  ;;  %v2254_v63 = vsel %vm82_vm1, %v2126_v36, %v8333_v37  ;;  %v8374_v35 = vsel %vm82_vm1, %v2094_v43, %v8333_v37  ;;  %v8378_v13 = vsel %vm82_vm1, %v2128_v62, %v8367_v27  ;;  %v11050_v43 = vld [vmem:[#allocation72_spill] sm:$0xff] }
 0x6b9   :  { %11044 = vst [vmem:[#allocation128_spill] sm:$0xff] %v8358_v9  ;;  %11045 = vst [vmem:[#allocation105_spill] sm:$0xff] %v8360_v17  ;;  %v2345_v38 = vrot.slane %v2254_v63, %v7290_v41  ;;  %v2473_v40 = vrot.slane %v2254_v63, %v7292_v44  ;;  %v2601_v20 = vrot.slane %v2254_v63, %v7295_v3  ;;  %v2063_v12 = vmax.f32 %v2011_v21, 0.0 }
 0x6ba   :  { %11047 = vst [vmem:[#allocation106_spill] sm:$0xff] %v8364_v61  ;;  %11049 = vst [vmem:[#allocation177_spill] sm:$0xff] %v8374_v35  ;;  %v2729_v5 = vrot.slane %v2254_v63, %v7297_v55  ;;  %v2857_v2 = vrot.slane %v2254_v63, %v7314_v59  ;;  %v8386_v8 = vmul.f32 %v2065_v34, %v8086_v45 }
 0x6bb   :  { %v1851_v47 = vmul.f32 %v11050_v43, %v1659_v56  ;;  %v2382_v60 = vmul.f32 %v2345_v38, %v7335_v11  ;;  %v2383_v62 = vmul.f32 %v2345_v38, %v7450_v24  ;;  %v2510_v15 = vmul.f32 %v2473_v40, %v7331_v31 }
 0x6bc   :  { %v2511_v36 = vmul.f32 %v2473_v40, %v7341_v32  ;;  %v8394_v37 = vmul.f32 %v1853_v25, %v8086_v45  ;;  %v2985_v21 = vrot.slane %v2254_v63, %v7318_v28  ;;  %v3113_v48 = vrot.slane %v2254_v63, %v7320_v4 }
 0x6bd   :  { %v8400_v34 = vsel %vm82_vm1, %v2096_v23, %v8367_v27  ;;  %v2542_v56 = vadd.f32 %v2510_v15, %v2382_v60  ;;  %v2638_v17 = vmul.f32 %v2601_v20, %v7517_v52  ;;  %v2639_v38 = vmul.f32 %v2601_v20, %v7629_v22 }
 0x6be   :  { %11051 = vst [vmem:[#allocation72_spill] sm:$0xff] %v8400_v34  ;;  %v2543_v61 = vadd.f32 %v2511_v36, %v2383_v62  ;;  %v2766_v53 = vmul.f32 %v2729_v5, %v7469_v19  ;;  %v2767_v40 = vmul.f32 %v2729_v5, %v7531_v33  ;;  %v2894_v45 = vmul.f32 %v2857_v2, %v7650_v16 }
 0x6bf   :  { %v2895_v25 = vmul.f32 %v2857_v2, %v7794_v50  ;;  %v2670_v9 = vadd.f32 %v2638_v17, %v2542_v56  ;;  %v3241_v26 = vrot.slane %v2254_v63, %v7323_v14  ;;  %v2127_v23 = vmul.f32 %v1851_v47, %v11050_v43 }
 0x6c0   :  { %v2671_v7 = vadd.f32 %v2639_v38, %v2543_v61  ;;  %v3022_v60 = vmul.f32 %v2985_v21, %v7646_v10  ;;  %v2095_v62 = vmul.f32 %v2063_v12, %v11050_v43  ;;  %v2349_v20 = vrot.slane %v8378_v13, %v7290_v41  ;;  %v8418_v61 = vpop.permute.xlu0 %2184 }
 0x6c1   :  { %v2477_v5 = vrot.slane %v8378_v13, %v7292_v44  ;;  %v2798_v15 = vadd.f32 %v2766_v53, %v2670_v9  ;;  %v3023_v2 = vmul.f32 %v2985_v21, %v7671_v1  ;;  %v3150_v17 = vmul.f32 %v3113_v48, %v7934_v51  ;;  %11052 = vst [vmem:[#allocation178_spill] sm:$0xff] %v8418_v61 }
 0x6c2   :  { %v2799_v36 = vadd.f32 %v2767_v40, %v2671_v7  ;;  %v3151_v63 = vmul.f32 %v3113_v48, %v7981_v30  ;;  %v3278_v47 = vmul.f32 %v3241_v26, %v7867_v39  ;;  %v8424_v12 = vsel %vm82_vm1, %v2127_v23, %v8418_v61 }
 0x6c3   :  { %11053 = vst [vmem:[#allocation179_spill] sm:$0xff] %v8424_v12  ;;  %v2605_v43 = vrot.slane %v8378_v13, %v7295_v3  ;;  %v2926_v56 = vadd.f32 %v2894_v45, %v2798_v15  ;;  %v3369_v7 = vrot.slane %v8424_v12, %v7290_v41  ;;  %v2384_v9 = vmul.f32 %v2349_v20, %v7335_v11 }
 0x6c4   :  { %v2927_v53 = vadd.f32 %v2895_v25, %v2799_v36  ;;  %v3279_v21 = vmul.f32 %v3241_v26, %v7977_v57  ;;  %v8434_v48 = vsel %vm82_vm1, %v2095_v62, %v8418_v61  ;;  %v3497_v38 = vrot.slane %v8424_v12, %v7292_v44 }
 0x6c5   :  { %11054 = vst [vmem:[#allocation180_spill] sm:$0xff] %v8434_v48  ;;  %v2512_v40 = vmul.f32 %v2477_v5, %v7331_v31  ;;  %v3054_v23 = vadd.f32 %v3022_v60, %v2926_v56  ;;  %v3625_v45 = vrot.slane %v8424_v12, %v7295_v3  ;;  %v2385_v25 = vmul.f32 %v2349_v20, %v7450_v24 }
 0x6c6   :  { %v3055_v27 = vadd.f32 %v3023_v2, %v2927_v53  ;;  %v3406_v15 = vmul.f32 %v3369_v7, %v8123_v6  ;;  %v3407_v26 = vmul.f32 %v3369_v7, %v8162_v29  ;;  %v8446_v62 = vrot.slane %v8424_v12, %v7297_v55 }
 0x6c7   :  { %v8450_v36 = vrot.slane %v8424_v12, %v7314_v59  ;;  %v3182_v61 = vadd.f32 %v3150_v17, %v3054_v23  ;;  %v2513_v2 = vmul.f32 %v2477_v5, %v7341_v32  ;;  %v2544_v56 = vadd.f32 %v2512_v40, %v2384_v9 }
 0x6c8   :  { %11055 = vst [vmem:[#allocation181_spill] sm:$0xff] %v8446_v62  ;;  %v3183_v60 = vadd.f32 %v3151_v63, %v3055_v27  ;;  %v8454_v53 = vmul.f32 %v3497_v38, %v11046_v58  ;;  %v2640_v20 = vmul.f32 %v2605_v43, %v7517_v52  ;;  %v2733_v7 = vrot.slane %v8378_v13, %v7297_v55  ;;  %v11058_v27 = vld [vmem:[#allocation89_spill] sm:$0xff] }
 0x6c9   :  { %11056 = vst [vmem:[#allocation182_spill] sm:$0xff] %v8450_v36  ;;  %v2861_v62 = vrot.slane %v8378_v13, %v7314_v59  ;;  %v3310_v0 = vadd.f32 %v3278_v47, %v3182_v61  ;;  %v2545_v12 = vadd.f32 %v2513_v2, %v2385_v25  ;;  %v2641_v17 = vmul.f32 %v2605_v43, %v7629_v22  ;;  %v11062_v47 = vld [vmem:[#allocation161_spill] sm:$0xff] }
 0x6ca   :  { %11057 = vst [vmem:[#allocation183_spill] sm:$0xff] %v8454_v53  ;;  %v3311_v34 = vadd.f32 %v3279_v21, %v3183_v60  ;;  %v8463_v63 = vmul.f32 %v3497_v38, %v11058_v27  ;;  %v2672_v5 = vadd.f32 %v2640_v20, %v2544_v56  ;;  %v2768_v9 = vmul.f32 %v2733_v7, %v7469_v19  ;;  %v8479_v60 = vpop.permute.xlu0 %2188 }
 0x6cb   :  { %v2989_v40 = vrot.slane %v8378_v13, %v7318_v28  ;;  %v8468_v23 = vadd.f32 %v3406_v15, %v3310_v0  ;;  %v2673_v53 = vadd.f32 %v2641_v17, %v2545_v12  ;;  %v2769_v61 = vmul.f32 %v2733_v7, %v7531_v33  ;;  %11064 = vst [vmem:[#allocation188_spill] sm:$0xff] %v8479_v60  ;;  %v11069_v17 = vld [vmem:[#allocation116_spill] sm:$0xff] }
 0x6cc   :  { %11059 = vst [vmem:[#allocation184_spill] sm:$0xff] %v8463_v63  ;;  %v8470_v36 = vadd.f32 %v3407_v26, %v3311_v34  ;;  %v8474_v21 = vmul.f32 %v3625_v45, %v11062_v47  ;;  %v2800_v43 = vadd.f32 %v2768_v9, %v2672_v5  ;;  %v2896_v38 = vmul.f32 %v2861_v62, %v7650_v16  ;;  %v11070_v9 = vld [vmem:[#allocation117_spill] sm:$0xff] }
 0x6cd   :  { %11060 = vst [vmem:[#allocation185_spill] sm:$0xff] %v8468_v23  ;;  %v3117_v25 = vrot.slane %v8378_v13, %v7320_v4  ;;  %v2801_v2 = vadd.f32 %v2769_v61, %v2673_v53  ;;  %v2897_v0 = vmul.f32 %v2861_v62, %v7794_v50  ;;  %v3245_v34 = vrot.slane %v8378_v13, %v7323_v14  ;;  %v11076_v63 = vld [vmem:[#allocation125_spill] sm:$0xff] }
 0x6ce   :  { %11061 = vst [vmem:[#allocation186_spill] sm:$0xff] %v8470_v36  ;;  %11063 = vst [vmem:[#allocation187_spill] sm:$0xff] %v8474_v21  ;;  %v8487_v12 = vsel %vm82_vm1, %v8394_v37, %v8479_v60  ;;  %v8490_v15 = vmul.f32 %v3625_v45, %v8272_v18  ;;  %v2928_v26 = vadd.f32 %v2896_v38, %v2800_v43  ;;  %v11072_v38 = vld [vmem:[#allocation121_spill] sm:$0xff]  ;;  %v11077_v36 = vld [vmem:[#allocation126_spill] sm:$0xff] }
 0x6cf   :  { %11065 = vst [vmem:[#allocation189_spill] sm:$0xff] %v8487_v12  ;;  %v3024_v56 = vmul.f32 %v2989_v40, %v7646_v10  ;;  %v8495_v20 = vrot.slane %v8487_v12, %v7290_v41  ;;  %v2929_v53 = vadd.f32 %v2897_v0, %v2801_v2  ;;  %v3025_v62 = vmul.f32 %v2989_v40, %v7671_v1  ;;  %v11073_v2 = vld [vmem:[#allocation122_spill] sm:$0xff] }
 0x6d0   :  { %11066 = vst [vmem:[#allocation190_spill] sm:$0xff] %v8490_v15  ;;  %v3152_v13 = vmul.f32 %v3117_v25, %v7934_v51  ;;  %v8502_v37 = vsel %vm82_vm1, %v8386_v8, %v8479_v60  ;;  %v3280_v45 = vmul.f32 %v3245_v34, %v7867_v39  ;;  %v1628_v5 = vadd.f32 %v8167_v49, %v11069_v17  ;;  %v11075_v15 = vld [vmem:[#allocation124_spill] sm:$0xff] }
 0x6d1   :  { %11067 = vst [vmem:[#allocation191_spill] sm:$0xff] %v8495_v20  ;;  %11068 = vst [vmem:[#allocation192_spill] sm:$0xff] %v8502_v37  ;;  %v3056_v7 = vadd.f32 %v3024_v56, %v2928_v26  ;;  %v2032_v61 = vadd.f32 %v8174_v46, %v11070_v9  ;;  %v3408_v43 = vmul.f32 %v8495_v20, %v8123_v6  ;;  %v8519_v26 = vpop.permute.xlu1 %2190  ;;  %v11078_v37 = vld [vmem:[#allocation155_spill] sm:$0xff] }
 0x6d2   :  { %v8513_v40 = vrot.slane %v8487_v12, %v7292_v44  ;;  %v1620_v8 = vadd.f32 %v8167_v49, %v11072_v38  ;;  %v2024_v0 = vadd.f32 %v8174_v46, %v11073_v2  ;;  %11074 = vst [vmem:[#allocation117_spill] sm:$0xff] %v8519_v26  ;;  %v1664_v17 = vmax.f32 %v1628_v5, 0.0 }
 0x6d3   :  { %v3184_v56 = vadd.f32 %v3152_v13, %v3056_v7  ;;  %v2068_v60 = vmax.f32 %v2032_v61, 0.0  ;;  %v1631_v9 = vadd.f32 %v8167_v49, %v11075_v15  ;;  %v2035_v12 = vadd.f32 %v8174_v46, %v11076_v63  ;;  %v11079_v13 = vld [vmem:[#allocation150_spill] sm:$0xff] }
 0x6d4   :  { %11071 = vst [vmem:[#allocation116_spill] sm:$0xff] %v8513_v40  ;;  %v1662_v21 = vmax.f32 %v1620_v8, 0.0  ;;  %v2066_v20 = vmax.f32 %v2024_v0, 0.0  ;;  %v1623_v23 = vadd.f32 %v8167_v49, %v11077_v36  ;;  %v1856_v48 = vmul.f32 %v11078_v37, %v1664_v17 }
 0x6d5   :  { %v3312_v38 = vadd.f32 %v3280_v45, %v3184_v56  ;;  %v2100_v2 = vmul.f32 %v2068_v60, %v11078_v37  ;;  %v1665_v35 = vmax.f32 %v1631_v9, 0.0  ;;  %v2069_v61 = vmax.f32 %v2035_v12, 0.0 }
 0x6d6   :  { %v1854_v7 = vmul.f32 %v11079_v13, %v1662_v21  ;;  %v2098_v5 = vmul.f32 %v2066_v20, %v11079_v13  ;;  %v1663_v15 = vmax.f32 %v1623_v23, 0.0  ;;  %v2132_v0 = vmul.f32 %v1856_v48, %v11078_v37  ;;  %v11084_v20 = vld [vmem:[#allocation160_spill] sm:$0xff]  ;;  %v8545_v23 = vpop.permute.xlu1 %2194 }
 0x6d7   :  { %v8531_v8 = vadd.f32 %v3408_v43, %v3312_v38  ;;  %v1857_v63 = vmul.f32 %v8262_v42, %v1665_v35  ;;  %v2027_v49 = vadd.f32 %v8174_v46, %v11081_v54  ;;  %v8538_v36 = vmul.f32 %v3117_v25, %v7981_v30  ;;  %11085 = vst [vmem:[#allocation125_spill] sm:$0xff] %v8545_v23 }
 0x6d8   :  { %v8541_v60 = vmul.f32 %v3245_v34, %v7977_v57  ;;  %v2130_v21 = vmul.f32 %v1854_v7, %v11079_v13  ;;  %v1855_v12 = vmul.f32 %v11084_v20, %v1663_v15  ;;  %v8547_v45 = vadd.f32 %v3025_v62, %v2929_v53 }
 0x6d9   :  { %11080 = vst [vmem:[#allocation121_spill] sm:$0xff] %v8531_v8  ;;  %11082 = vst [vmem:[#allocation122_spill] sm:$0xff] %v8538_v36  ;;  %v8551_v35 = vmul.f32 %v8513_v40, %v11046_v58  ;;  %v8555_v46 = vsel %vm82_vm1, %v2098_v5, %v8519_v26  ;;  %v8558_v54 = vmul.f32 %v2069_v61, %v8262_v42  ;;  %v2067_v34 = vmax.f32 %v2027_v49, 0.0 }
 0x6da   :  { %11083 = vst [vmem:[#allocation124_spill] sm:$0xff] %v8541_v60  ;;  %11086 = vst [vmem:[#allocation126_spill] sm:$0xff] %v8547_v45  ;;  %v2258_v48 = vsel %vm82_vm1, %v2130_v21, %v8519_v26  ;;  %v8563_v25 = vmul.f32 %v1857_v63, %v8262_v42  ;;  %v8567_v53 = vsel %vm82_vm1, %v2132_v0, %v8545_v23 }
 0x6db   :  { %11087 = vst [vmem:[#allocation155_spill] sm:$0xff] %v8551_v35  ;;  %v2353_v62 = vrot.slane %v2258_v48, %v7290_v41  ;;  %v2481_v37 = vrot.slane %v2258_v48, %v7292_v44  ;;  %v2609_v43 = vrot.slane %v2258_v48, %v7295_v3  ;;  %v8574_v56 = vsel %vm82_vm1, %v2100_v2, %v8545_v23 }
 0x6dc   :  { %11088 = vst [vmem:[#allocation150_spill] sm:$0xff] %v8574_v56  ;;  %v2737_v17 = vrot.slane %v2258_v48, %v7297_v55  ;;  %v2865_v42 = vrot.slane %v2258_v48, %v7314_v59  ;;  %v2993_v9 = vrot.slane %v2258_v48, %v7318_v28  ;;  %v2131_v38 = vmul.f32 %v1855_v12, %v11084_v20 }
 0x6dd   :  { %v2386_v13 = vmul.f32 %v2353_v62, %v7335_v11  ;;  %v2387_v7 = vmul.f32 %v2353_v62, %v7450_v24  ;;  %v2514_v5 = vmul.f32 %v2481_v37, %v7331_v31  ;;  %v2515_v61 = vmul.f32 %v2481_v37, %v7341_v32 }
 0x6de   :  { %v3121_v15 = vrot.slane %v2258_v48, %v7320_v4  ;;  %v3249_v2 = vrot.slane %v2258_v48, %v7323_v14  ;;  %v2357_v0 = vrot.slane %v8567_v53, %v7290_v41  ;;  %v2485_v63 = vrot.slane %v8567_v53, %v7292_v44 }
 0x6df   :  { %v2546_v49 = vadd.f32 %v2514_v5, %v2386_v13  ;;  %v2547_v21 = vadd.f32 %v2515_v61, %v2387_v7  ;;  %v2642_v12 = vmul.f32 %v2609_v43, %v7517_v52  ;;  %v2643_v62 = vmul.f32 %v2609_v43, %v7629_v22  ;;  %v8598_v13 = vpop.permute.xlu0 %2192 }
 0x6e0   :  { %v2770_v26 = vmul.f32 %v2737_v17, %v7469_v19  ;;  %v2771_v37 = vmul.f32 %v2737_v17, %v7531_v33  ;;  %v2898_v35 = vmul.f32 %v2865_v42, %v7650_v16  ;;  %v2899_v48 = vmul.f32 %v2865_v42, %v7794_v50  ;;  %11089 = vst [vmem:[#allocation127_spill] sm:$0xff] %v8598_v13 }
 0x6e1   :  { %v2674_v8 = vadd.f32 %v2642_v12, %v2546_v49  ;;  %v2675_v40 = vadd.f32 %v2643_v62, %v2547_v21  ;;  %v3026_v60 = vmul.f32 %v2993_v9, %v7646_v10  ;;  %v3027_v36 = vmul.f32 %v2993_v9, %v7671_v1 }
 0x6e2   :  { %v3154_v7 = vmul.f32 %v3121_v15, %v7934_v51  ;;  %v3155_v43 = vmul.f32 %v3121_v15, %v7981_v30  ;;  %v2099_v5 = vmul.f32 %v2067_v34, %v11084_v20  ;;  %v8605_v17 = vsel %vm82_vm1, %v2131_v38, %v8598_v13 }
 0x6e3   :  { %11090 = vst [vmem:[#allocation160_spill] sm:$0xff] %v8605_v17  ;;  %v2802_v61 = vadd.f32 %v2770_v26, %v2674_v8  ;;  %v2803_v42 = vadd.f32 %v2771_v37, %v2675_v40  ;;  %v3282_v49 = vmul.f32 %v3249_v2, %v7867_v39  ;;  %v3377_v21 = vrot.slane %v8605_v17, %v7290_v41 }
 0x6e4   :  { %v3283_v9 = vmul.f32 %v3249_v2, %v7977_v57  ;;  %v3505_v12 = vrot.slane %v8605_v17, %v7292_v44  ;;  %v2388_v15 = vmul.f32 %v2357_v0, %v7335_v11  ;;  %v2389_v20 = vmul.f32 %v2357_v0, %v7450_v24 }
 0x6e5   :  { %v2930_v34 = vadd.f32 %v2898_v35, %v2802_v61  ;;  %v2931_v62 = vadd.f32 %v2899_v48, %v2803_v42  ;;  %v8617_v26 = vsel %vm82_vm1, %v2099_v5, %v8598_v13  ;;  %v8621_v40 = vrot.slane %v8605_v17, %v7295_v3 }
 0x6e6   :  { %11091 = vst [vmem:[#allocation193_spill] sm:$0xff] %v8617_v26  ;;  %v3410_v8 = vmul.f32 %v3377_v21, %v8123_v6  ;;  %v3411_v38 = vmul.f32 %v3377_v21, %v8162_v29  ;;  %v8627_v2 = vrot.slane %v8605_v17, %v7297_v55  ;;  %v8631_v35 = vrot.slane %v8605_v17, %v7314_v59 }
 0x6e7   :  { %11092 = vst [vmem:[#allocation194_spill] sm:$0xff] %v8621_v40  ;;  %v3058_v0 = vadd.f32 %v3026_v60, %v2930_v34  ;;  %v3059_v37 = vadd.f32 %v3027_v36, %v2931_v62  ;;  %v2516_v48 = vmul.f32 %v2485_v63, %v7331_v31  ;;  %v2517_v5 = vmul.f32 %v2485_v63, %v7341_v32 }
 0x6e8   :  { %11093 = vst [vmem:[#allocation195_spill] sm:$0xff] %v8627_v2  ;;  %11094 = vst [vmem:[#allocation196_spill] sm:$0xff] %v8631_v35  ;;  %v8636_v61 = vmul.f32 %v3505_v12, %v11046_v58  ;;  %v2613_v42 = vrot.slane %v8567_v53, %v7295_v3  ;;  %v2741_v21 = vrot.slane %v8567_v53, %v7297_v55 }
 0x6e9   :  { %v2869_v13 = vrot.slane %v8567_v53, %v7314_v59  ;;  %v3186_v17 = vadd.f32 %v3154_v7, %v3058_v0  ;;  %v3187_v35 = vadd.f32 %v3155_v43, %v3059_v37  ;;  %v2548_v60 = vadd.f32 %v2516_v48, %v2388_v15 }
 0x6ea   :  { %11095 = vst [vmem:[#allocation197_spill] sm:$0xff] %v8636_v61  ;;  %v2549_v36 = vadd.f32 %v2517_v5, %v2389_v20  ;;  %v8645_v34 = vmul.f32 %v3505_v12, %v11058_v27  ;;  %v2644_v63 = vmul.f32 %v2613_v42, %v7517_v52  ;;  %v2645_v62 = vmul.f32 %v2613_v42, %v7629_v22  ;;  %v8655_v20 = vpop.permute.xlu0 %2196 }
 0x6eb   :  { %v2997_v2 = vrot.slane %v8567_v53, %v7318_v28  ;;  %v3314_v61 = vadd.f32 %v3282_v49, %v3186_v17  ;;  %v3315_v45 = vadd.f32 %v3283_v9, %v3187_v35  ;;  %v2772_v40 = vmul.f32 %v2741_v21, %v7469_v19  ;;  %11097 = vst [vmem:[#allocation199_spill] sm:$0xff] %v8655_v20 }
 0x6ec   :  { %11096 = vst [vmem:[#allocation198_spill] sm:$0xff] %v8645_v34  ;;  %v2773_v23 = vmul.f32 %v2741_v21, %v7531_v33  ;;  %v2676_v7 = vadd.f32 %v2644_v63, %v2548_v60  ;;  %v2677_v43 = vadd.f32 %v2645_v62, %v2549_v36  ;;  %v2900_v15 = vmul.f32 %v2869_v13, %v7650_v16 }
 0x6ed   :  { %v2901_v12 = vmul.f32 %v2869_v13, %v7794_v50  ;;  %v8657_v0 = vadd.f32 %v3410_v8, %v3314_v61  ;;  %v8659_v37 = vadd.f32 %v3411_v38, %v3315_v45  ;;  %v3125_v17 = vrot.slane %v8567_v53, %v7320_v4 }
 0x6ee   :  { %v3253_v49 = vrot.slane %v8567_v53, %v7323_v14  ;;  %v2804_v9 = vadd.f32 %v2772_v40, %v2676_v7  ;;  %v2805_v35 = vadd.f32 %v2773_v23, %v2677_v43  ;;  %v3028_v48 = vmul.f32 %v2997_v2, %v7646_v10 }
 0x6ef   :  { %11098 = vst [vmem:[#allocation200_spill] sm:$0xff] %v8657_v0  ;;  %11099 = vst [vmem:[#allocation201_spill] sm:$0xff] %v8659_v37  ;;  %v2261_v13 = vsel %vm82_vm1, %v8563_v25, %v8655_v20  ;;  %v3029_v5 = vmul.f32 %v2997_v2, %v7671_v1  ;;  %v3156_v8 = vmul.f32 %v3125_v17, %v7934_v51  ;;  %v11105_v37 = vld [vmem:[#allocation72_spill] sm:$0xff] }
 0x6f0   :  { %v3157_v45 = vmul.f32 %v3125_v17, %v7981_v30  ;;  %v8675_v38 = vsel %vm82_vm1, %v8558_v54, %v8655_v20  ;;  %v2932_v53 = vadd.f32 %v2900_v15, %v2804_v9  ;;  %v2933_v40 = vadd.f32 %v2901_v12, %v2805_v35 }
 0x6f1   :  { %11100 = vst [vmem:[#allocation202_spill] sm:$0xff] %v8675_v38  ;;  %v3381_v23 = vrot.slane %v2261_v13, %v7290_v41  ;;  %v3509_v61 = vrot.slane %v2261_v13, %v7292_v44  ;;  %v3284_v42 = vmul.f32 %v3253_v49, %v7867_v39  ;;  %v3637_v25 = vrot.slane %v2261_v13, %v7295_v3 }
 0x6f2   :  { %v3765_v2 = vrot.slane %v2261_v13, %v7297_v55  ;;  %v3893_v21 = vrot.slane %v2261_v13, %v7314_v59  ;;  %v3060_v60 = vadd.f32 %v3028_v48, %v2932_v53  ;;  %v3061_v36 = vadd.f32 %v3029_v5, %v2933_v40  ;;  %v4505_v48 = vld [vmem:[%s10520_s17 + $0x18] sm:$0xff]  ;;  %v4506_v5 = vld [vmem:[%s10520_s17 + $0x20] sm:$0x1]  ;;  %v11101_v53 = vld [vmem:[#allocation159_spill] sm:$0xff] }
 0x6f3   :  { %v3285_v63 = vmul.f32 %v3253_v49, %v7977_v57  ;;  %v4021_v54 = vrot.slane %v2261_v13, %v7318_v28  ;;  %v3412_v62 = vmul.f32 %v3381_v23, %v8123_v6  ;;  %v3413_v7 = vmul.f32 %v3381_v23, %v8162_v29  ;;  %v4504_v49 = vld [vmem:[%s10520_s17 + $0x10] sm:$0xff] }
 0x6f4   :  { %v3540_v43 = vmul.f32 %v3509_v61, %v11046_v58  ;;  %v3541_v15 = vmul.f32 %v3509_v61, %v11058_v27  ;;  %v3188_v12 = vadd.f32 %v3156_v8, %v3060_v60  ;;  %v3189_v17 = vadd.f32 %v3157_v45, %v3061_v36  ;;  %v11102_v8 = vld [vmem:[#allocation104_spill] sm:$0xff]  ;;  %v11103_v23 = vld [vmem:[#allocation177_spill] sm:$0xff] }
 0x6f5   :  { %v3668_v9 = vmul.f32 %v3637_v25, %v11062_v47  ;;  %v3669_v35 = vmul.f32 %v3637_v25, %v8272_v18  ;;  %v3796_v40 = vmul.f32 %v3765_v2, %v11101_v53  ;;  %v3797_v45 = vmul.f32 %v3765_v2, %v11102_v8  ;;  %v11104_v60 = vld [vmem:[#allocation180_spill] sm:$0xff]  ;;  %v11107_v2 = vld [vmem:[#allocation29_spill] sm:$0xff] }
 0x6f6   :  { %v3924_v61 = vmul.f32 %v3893_v21, %v11103_v23  ;;  %v3925_v25 = vmul.f32 %v3893_v21, %v11104_v60  ;;  %v3316_v36 = vadd.f32 %v3284_v42, %v3188_v12  ;;  %v3317_v34 = vadd.f32 %v3285_v63, %v3189_v17  ;;  %v11106_v58 = vld [vmem:[#allocation192_spill] sm:$0xff] }
 0x6f7   :  { %v4052_v0 = vmul.f32 %v4021_v54, %v11105_v37  ;;  %v4149_v28 = vrot.slane %v2261_v13, %v7320_v4  ;;  %v4277_v59 = vrot.slane %v2261_v13, %v7323_v14  ;;  %v4524_v55 = vpack.c.bf16 %v4505_v48, %v4504_v49  ;;  %v11108_v63 = vld [vmem:[#allocation12_spill] sm:$0xff]  ;;  %v11109_v13 = vld [vmem:[#allocation22_spill] sm:$0xff] }
 0x6f8   :  { %v4525_v47 = vpack.c.bf16 %v4506_v5, %v4506_v5  ;;  %v3444_v18 = vadd.f32 %v3412_v62, %v3316_v36  ;;  %v3445_v3 = vadd.f32 %v3413_v7, %v3317_v34  ;;  %v4053_v53 = vmul.f32 %v4021_v54, %v11106_v58  ;;  %v11110_v54 = vld [vmem:[#allocation30_spill] sm:$0xff]  ;;  %v11112_v36 = vld [vmem:[#allocation31_spill] sm:$0xff] }
 0x6f9   :  { %v6351_v27 = vmov 32   ;;  %v2359_v23 = vmul.f32 %v11107_v2, %v7450_v24  ;;  %v4180_v42 = vmul.f32 %v4149_v28, %v8555_v46  ;;  %v4181_v21 = vmul.f32 %v4149_v28, %v8617_v26  ;;  %6125 = vmatprep.subr.bf16.mxu1 %v4524_v55  ;;  %v11111_v28 = vld [vmem:[#allocation23_spill] sm:$0xff] }
 0x6fa   :  { %6329 = vset.pattern.permute.xlu0 %v6351_v27  ;;  %v4586_v12 = vand.u32 %v11108_v63, %v4525_v47  ;;  %v2360_v17 = vmul.f32 %v11109_v13, %v7335_v11  ;;  %v3572_v49 = vadd.f32 %v3540_v43, %v3444_v18  ;;  %v3573_v62 = vadd.f32 %v3541_v15, %v3445_v3 }
 0x6fb   :  { %6126 = vmatpush3.bf16.msra.mxu1 %v4524_v55  ;;  %v2361_v34 = vmul.f32 %v11109_v13, %v7450_v24  ;;  %v2487_v7 = vmul.f32 %v11110_v54, %v7341_v32  ;;  %v4308_v48 = vmul.f32 %v4277_v59, %v8574_v56  ;;  %v2488_v5 = vmul.f32 %v11111_v28, %v7331_v31  ;;  %v11113_v24 = vld [vmem:[#allocation24_spill] sm:$0xff] }
 0x6fc   :  { %6127 = vmatprep.subr.bf16.mxu1 %v4586_v12  ;;  %v2489_v47 = vmul.f32 %v11111_v28, %v7341_v32  ;;  %v2615_v18 = vmul.f32 %v11112_v36, %v7629_v22  ;;  %v3700_v3 = vadd.f32 %v3668_v9, %v3572_v49  ;;  %v3701_v55 = vadd.f32 %v3669_v35, %v3573_v62  ;;  %v11114_v49 = vld [vmem:[#allocation32_spill] sm:$0xff]  ;;  %v11116_v28 = vld [vmem:[#allocation33_spill] sm:$0xff] }
 0x6fd   :  { %v2519_v43 = vadd.f32 %v2487_v7, %v2359_v23  ;;  %v2616_v15 = vmul.f32 %v11113_v24, %v7517_v52  ;;  %6330 = vset.pattern.permute.xlu1 %v6351_v27  ;;  %v4309_v63 = vmul.f32 %v4277_v59, %v8675_v38  ;;  %v2520_v13 = vadd.f32 %v2488_v5, %v2360_v17  ;;  %v11115_v59 = vld [vmem:[#allocation25_spill] sm:$0xff] }
 0x6fe   :  { %v2521_v54 = vadd.f32 %v2489_v47, %v2361_v34  ;;  %v2617_v31 = vmul.f32 %v11113_v24, %v7629_v22  ;;  %v3828_v56 = vadd.f32 %v3796_v40, %v3700_v3  ;;  %v3829_v2 = vadd.f32 %v3797_v45, %v3701_v55  ;;  %v11117_v47 = vld [vmem:[#allocation26_spill] sm:$0xff] }
 0x6ff   :  { %6128 = vmatpush3.bf16.msra.mxu1 %v4586_v12  ;;  %v8733_v32 = vmul.f32 %v11112_v36, %v7517_v52  ;;  %v2647_v9 = vadd.f32 %v2615_v18, %v2519_v43  ;;  %v2648_v35 = vadd.f32 %v2616_v15, %v2520_v13  ;;  %v2743_v27 = vmul.f32 %v11114_v49, %v7531_v33  ;;  %v11118_v43 = vld [vmem:[#allocation34_spill] sm:$0xff] }
 0x700   :  { %v2649_v23 = vadd.f32 %v2617_v31, %v2521_v54  ;;  %v2744_v17 = vmul.f32 %v11115_v59, %v7469_v19  ;;  %v3956_v62 = vadd.f32 %v3924_v61, %v3828_v56  ;;  %v3957_v34 = vadd.f32 %v3925_v25, %v3829_v2  ;;  %v11119_v31 = vld [vmem:[#allocation27_spill] sm:$0xff] }
 0x701   :  { %v8741_v40 = vmul.f32 %v11114_v49, %v7469_v19  ;;  %v2745_v45 = vmul.f32 %v11115_v59, %v7531_v33  ;;  %v2775_v12 = vadd.f32 %v2743_v27, %v2647_v9  ;;  %v2871_v5 = vmul.f32 %v11116_v28, %v7794_v50 }
 0x702   :  { %v2776_v7 = vadd.f32 %v2744_v17, %v2648_v35  ;;  %v2872_v36 = vmul.f32 %v11117_v47, %v7650_v16  ;;  %v4084_v18 = vadd.f32 %v4052_v0, %v3956_v62  ;;  %v4085_v3 = vadd.f32 %v4053_v53, %v3957_v34 }
 0x703   :  { %v2777_v55 = vadd.f32 %v2745_v45, %v2649_v23  ;;  %v2873_v56 = vmul.f32 %v11117_v47, %v7794_v50  ;;  %v8753_v61 = vmul.f32 %v11116_v28, %v7650_v16  ;;  %v2903_v25 = vadd.f32 %v2871_v5, %v2775_v12  ;;  %v11120_v23 = vld [vmem:[#allocation35_spill] sm:$0xff]  ;;  %v11124_v12 = vld [vmem:[#allocation21_spill] sm:$0xff]  ;;  %v11128_v47 = vld [vmem:[#allocation38_spill] sm:$0xff] }
 0x704   :  { %v2904_v2 = vadd.f32 %v2872_v36, %v2776_v7  ;;  %v2999_v24 = vmul.f32 %v11118_v43, %v7671_v1  ;;  %v4212_v15 = vadd.f32 %v4180_v42, %v4084_v18  ;;  %v4213_v13 = vadd.f32 %v4181_v21, %v4085_v3  ;;  %v11123_v21 = vld [vmem:[#allocation28_spill] sm:$0xff]  ;;  %v11125_v28 = vld [vmem:[#allocation125_spill] sm:$0xff] }
 0x705   :  { %v2905_v54 = vadd.f32 %v2873_v56, %v2777_v55  ;;  %v3000_v0 = vmul.f32 %v11119_v31, %v7646_v10  ;;  %v8761_v53 = vmul.f32 %v11118_v43, %v7646_v10  ;;  %v3001_v9 = vmul.f32 %v11119_v31, %v7671_v1  ;;  %v11129_v43 = vld [vmem:[#allocation41_spill] sm:$0xff] }
 0x706   :  { %v3031_v35 = vadd.f32 %v2999_v24, %v2903_v25  ;;  %v3127_v49 = vmul.f32 %v11120_v23, %v7981_v30  ;;  %v8767_v27 = vadd.f32 %v4308_v48, %v4212_v15  ;;  %v8769_v59 = vadd.f32 %v4309_v63, %v4213_v13  ;;  %v11130_v15 = vld [vmem:[#allocation42_spill] sm:$0xff] }
 0x707   :  { %v3032_v42 = vadd.f32 %v3000_v0, %v2904_v2  ;;  %v3128_v17 = vmul.f32 %v11123_v21, %v7934_v51  ;;  %v3033_v62 = vadd.f32 %v3001_v9, %v2905_v54  ;;  %v3129_v34 = vmul.f32 %v11123_v21, %v7981_v30  ;;  %v11132_v21 = vld [vmem:[#allocation43_spill] sm:$0xff] }
 0x708   :  { %11121 = vst [vmem:[#allocation104_spill] sm:$0xff] %v8767_v27  ;;  %11122 = vst [vmem:[#allocation180_spill] sm:$0xff] %v8769_v59  ;;  %v3159_v45 = vadd.f32 %v3127_v49, %v3031_v35  ;;  %v3197_v7 = vrot.slane %v11124_v12, %v7323_v14  ;;  %v8780_v5 = vsel %vm82_vm1, %v8767_v27, %v11125_v28  ;;  %v11134_v12 = vld [vmem:[#allocation15_spill] sm:$0xff] }
 0x709   :  { %11126 = vst [vmem:[#allocation72_spill] sm:$0xff] %v8780_v5  ;;  %v8785_v48 = vsel %vm82_vm1, %v8769_v59, %v8655_v20  ;;  %v3160_v63 = vadd.f32 %v3128_v17, %v3032_v42  ;;  %v3255_v36 = vmul.f32 %v11128_v47, %v7977_v57  ;;  %v3161_v3 = vadd.f32 %v3129_v34, %v3033_v62  ;;  %v11131_v42 = vld [vmem:[#allocation89_spill] sm:$0xff]  ;;  %v11133_v34 = vld [vmem:[#allocation148_spill] sm:$0xff]  ;;  %v11140_v20 = vld [vmem:[#allocation159_spill] sm:$0xff] }
 0x70a   :  { %11127 = vst [vmem:[#allocation192_spill] sm:$0xff] %v8785_v48  ;;  %v3256_v55 = vmul.f32 %v3197_v7, %v7867_v39  ;;  %v3257_v56 = vmul.f32 %v3197_v7, %v7977_v57  ;;  %v8795_v25 = vmul.f32 %v11120_v23, %v7934_v51  ;;  %v3325_v24 = vrot.slane %v11129_v43, %v7290_v41  ;;  %v11135_v7 = vld [vmem:[#allocation40_spill] sm:$0xff] }
 0x70b   :  { %v3287_v2 = vadd.f32 %v3255_v36, %v3159_v45  ;;  %v3383_v13 = vmul.f32 %v11130_v15, %v8162_v29  ;;  %v8803_v54 = vmul.f32 %v11128_v47, %v7867_v39  ;;  %v3453_v9 = vrot.slane %v11129_v43, %v7292_v44  ;;  %v11138_v5 = vld [vmem:[#allocation16_spill] sm:$0xff] }
 0x70c   :  { %v3288_v31 = vadd.f32 %v3256_v55, %v3160_v63  ;;  %v3289_v0 = vadd.f32 %v3257_v56, %v3161_v3  ;;  %v3384_v35 = vmul.f32 %v3325_v24, %v8123_v6  ;;  %v3385_v23 = vmul.f32 %v3325_v24, %v8162_v29  ;;  %v11143_v41 = vld [vmem:[#allocation20_spill] sm:$0xff] }
 0x70d   :  { %v3415_v49 = vadd.f32 %v3383_v13, %v3287_v2  ;;  %v3511_v17 = vmul.f32 %v11132_v21, %v11131_v42  ;;  %v8813_v62 = vmul.f32 %v11130_v15, %v8123_v6  ;;  %v3512_v45 = vmul.f32 %v3453_v9, %v11133_v34  ;;  %v11136_v2 = vld [vmem:[#allocation166_spill] sm:$0xff]  ;;  %v11137_v13 = vld [vmem:[#allocation161_spill] sm:$0xff] }
 0x70e   :  { %v3577_v63 = vrot.slane %v11135_v7, %v11134_v12  ;;  %v3581_v47 = vrot.slane %v11129_v43, %v11134_v12  ;;  %v3416_v36 = vadd.f32 %v3384_v35, %v3288_v31  ;;  %v3417_v3 = vadd.f32 %v3385_v23, %v3289_v0  ;;  %v11139_v35 = vld [vmem:[#allocation19_spill] sm:$0xff] }
 0x70f   :  { %v3513_v55 = vmul.f32 %v3453_v9, %v11131_v42  ;;  %v3543_v56 = vadd.f32 %v3511_v17, %v3415_v49  ;;  %v3705_v48 = vrot.slane %v11135_v7, %v11138_v5  ;;  %v8828_v27 = vmul.f32 %v11132_v21, %v11133_v34 }
 0x710   :  { %v3639_v24 = vmul.f32 %v3577_v63, %v11136_v2  ;;  %v3640_v18 = vmul.f32 %v3581_v47, %v11137_v13  ;;  %v3641_v15 = vmul.f32 %v3581_v47, %v11136_v2  ;;  %v3544_v28 = vadd.f32 %v3512_v45, %v3416_v36 }
 0x711   :  { %v3545_v59 = vadd.f32 %v3513_v55, %v3417_v3  ;;  %v3709_v31 = vrot.slane %v11129_v43, %v11138_v5  ;;  %v3767_v9 = vmul.f32 %v3705_v48, %v11102_v8  ;;  %v3833_v23 = vrot.slane %v11135_v7, %v11139_v35  ;;  %v11142_v55 = vld [vmem:[#allocation177_spill] sm:$0xff] }
 0x712   :  { %v3671_v0 = vadd.f32 %v3639_v24, %v3543_v56  ;;  %v3837_v49 = vrot.slane %v11129_v43, %v11139_v35  ;;  %v3672_v17 = vadd.f32 %v3640_v18, %v3544_v28  ;;  %v8840_v45 = vmul.f32 %v3577_v63, %v11137_v13 }
 0x713   :  { %v3673_v47 = vadd.f32 %v3641_v15, %v3545_v59  ;;  %v3768_v19 = vmul.f32 %v3709_v31, %v11140_v20  ;;  %v3769_v21 = vmul.f32 %v3709_v31, %v11102_v8  ;;  %v3895_v3 = vmul.f32 %v3833_v23, %v11104_v60 }
 0x714   :  { %11141 = vst [vmem:[#allocation12_spill] sm:$0xff] %v8840_v45  ;;  %v3799_v36 = vadd.f32 %v3767_v9, %v3671_v0  ;;  %v3896_v56 = vmul.f32 %v3837_v49, %v11142_v55  ;;  %v3897_v44 = vmul.f32 %v3837_v49, %v11104_v60  ;;  %v3961_v28 = vrot.slane %v11135_v7, %v11143_v41 }
 0x715   :  { %v3800_v24 = vadd.f32 %v3768_v19, %v3672_v17  ;;  %v3801_v12 = vadd.f32 %v3769_v21, %v3673_v47  ;;  %v8848_v59 = vmul.f32 %v3705_v48, %v11140_v20  ;;  %v3965_v63 = vrot.slane %v11129_v43, %v11143_v41 }
 0x716   :  { %v3927_v18 = vadd.f32 %v3895_v3, %v3799_v36  ;;  %v4089_v15 = vrot.slane %v11135_v7, %v7320_v4  ;;  %v4023_v19 = vmul.f32 %v3961_v28, %v11106_v58  ;;  %v4093_v9 = vrot.slane %v11129_v43, %v7320_v4 }
 0x717   :  { %11144 = vst [vmem:[#allocation22_spill] sm:$0xff] %v8848_v59  ;;  %v3928_v31 = vadd.f32 %v3896_v56, %v3800_v24  ;;  %v3929_v0 = vadd.f32 %v3897_v44, %v3801_v12  ;;  %v8858_v49 = vmul.f32 %v3833_v23, %v11142_v55  ;;  %v4024_v48 = vmul.f32 %v3965_v63, %v11105_v37 }
 0x718   :  { %v4025_v17 = vmul.f32 %v3965_v63, %v11106_v58  ;;  %v4151_v47 = vmul.f32 %v4089_v15, %v8617_v26  ;;  %v4055_v21 = vadd.f32 %v4023_v19, %v3927_v18  ;;  %v4152_v36 = vmul.f32 %v4093_v9, %v8555_v46  ;;  %v11146_v19 = vld [vmem:[#allocation29_spill] sm:$0xff] }
 0x719   :  { %11145 = vst [vmem:[#allocation30_spill] sm:$0xff] %v8858_v49  ;;  %v4153_v3 = vmul.f32 %v4093_v9, %v8617_v26  ;;  %v4217_v44 = vrot.slane %v11135_v7, %v7323_v14  ;;  %v8868_v12 = vmul.f32 %v3961_v28, %v11105_v37  ;;  %v4056_v56 = vadd.f32 %v4024_v48, %v3928_v31  ;;  %v11147_v7 = vld [vmem:[#allocation150_spill] sm:$0xff] }
 0x71a   :  { %v4057_v23 = vadd.f32 %v4025_v17, %v3929_v0  ;;  %v4221_v24 = vrot.slane %v11129_v43, %v7323_v14  ;;  %v8873_v63 = vmul.f32 %v4089_v15, %v8555_v46  ;;  %v4183_v49 = vadd.f32 %v4151_v47, %v4055_v21  ;;  %v11148_v0 = vld [vmem:[#allocation39_spill] sm:$0xff]  ;;  %v11149_v43 = vld [vmem:[#allocation57_spill] sm:$0xff] }
 0x71b   :  { %v4279_v18 = vmul.f32 %v4217_v44, %v8675_v38  ;;  %v2358_v9 = vmul.f32 %v11146_v19, %v7335_v11  ;;  %v4184_v59 = vadd.f32 %v4152_v36, %v4056_v56  ;;  %v2618_v15 = vmul.f32 %v11149_v43, %v7517_v52  ;;  %v11151_v36 = vld [vmem:[#allocation5_spill] sm:$0xff]  ;;  %v11154_v19 = vld [vmem:[#allocation6_spill] sm:$0xff] }
 0x71c   :  { %v4185_v45 = vadd.f32 %v4153_v3, %v4057_v23  ;;  %v4280_v26 = vmul.f32 %v4221_v24, %v11147_v7  ;;  %v4281_v28 = vmul.f32 %v4221_v24, %v8675_v38  ;;  %v8884_v17 = vmul.f32 %v4217_v44, %v11147_v7  ;;  %v11153_v24 = vld [vmem:[#allocation55_spill] sm:$0xff] }
 0x71d   :  { %v4311_v31 = vadd.f32 %v4279_v18, %v4183_v49  ;;  %v2518_v48 = vadd.f32 %v11148_v0, %v2358_v9  ;;  %v2619_v11 = vmul.f32 %v11149_v43, %v7629_v22  ;;  %v11152_v49 = vld [vmem:[#allocation65_spill] sm:$0xff]  ;;  %v2747_v18 = vmul.f32 %v11153_v24, %v7531_v33  ;;  %v11161_v24 = vld [vmem:[#allocation58_spill] sm:$0xff] }
 0x71e   :  { %v4312_v47 = vadd.f32 %v4280_v26, %v4184_v59  ;;  %v8886_v21 = vadd.f32 %v4281_v28, %v4185_v45  ;;  %v2650_v23 = vadd.f32 %v2618_v15, %v11152_v49  ;;  %v11156_v26 = vld [vmem:[#allocation7_spill] sm:$0xff]  ;;  %v11159_v15 = vmov 0.0  }
 0x71f   :  { %v4343_v3 = vadd.f32 %v4311_v31, %v11151_v36  ;;  %v2646_v56 = vadd.f32 %v8733_v32, %v2518_v48  ;;  %v11157_v59 = vld [vmem:[#allocation67_spill] sm:$0xff]  ;;  %v11158_v48 = vld [vmem:[#allocation60_spill] sm:$0xff] }
 0x720   :  { %11150 = vst [vmem:[#allocation23_spill] sm:$0xff] %v8886_v21  ;;  %v4344_v9 = vadd.f32 %v4312_v47, %v11154_v19  ;;  %v8898_v44 = vsel %vm82_vm1, %v4312_v47, %v11154_v19  ;;  %v8903_v45 = vsel %vm82_vm1, %v8886_v21, %v11156_v26  ;;  %v2651_v28 = vadd.f32 %v2619_v11, %v11157_v59 }
 0x721   :  { %11155 = vst [vmem:[#allocation31_spill] sm:$0xff] %v8898_v44  ;;  %vm4375_vm6 = vcmp.gt.f32.partialorder %v4343_v3, 0.0  ;;  %v2774_v0 = vadd.f32 %v8741_v40, %v2646_v56  ;;  %v2778_v43 = vadd.f32 %v11158_v48, %v2650_v23  ;;  %v2874_v19 = vmul.f32 %v11161_v24, %v7650_v16 }
 0x722   :  { %vm4376_vm7 = vcmp.gt.f32.partialorder %v4344_v9, 0.0  ;;  %v8911_v49 = vsel %vm4375_vm6, 1.0, %v11159_v15  ;;  %v2779_v47 = vadd.f32 %v2747_v18, %v2651_v28  ;;  %v8919_v3 = vsel %vm82_vm1, %v4311_v31, %v11151_v36  ;;  %v11163_v18 = vld [vmem:[#allocation59_spill] sm:$0xff]  ;;  %v11164_v31 = vld [vmem:[#allocation61_spill] sm:$0xff] }
 0x723   :  { %11160 = vst [vmem:[#allocation24_spill] sm:$0xff] %v8911_v49  ;;  %v5635_v52 = vsel %vm4376_vm7, 1.0, %v11159_v15  ;;  %v2902_v11 = vadd.f32 %v8753_v61, %v2774_v0  ;;  %v2875_v40 = vmul.f32 %v11161_v24, %v7794_v50  ;;  %v8925_v56 = vsel %vm4941_vm5, %v8911_v49, 0.0 }
 0x724   :  { %11162 = vst [vmem:[#allocation32_spill] sm:$0xff] %v8925_v56  ;;  %4761 = vperm.xlu0 %6329, %v5635_v52   ;;  %v2906_v23 = vadd.f32 %v2874_v19, %v2778_v43  ;;  %v3002_v9 = vmul.f32 %v11163_v18, %v7646_v10  ;;  %v3003_v59 = vmul.f32 %v11163_v18, %v7671_v1  ;;  %v8937_v48 = vsel %vm4941_vm5, %v5635_v52, 0.0  ;;  %v11166_v43 = vld [vmem:[#allocation62_spill] sm:$0xff]  ;;  %v11168_v52 = vld [vmem:[#allocation76_spill] sm:$0xff] }
 0x725   :  { %v3030_v61 = vadd.f32 %v8761_v53, %v2902_v11  ;;  %v2907_v28 = vadd.f32 %v2875_v40, %v2779_v47  ;;  %v3130_v36 = vmul.f32 %v11164_v31, %v7934_v51  ;;  %v3131_v0 = vmul.f32 %v11164_v31, %v7981_v30  ;;  %11165 = vst [vmem:[#allocation25_spill] sm:$0xff] %v8937_v48  ;;  %v11167_v47 = vld [vmem:[#allocation75_spill] sm:$0xff] }
 0x726   :  { %v3034_v24 = vadd.f32 %v3002_v9, %v2906_v23  ;;  %v3258_v19 = vmul.f32 %v11166_v43, %v7867_v39  ;;  %v3259_v32 = vmul.f32 %v11166_v43, %v7977_v57  ;;  %v3386_v11 = vmul.f32 %v11167_v47, %v8123_v6  ;;  %v11169_v9 = vld [vmem:[#allocation79_spill] sm:$0xff] }
 0x727   :  { %v3158_v18 = vadd.f32 %v8795_v25, %v3030_v61  ;;  %v3035_v53 = vadd.f32 %v3003_v59, %v2907_v28  ;;  %v3387_v40 = vmul.f32 %v11167_v47, %v8162_v29  ;;  %v3514_v51 = vmul.f32 %v11168_v52, %v11133_v34  ;;  %v11170_v61 = vld [vmem:[#allocation68_spill] sm:$0xff] }
 0x728   :  { %v3162_v31 = vadd.f32 %v3130_v36, %v3034_v24  ;;  %v3515_v23 = vmul.f32 %v11168_v52, %v11131_v42  ;;  %v3642_v10 = vmul.f32 %v11169_v9, %v11137_v13  ;;  %v3643_v59 = vmul.f32 %v11169_v9, %v11136_v2 }
 0x729   :  { %v3286_v43 = vadd.f32 %v8803_v54, %v3158_v18  ;;  %v3163_v25 = vadd.f32 %v3131_v0, %v3035_v53  ;;  %v3713_v28 = vrot.slane %v11170_v61, %v11138_v5  ;;  %v3841_v36 = vrot.slane %v11170_v61, %v11139_v35 }
 0x72a   :  { %v3290_v47 = vadd.f32 %v3258_v19, %v3162_v31  ;;  %v3969_v24 = vrot.slane %v11170_v61, %v11143_v41  ;;  %v4097_v52 = vrot.slane %v11170_v61, %v7320_v4  ;;  %v4225_v18 = vrot.slane %v11170_v61, %v7323_v14  ;;  %v11172_v61 = vld [vmem:[#allocation12_spill] sm:$0xff] }
 0x72b   :  { %v3414_v16 = vadd.f32 %v8813_v62, %v3286_v43  ;;  %v3291_v54 = vadd.f32 %v3259_v32, %v3163_v25  ;;  %v3770_v0 = vmul.f32 %v3713_v28, %v11140_v20  ;;  %v3771_v19 = vmul.f32 %v3713_v28, %v11102_v8  ;;  %v11171_v25 = vld [vmem:[#allocation193_spill] sm:$0xff] }
 0x72c   :  { %v3418_v53 = vadd.f32 %v3386_v11, %v3290_v47  ;;  %v3898_v31 = vmul.f32 %v3841_v36, %v11142_v55  ;;  %v3899_v9 = vmul.f32 %v3841_v36, %v11104_v60  ;;  %v4026_v26 = vmul.f32 %v3969_v24, %v11105_v37  ;;  %v11173_v36 = vld [vmem:[#allocation48_spill] sm:$0xff] }
 0x72d   :  { %v3542_v48 = vadd.f32 %v8828_v27, %v3414_v16  ;;  %v3419_v21 = vadd.f32 %v3387_v40, %v3291_v54  ;;  %v4027_v62 = vmul.f32 %v3969_v24, %v11106_v58  ;;  %v4154_v43 = vmul.f32 %v4097_v52, %v8555_v46  ;;  %v11174_v40 = vld [vmem:[#allocation49_spill] sm:$0xff] }
 0x72e   :  { %v3546_v32 = vadd.f32 %v3514_v51, %v3418_v53  ;;  %v4155_v56 = vmul.f32 %v4097_v52, %v11171_v25  ;;  %v4282_v11 = vmul.f32 %v4225_v18, %v11147_v7  ;;  %v4283_v49 = vmul.f32 %v4225_v18, %v8675_v38  ;;  %v11175_v51 = vld [vmem:[#allocation50_spill] sm:$0xff]  ;;  %v11176_v53 = vld [vmem:[#allocation51_spill] sm:$0xff] }
 0x72f   :  { %v3670_v28 = vadd.f32 %v11172_v61, %v3542_v48  ;;  %v3547_v47 = vadd.f32 %v3515_v23, %v3419_v21  ;;  %v2621_v16 = vmul.f32 %v11173_v36, %v7629_v22  ;;  %v2749_v54 = vmul.f32 %v11174_v40, %v7531_v33  ;;  %v11177_v25 = vld [vmem:[#allocation22_spill] sm:$0xff]  ;;  %v11178_v48 = vld [vmem:[#allocation56_spill] sm:$0xff] }
 0x730   :  { %v3674_v27 = vadd.f32 %v3642_v10, %v3546_v32  ;;  %v2877_v24 = vmul.f32 %v11175_v51, %v7794_v50  ;;  %v3005_v52 = vmul.f32 %v11176_v53, %v7671_v1  ;;  %v11179_v23 = vld [vmem:[#allocation52_spill] sm:$0xff]  ;;  %v11181_v32 = vld [vmem:[#allocation13_spill] sm:$0xff]  ;;  %v11182_v33 = vld [vmem:[#allocation66_spill] sm:$0xff] }
 0x731   :  { %v3798_v7 = vadd.f32 %v11177_v25, %v3670_v28  ;;  %v3675_v44 = vadd.f32 %v3643_v59, %v3547_v47  ;;  %v2653_v21 = vadd.f32 %v2621_v16, %v11178_v48  ;;  %v3133_v18 = vmul.f32 %v11179_v23, %v7981_v30  ;;  %v11180_v22 = vld [vmem:[#allocation44_spill] sm:$0xff]  ;;  %v11183_v40 = vld [vmem:[#allocation14_spill] sm:$0xff]  ;;  %v11185_v28 = vld [vmem:[#allocation15_spill] sm:$0xff] }
 0x732   :  { %v3802_v61 = vadd.f32 %v3770_v0, %v3674_v27  ;;  %v3205_v10 = vrot.slane %v11180_v22, %v7323_v14  ;;  %v3333_v38 = vrot.slane %v11182_v33, %v11181_v32  ;;  %v3461_v50 = vrot.slane %v11182_v33, %v11183_v40  ;;  %v11184_v51 = vld [vmem:[#allocation30_spill] sm:$0xff] }
 0x733   :  { %v3926_v1 = vadd.f32 %v11184_v51, %v3798_v7  ;;  %v3803_v25 = vadd.f32 %v3771_v19, %v3675_v44  ;;  %v2781_v59 = vadd.f32 %v2749_v54, %v2653_v21  ;;  %v3589_v47 = vrot.slane %v11182_v33, %v11185_v28  ;;  %v11214_v28 = vld [vmem:[#allocation95_spill] sm:$0xff] }
 0x734   :  { %v3930_v16 = vadd.f32 %v3898_v31, %v3802_v61  ;;  %v9002_v0 = vmul.f32 %v3205_v10, %v7867_v39  ;;  %v3261_v27 = vmul.f32 %v3205_v10, %v7977_v57  ;;  %v9006_v48 = vmul.f32 %v3333_v38, %v8123_v6 }
 0x735   :  { %v4054_v22 = vadd.f32 %v8868_v12, %v3926_v1  ;;  %v3931_v40 = vadd.f32 %v3899_v9, %v3803_v25  ;;  %v2909_v32 = vadd.f32 %v2877_v24, %v2781_v59  ;;  %v3389_v7 = vmul.f32 %v3333_v38, %v8162_v29 }
 0x736   :  { %v4058_v44 = vadd.f32 %v4026_v26, %v3930_v16  ;;  %v9011_v19 = vmul.f32 %v3461_v50, %v11133_v34  ;;  %v3517_v31 = vmul.f32 %v3461_v50, %v11131_v42  ;;  %v9015_v54 = vmul.f32 %v3589_v47, %v11137_v13 }
 0x737   :  { %v4182_v51 = vadd.f32 %v8873_v63, %v4054_v22  ;;  %v4059_v21 = vadd.f32 %v4027_v62, %v3931_v40  ;;  %v3037_v61 = vadd.f32 %v3005_v52, %v2909_v32  ;;  %v3645_v10 = vmul.f32 %v3589_v47, %v11136_v2  ;;  %v11186_v32 = vld [vmem:[#allocation4_spill] sm:$0xff] }
 0x738   :  { %v4186_v1 = vadd.f32 %v4154_v43, %v4058_v44  ;;  %v3717_v12 = vrot.slane %v11182_v33, %v11138_v5  ;;  %v3845_v38 = vrot.slane %v11182_v33, %v11139_v35  ;;  %v3973_v26 = vrot.slane %v11182_v33, %v11143_v41  ;;  %v11187_v47 = vld [vmem:[#allocation8_spill] sm:$0xff]  ;;  %v11188_v44 = vld [vmem:[#allocation9_spill] sm:$0xff] }
 0x739   :  { %v4310_v50 = vadd.f32 %v8884_v17, %v4182_v51  ;;  %v4187_v9 = vadd.f32 %v4155_v56, %v4059_v21  ;;  %v3165_v24 = vadd.f32 %v3133_v18, %v3037_v61  ;;  %v4101_v63 = vrot.slane %v11182_v33, %v7320_v4 }
 0x73a   :  { %v9028_v62 = vadd.f32 %v4282_v11, %v4186_v1  ;;  %v9031_v43 = vmul.f32 %v3717_v12, %v11140_v20  ;;  %v3773_v40 = vmul.f32 %v3717_v12, %v11102_v8  ;;  %v9035_v52 = vmul.f32 %v3845_v38, %v11142_v55 }
 0x73b   :  { %v4342_v25 = vadd.f32 %v4310_v50, %v11186_v32  ;;  %v4470_v17 = vsel %vm82_vm1, %v4310_v50, %v11186_v32  ;;  %v4315_v56 = vadd.f32 %v4283_v49, %v4187_v9  ;;  %v3293_v18 = vadd.f32 %v3261_v27, %v3165_v24  ;;  %v11192_v9 = vld [vmem:[#allocation24_spill] sm:$0xff] }
 0x73c   :  { %v4507_v59 = vpack.c.bf16 %v8919_v3, %v4470_v17  ;;  %v4474_v11 = vsel %vm82_vm1, %v9028_v62, %v11187_v47  ;;  %v3901_v16 = vmul.f32 %v3845_v38, %v11104_v60  ;;  %v9046_v22 = vmul.f32 %v3973_v26, %v11105_v37  ;;  %v11190_v38 = vld [vmem:[#allocation31_spill] sm:$0xff]  ;;  %v11193_v32 = vld [vmem:[#allocation32_spill] sm:$0xff] }
 0x73d   :  { %vm4374_vm9 = vcmp.gt.f32.partialorder %v4342_v25, 0.0  ;;  %v4475_v51 = vsel %vm82_vm1, %v4315_v56, %v11188_v44  ;;  %v4347_v21 = vadd.f32 %v4315_v56, %v11188_v44  ;;  %v3421_v61 = vadd.f32 %v3389_v7, %v3293_v18  ;;  %v11194_v56 = vld [vmem:[#allocation7_spill] sm:$0xff]  ;;  %v11197_v44 = vld [vmem:[#allocation193_spill] sm:$0xff] }
 0x73e   :  { %v5633_v49 = vsel %vm4374_vm9, 1.0, %v11159_v15  ;;  %6129 = vmatprep.mubr.msk.bf16.mxu1 %vm4533_vm8, %v4507_v59  ;;  %v4509_v3 = vpack.c.bf16 %v4475_v51, %v4474_v11  ;;  %v4029_v27 = vmul.f32 %v3973_v26, %v11106_v58  ;;  %v9055_v1 = vmul.f32 %v4101_v63, %v8555_v46  ;;  %v11195_v18 = vld [vmem:[#allocation23_spill] sm:$0xff]  ;;  %v11198_v51 = vld [vmem:[#allocation53_spill] sm:$0xff] }
 0x73f   :  { %v4942_v12 = vsel %vm4941_vm5, %v5633_v49, 0.0  ;;  %v11191_v50 = vpack.c.bf16 %v8903_v45, %v11190_v38  ;;  %vm4379_vm10 = vcmp.gt.f32.partialorder %v4347_v21, 0.0  ;;  %v6331_v7 = vpack.i.bf16 %v11192_v9, %v5633_v49  ;;  %v11203_v38 = vld [vmem:[#allocation49_spill] sm:$0xff] }
 0x740   :  { %11189 = vst [vmem:[#allocation33_spill] sm:$0xff] %v9055_v1  ;;  %v3549_v24 = vadd.f32 %v3517_v31, %v3421_v61  ;;  %v4944_v25 = vadd.f32 %v11193_v32, %v4942_v12  ;;  %v5638_v26 = vsel %vm4379_vm10, 1.0, %v11159_v15  ;;  %v4229_v17 = vrot.slane %v11182_v33, %v7323_v14  ;;  %v11199_v61 = vld [vmem:[#allocation25_spill] sm:$0xff] }
 0x741   :  { %6130 = vmatmul.mubr.msk.bf16.vlgmr.msra.gmra.mrb[68].mxu1 %vm4533_vm8, %v11191_v50  ;;  %v4345_v59 = vadd.f32 %v11195_v18, %v11194_v56  ;;  %v9071_v45 = vsel %vm4941_vm5, %v5638_v26, 0.0  ;;  %4776 = vperm.xlu0 %6329, %v5638_v26   ;;  %v4157_v31 = vmul.f32 %v4101_v63, %v11197_v44  ;;  %v2620_v21 = vmul.f32 %v11173_v36, %v11198_v51  ;;  %v11202_v33 = vld [vmem:[#allocation45_spill] sm:$0xff]  ;;  %v11204_v26 = vld [vmem:[#allocation54_spill] sm:$0xff] }
 0x742   :  { %6133 = vmatprep.mubr.msk.bf16.mxu1 %vm4533_vm8, %v4509_v3  ;;  %11196 = vst [vmem:[#allocation26_spill] sm:$0xff] %v9071_v45  ;;  %6332 = vperm.xlu1 %6330, %v6331_v7   ;;  %v3677_v11 = vadd.f32 %v3645_v10, %v3549_v24  ;;  %v4946_v49 = vadd.f32 %v11199_v61, %v4944_v25  ;;  %v11200_v3 = vld [vmem:[#allocation150_spill] sm:$0xff]  ;;  %v11208_v25 = vld [vmem:[#allocation81_spill] sm:$0xff] }
 0x743   :  { %v9078_v12 = vmul.f32 %v4229_v17, %v11200_v3  ;;  %vm4377_vm11 = vcmp.gt.f32.partialorder %v4345_v59, 0.0  ;;  %v2748_v50 = vmul.f32 %v11203_v38, %v11202_v33  ;;  %v2652_v7 = vadd.f32 %v2620_v21, %v11204_v26  ;;  %v11205_v10 = vld [vmem:[#allocation82_spill] sm:$0xff]  ;;  %v11209_v59 = vld [vmem:[#allocation99_spill] sm:$0xff]  ;;  %v11210_v33 = vld [vmem:[#allocation112_spill] sm:$0xff] }
 0x744   :  { %v3805_v9 = vadd.f32 %v3773_v40, %v3677_v11  ;;  %v5636_v32 = vsel %vm4377_vm11, 1.0, %v11159_v15  ;;  %v11206_v24 = vld [vmem:[#allocation50_spill] sm:$0xff]  ;;  %v3004_v51 = vmul.f32 %v11176_v53, %v11208_v25  ;;  %v2878_v61 = vmul.f32 %v11209_v59, %v11205_v10  ;;  %v11215_v53 = vld [vmem:[#allocation108_spill] sm:$0xff] }
 0x745   :  { %11201 = vst [vmem:[#allocation34_spill] sm:$0xff] %v9078_v12  ;;  %v2876_v63 = vmul.f32 %v11206_v24, %v11205_v10  ;;  %v11207_v56 = vld [vmem:[#allocation202_spill] sm:$0xff]  ;;  %v4947_v36 = vsel %vm4941_vm5, %v5636_v32, 0.0  ;;  %v2780_v11 = vadd.f32 %v2748_v50, %v2652_v7  ;;  %v2879_v21 = vmul.f32 %v11209_v59, %v11210_v33  ;;  %v11213_v12 = vld [vmem:[#allocation85_spill] sm:$0xff] }
 0x746   :  { %v4285_v18 = vmul.f32 %v4229_v17, %v11207_v56  ;;  %v3933_v45 = vadd.f32 %v3901_v16, %v3805_v9  ;;  %4766 = vperm.xlu1 %6330, %v5636_v32   ;;  %v9092_v40 = vadd.f32 %v4947_v36, %v4946_v49  ;;  %v11211_v38 = vld [vmem:[#allocation138_spill] sm:$0xff]  ;;  %v11212_v17 = vld [vmem:[#allocation113_spill] sm:$0xff]  ;;  %v3007_v1 = vmul.f32 %v11214_v28, %v11213_v12  ;;  %v11216_v9 = vld [vmem:[#allocation115_spill] sm:$0xff] }
 0x747   :  { %v3132_v26 = vmul.f32 %v11179_v23, %v11211_v38  ;;  %v2910_v24 = vadd.f32 %v2878_v61, %v11212_v17  ;;  %v3134_v25 = vmul.f32 %v11215_v53, %v11211_v38  ;;  %v2908_v16 = vadd.f32 %v2876_v63, %v2780_v11  ;;  %v11217_v32 = vld [vmem:[#allocation103_spill] sm:$0xff]  ;;  %v11218_v36 = vld [vmem:[#allocation109_spill] sm:$0xff]  ;;  %v11219_v28 = vld [vmem:[#allocation118_spill] sm:$0xff] }
 0x748   :  { %v4061_v10 = vadd.f32 %v4029_v27, %v3933_v45  ;;  %v2911_v49 = vadd.f32 %v2879_v21, %v11216_v9  ;;  %v3135_v50 = vmul.f32 %v11215_v53, %v7981_v30  ;;  %v3262_v23 = vmul.f32 %v11218_v36, %v7867_v39  ;;  %v11220_v11 = vld [vmem:[#allocation119_spill] sm:$0xff]  ;;  %v11221_v53 = vld [vmem:[#allocation120_spill] sm:$0xff] }
 0x749   :  { %v3038_v7 = vadd.f32 %v11217_v32, %v2910_v24  ;;  %v3263_v59 = vmul.f32 %v11218_v36, %v7977_v57  ;;  %v3390_v61 = vmul.f32 %v11219_v28, %v8123_v6  ;;  %v3036_v38 = vadd.f32 %v3004_v51, %v2908_v16 }
 0x74a   :  { %v4189_v17 = vadd.f32 %v4157_v31, %v4061_v10  ;;  %v3039_v27 = vadd.f32 %v3007_v1, %v2911_v49  ;;  %v3391_v45 = vmul.f32 %v11219_v28, %v8162_v29  ;;  %v3518_v21 = vmul.f32 %v11220_v11, %v11133_v34  ;;  %v11222_v10 = vld [vmem:[#allocation111_spill] sm:$0xff]  ;;  %v11223_v49 = vld [vmem:[#allocation17_spill] sm:$0xff] }
 0x74b   :  { %v3166_v63 = vadd.f32 %v3134_v25, %v3038_v7  ;;  %v3519_v24 = vmul.f32 %v11220_v11, %v11131_v42  ;;  %v3646_v9 = vmul.f32 %v11221_v53, %v11137_v13  ;;  %v3164_v36 = vadd.f32 %v3132_v26, %v3036_v38 }
 0x74c   :  { %v4317_v32 = vadd.f32 %v4285_v18, %v4189_v17  ;;  %v3167_v57 = vadd.f32 %v3135_v50, %v3039_v27  ;;  %v3647_v31 = vmul.f32 %v11221_v53, %v11136_v2  ;;  %v3721_v51 = vrot.slane %v11222_v10, %v11138_v5 }
 0x74d   :  { %v3294_v1 = vadd.f32 %v3262_v23, %v3166_v63  ;;  %v3849_v25 = vrot.slane %v11222_v10, %v11139_v35  ;;  %v3977_v16 = vrot.slane %v11222_v10, %v11143_v41  ;;  %v3292_v28 = vadd.f32 %v9002_v0, %v3164_v36 }
 0x74e   :  { %v4349_v7 = vadd.f32 %v4317_v32, %v11223_v49  ;;  %v3295_v18 = vadd.f32 %v3263_v59, %v3167_v57  ;;  %v4105_v38 = vrot.slane %v11222_v10, %v7320_v4  ;;  %v9135_v26 = vsel %vm82_vm1, %v4317_v32, %v11223_v49 }
 0x74f   :  { %v3422_v50 = vadd.f32 %v3390_v61, %v3294_v1  ;;  %v3774_v23 = vmul.f32 %v3721_v51, %v11140_v20  ;;  %v3775_v17 = vmul.f32 %v3721_v51, %v11102_v8  ;;  %v3420_v27 = vadd.f32 %v9006_v48, %v3292_v28  ;;  %v11225_v28 = vld [vmem:[#allocation97_spill] sm:$0xff] }
 0x750   :  { %vm4381_vm12 = vcmp.gt.f32.partialorder %v4349_v7, 0.0  ;;  %v3423_v63 = vadd.f32 %v3391_v45, %v3295_v18  ;;  %v3902_v11 = vmul.f32 %v3849_v25, %v11142_v55  ;;  %v3903_v59 = vmul.f32 %v3849_v25, %v11104_v60  ;;  %v11224_v7 = vld [vmem:[#allocation98_spill] sm:$0xff] }
 0x751   :  { %v9142_v57 = vsel %vm4381_vm12, 1.0, %v11159_v15  ;;  %v3550_v0 = vadd.f32 %v3518_v21, %v3422_v50  ;;  %v4030_v53 = vmul.f32 %v3977_v16, %v11105_v37  ;;  %v3548_v61 = vadd.f32 %v9011_v19, %v3420_v27  ;;  %v11227_v27 = vld [vmem:[#allocation91_spill] sm:$0xff] }
 0x752   :  { %4786 = vperm.xlu0 %6329, %v9142_v57   ;;  %v3551_v32 = vadd.f32 %v3519_v24, %v3423_v63  ;;  %v4031_v36 = vmul.f32 %v3977_v16, %v11106_v58  ;;  %v4158_v48 = vmul.f32 %v4105_v38, %v8555_v46  ;;  %v4159_v1 = vmul.f32 %v4105_v38, %v11197_v44  ;;  %v11226_v24 = vld [vmem:[#allocation90_spill] sm:$0xff] }
 0x753   :  { %v3678_v45 = vadd.f32 %v3646_v9, %v3550_v0  ;;  %v4233_v51 = vrot.slane %v11222_v10, %v7323_v14  ;;  %v4346_v21 = vadd.f32 %v9028_v62, %v11187_v47  ;;  %v3676_v25 = vadd.f32 %v9015_v54, %v3548_v61 }
 0x754   :  { %v3679_v49 = vadd.f32 %v3647_v31, %v3551_v32  ;;  %v2785_v19 = vadd.f32 %v11225_v28, %v11224_v7  ;;  %v2881_v16 = vmul.f32 %v11226_v24, %v11210_v33  ;;  %v3009_v63 = vmul.f32 %v11227_v27, %v11213_v12  ;;  %v11228_v33 = vld [vmem:[#allocation94_spill] sm:$0xff] }
 0x755   :  { %v3806_v18 = vadd.f32 %v3774_v23, %v3678_v45  ;;  %v4286_v9 = vmul.f32 %v4233_v51, %v11200_v3  ;;  %v4287_v38 = vmul.f32 %v4233_v51, %v11207_v56  ;;  %vm4378_vm13 = vcmp.gt.f32.partialorder %v4346_v21, 0.0  ;;  %v11231_v21 = vld [vmem:[#allocation110_spill] sm:$0xff] }
 0x756   :  { %v3804_v10 = vadd.f32 %v9031_v43, %v3676_v25  ;;  %v3807_v50 = vadd.f32 %v3775_v17, %v3679_v49  ;;  %v5637_v62 = vsel %vm4378_vm13, 1.0, %v11159_v15  ;;  %v2913_v47 = vadd.f32 %v2881_v16, %v2785_v19  ;;  %v11229_v43 = vld [vmem:[#allocation80_spill] sm:$0xff]  ;;  %v11232_v49 = vld [vmem:[#allocation14_spill] sm:$0xff] }
 0x757   :  { %v3934_v54 = vadd.f32 %v3902_v11, %v3806_v18  ;;  %v4949_v31 = vsel %vm4941_vm5, %v5637_v62, 0.0  ;;  %4771 = vperm.xlu1 %6330, %v5637_v62   ;;  %v3137_v23 = vmul.f32 %v11228_v33, %v7981_v30  ;;  %v3213_v17 = vrot.slane %v11229_v43, %v7323_v14  ;;  %v11230_v11 = vld [vmem:[#allocation13_spill] sm:$0xff] }
 0x758   :  { %v3932_v0 = vadd.f32 %v9035_v52, %v3804_v10  ;;  %v3935_v61 = vadd.f32 %v3903_v59, %v3807_v50  ;;  %v4950_v32 = vadd.f32 %v4949_v31, %v9092_v40  ;;  %v3041_v51 = vadd.f32 %v3009_v63, %v2913_v47  ;;  %v11233_v52 = vld [vmem:[#allocation71_spill] sm:$0xff]  ;;  %v11234_v50 = vld [vmem:[#allocation33_spill] sm:$0xff] }
 0x759   :  { %v4062_v45 = vadd.f32 %v4030_v53, %v3934_v54  ;;  %v3341_v25 = vrot.slane %v11231_v21, %v11230_v11  ;;  %v3469_v7 = vrot.slane %v11231_v21, %v11232_v49  ;;  %v9179_v16 = vmul.f32 %v3213_v17, %v7867_v39  ;;  %v11235_v63 = vld [vmem:[#allocation15_spill] sm:$0xff] }
 0x75a   :  { %v4060_v28 = vadd.f32 %v9046_v22, %v3932_v0  ;;  %v4063_v19 = vadd.f32 %v4031_v36, %v3935_v61  ;;  %v3265_v59 = vmul.f32 %v3213_v17, %v11233_v52  ;;  %v3169_v18 = vadd.f32 %v3137_v23, %v3041_v51  ;;  %v11236_v0 = vld [vmem:[#allocation34_spill] sm:$0xff] }
 0x75b   :  { %v4190_v40 = vadd.f32 %v4158_v48, %v4062_v45  ;;  %v9183_v10 = vmul.f32 %v3341_v25, %v8123_v6  ;;  %v3393_v53 = vmul.f32 %v3341_v25, %v8162_v29  ;;  %v9188_v54 = vmul.f32 %v3469_v7, %v11133_v34  ;;  %v11237_v45 = vld [vmem:[#allocation18_spill] sm:$0xff] }
 0x75c   :  { %v4188_v62 = vadd.f32 %v11234_v50, %v4060_v28  ;;  %v4191_v47 = vadd.f32 %v4159_v1, %v4063_v19  ;;  %v3521_v22 = vmul.f32 %v3469_v7, %v11131_v42  ;;  %v3297_v31 = vadd.f32 %v3265_v59, %v3169_v18  ;;  %v11238_v28 = vld [vmem:[#allocation10_spill] sm:$0xff] }
 0x75d   :  { %v9191_v36 = vadd.f32 %v4286_v9, %v4190_v40  ;;  %v3597_v48 = vrot.slane %v11231_v21, %v11235_v63  ;;  %v3725_v23 = vrot.slane %v11231_v21, %v11138_v5  ;;  %v3853_v1 = vrot.slane %v11231_v21, %v11139_v35 }
 0x75e   :  { %v4316_v61 = vadd.f32 %v11236_v0, %v4188_v62  ;;  %v4319_v43 = vadd.f32 %v4287_v38, %v4191_v47  ;;  %v3981_v17 = vrot.slane %v11231_v21, %v11143_v41  ;;  %v3425_v51 = vadd.f32 %v3393_v53, %v3297_v31  ;;  %v11239_v38 = vld [vmem:[#allocation46_spill] sm:$0xff] }
 0x75f   :  { %v4478_v9 = vsel %vm82_vm1, %v9191_v36, %v11237_v45  ;;  %v9206_v25 = vmul.f32 %v3597_v48, %v11137_v13  ;;  %v3649_v7 = vmul.f32 %v3597_v48, %v11136_v2  ;;  %v9215_v18 = vmul.f32 %v3725_v23, %v11140_v20 }
 0x760   :  { %v4476_v19 = vsel %vm82_vm1, %v4316_v61, %v11238_v28  ;;  %v4479_v59 = vsel %vm82_vm1, %v4319_v43, %v11239_v38  ;;  %v4351_v40 = vadd.f32 %v4319_v43, %v11239_v38  ;;  %v3553_v53 = vadd.f32 %v3521_v22, %v3425_v51  ;;  %v11240_v51 = vld [vmem:[#allocation26_spill] sm:$0xff] }
 0x761   :  { %v4510_v50 = vpack.c.bf16 %v9135_v26, %v4476_v19  ;;  %v4511_v62 = vpack.c.bf16 %v4479_v59, %v4478_v9  ;;  %v3777_v47 = vmul.f32 %v3725_v23, %v11102_v8  ;;  %v9220_v31 = vmul.f32 %v3853_v1, %v11142_v55 }
 0x762   :  { %vm4383_vm14 = vcmp.gt.f32.partialorder %v4351_v40, 0.0  ;;  %v3905_v48 = vmul.f32 %v3853_v1, %v11104_v60  ;;  %v9224_v0 = vmul.f32 %v3981_v17, %v11105_v37  ;;  %v3681_v38 = vadd.f32 %v3649_v7, %v3553_v53  ;;  %v11242_v40 = vld [vmem:[#allocation82_spill] sm:$0xff] }
 0x763   :  { %6134 = vmatmul.mubr.msk.bf16.gmra.mrb[72].mxu1 %vm4533_vm8, %v4510_v50  ;;  %v5642_v43 = vsel %vm4383_vm14, 1.0, %v11159_v15  ;;  %v4033_v26 = vmul.f32 %v3981_v17, %v11106_v58  ;;  %v4109_v22 = vrot.slane %v11231_v21, %v7320_v4  ;;  %v9233_v23 = vsel %vm4941_vm5, %v9142_v57, 0.0 }
 0x764   :  { %6137 = vmatprep.mubr.msk.bf16.mxu1 %vm4533_vm8, %v4511_v62  ;;  %4796 = vperm.xlu0 %6329, %v5642_v43   ;;  %v4237_v1 = vrot.slane %v11231_v21, %v7323_v14  ;;  %v4348_v9 = vadd.f32 %v4316_v61, %v11238_v28  ;;  %v4952_v19 = vadd.f32 %v11240_v51, %v4950_v32  ;;  %v9241_v7 = vsel %vm4941_vm5, %v5642_v43, 0.0  ;;  %v11244_v28 = vld [vmem:[#allocation100_spill] sm:$0xff] }
 0x765   :  { %11241 = vst [vmem:[#allocation27_spill] sm:$0xff] %v9241_v7  ;;  %v3809_v17 = vadd.f32 %v3777_v47, %v3681_v38  ;;  %v9244_v59 = vmul.f32 %v4109_v22, %v8555_v46  ;;  %v2880_v57 = vmul.f32 %v11226_v24, %v11242_v40  ;;  %v4161_v50 = vmul.f32 %v4109_v22, %v11197_v44  ;;  %v11245_v47 = vld [vmem:[#allocation81_spill] sm:$0xff]  ;;  %v11246_v24 = vld [vmem:[#allocation138_spill] sm:$0xff]  ;;  %v11247_v51 = vld [vmem:[#allocation136_spill] sm:$0xff] }
 0x766   :  { %v9250_v62 = vmul.f32 %v4237_v1, %v11200_v3  ;;  %v4289_v21 = vmul.f32 %v4237_v1, %v11207_v56  ;;  %vm4380_vm15 = vcmp.gt.f32.partialorder %v4348_v9, 0.0  ;;  %v3008_v43 = vmul.f32 %v11227_v27, %v11245_v47  ;;  %v11249_v7 = vld [vmem:[#allocation37_spill] sm:$0xff]  ;;  %v11250_v47 = vld [vmem:[#allocation143_spill] sm:$0xff] }
 0x767   :  { %v3937_v61 = vadd.f32 %v3905_v48, %v3809_v17  ;;  %v5639_v32 = vsel %vm4380_vm15, 1.0, %v11159_v15  ;;  %v2912_v53 = vadd.f32 %v2880_v57, %v11244_v28  ;;  %v3136_v22 = vmul.f32 %v11228_v33, %v11246_v24  ;;  %v11248_v57 = vld [vmem:[#allocation137_spill] sm:$0xff] }
 0x768   :  { %11243 = vst [vmem:[#allocation35_spill] sm:$0xff] %v9250_v62  ;;  %v4953_v38 = vsel %vm4941_vm5, %v5639_v32, 0.0  ;;  %4781 = vperm.xlu1 %6330, %v5639_v32   ;;  %v3138_v40 = vmul.f32 %v11247_v51, %v11246_v24  ;;  %v3139_v1 = vmul.f32 %v11247_v51, %v7981_v30  ;;  %v3267_v28 = vmul.f32 %v11248_v57, %v11233_v52  ;;  %v11251_v32 = vld [vmem:[#allocation144_spill] sm:$0xff]  ;;  %v11252_v51 = vld [vmem:[#allocation145_spill] sm:$0xff] }
 0x769   :  { %v4065_v48 = vadd.f32 %v4033_v26, %v3937_v61  ;;  %v4954_v9 = vadd.f32 %v4953_v38, %v4952_v19  ;;  %v3040_v17 = vadd.f32 %v3008_v43, %v2912_v53  ;;  %v3394_v62 = vmul.f32 %v11251_v32, %v8123_v6  ;;  %v11253_v61 = vld [vmem:[#allocation69_spill] sm:$0xff] }
 0x76a   :  { %v3170_v27 = vadd.f32 %v3138_v40, %v11249_v7  ;;  %v3171_v63 = vadd.f32 %v3139_v1, %v11250_v47  ;;  %v3395_v33 = vmul.f32 %v11251_v32, %v8162_v29  ;;  %v3522_v26 = vmul.f32 %v11252_v51, %v11133_v34  ;;  %v11254_v7 = vld [vmem:[#allocation146_spill] sm:$0xff] }
 0x76b   :  { %v4193_v24 = vadd.f32 %v4161_v50, %v4065_v48  ;;  %v3168_v49 = vadd.f32 %v3136_v22, %v3040_v17  ;;  %v3523_v19 = vmul.f32 %v11252_v51, %v11131_v42  ;;  %v3650_v38 = vmul.f32 %v11254_v7, %v11137_v13  ;;  %v11255_v40 = vld [vmem:[#allocation70_spill] sm:$0xff] }
 0x76c   :  { %v3298_v53 = vadd.f32 %v11253_v61, %v3170_v27  ;;  %v3299_v43 = vadd.f32 %v3267_v28, %v3171_v63  ;;  %v3729_v1 = vrot.slane %v11255_v40, %v11138_v5  ;;  %v3651_v50 = vmul.f32 %v11254_v7, %v11136_v2  ;;  %v11256_v28 = vld [vmem:[#allocation77_spill] sm:$0xff] }
 0x76d   :  { %v4321_v57 = vadd.f32 %v4289_v21, %v4193_v24  ;;  %v3296_v47 = vadd.f32 %v9179_v16, %v3168_v49  ;;  %v3857_v22 = vrot.slane %v11255_v40, %v11139_v35  ;;  %v3985_v63 = vrot.slane %v11255_v40, %v11143_v41 }
 0x76e   :  { %v3426_v48 = vadd.f32 %v3394_v62, %v3298_v53  ;;  %v3427_v17 = vadd.f32 %v3395_v33, %v3299_v43  ;;  %v3778_v27 = vmul.f32 %v3729_v1, %v11140_v20  ;;  %v3779_v16 = vmul.f32 %v3729_v1, %v11102_v8 }
 0x76f   :  { %v4353_v32 = vadd.f32 %v4321_v57, %v11256_v28  ;;  %v3424_v51 = vadd.f32 %v9183_v10, %v3296_v47  ;;  %v9293_v49 = vsel %vm82_vm1, %v4321_v57, %v11256_v28  ;;  %v3906_v62 = vmul.f32 %v3857_v22, %v11142_v55 }
 0x770   :  { %v3554_v21 = vadd.f32 %v3522_v26, %v3426_v48  ;;  %v3555_v24 = vadd.f32 %v3523_v19, %v3427_v17  ;;  %v3907_v33 = vmul.f32 %v3857_v22, %v11104_v60  ;;  %v4034_v53 = vmul.f32 %v3985_v63, %v11105_v37 }
 0x771   :  { %vm4385_vm0 = vcmp.gt.f32.partialorder %v4353_v32, 0.0  ;;  %v3552_v61 = vadd.f32 %v9188_v54, %v3424_v51  ;;  %v4113_v10 = vrot.slane %v11255_v40, %v7320_v4  ;;  %v4241_v26 = vrot.slane %v11255_v40, %v7323_v14  ;;  %v11257_v32 = vld [vmem:[#allocation135_spill] sm:$0xff]  ;;  %v11258_v51 = vld [vmem:[#allocation132_spill] sm:$0xff] }
 0x772   :  { %v5644_v43 = vsel %vm4385_vm0, 1.0, %v11159_v15  ;;  %v3682_v7 = vadd.f32 %v3650_v38, %v3554_v21  ;;  %v3683_v57 = vadd.f32 %v3651_v50, %v3555_v24  ;;  %v4035_v54 = vmul.f32 %v3985_v63, %v11106_v58 }
 0x773   :  { %v9306_v19 = vsel %vm4941_vm5, %v5644_v43, 0.0  ;;  %4806 = vperm.xlu0 %6329, %v5644_v43   ;;  %v3680_v1 = vadd.f32 %v9206_v25, %v3552_v61  ;;  %v4162_v47 = vmul.f32 %v4113_v10, %v8555_v46  ;;  %v4163_v17 = vmul.f32 %v4113_v10, %v11197_v44  ;;  %v11260_v10 = vld [vmem:[#allocation133_spill] sm:$0xff]  ;;  %v11261_v43 = vld [vmem:[#allocation123_spill] sm:$0xff] }
 0x774   :  { %v3810_v22 = vadd.f32 %v3778_v27, %v3682_v7  ;;  %v3811_v48 = vadd.f32 %v3779_v16, %v3683_v57  ;;  %v4290_v38 = vmul.f32 %v4241_v26, %v11200_v3  ;;  %v4350_v40 = vadd.f32 %v9191_v36, %v11237_v45  ;;  %v11259_v27 = vld [vmem:[#allocation129_spill] sm:$0xff] }
 0x775   :  { %v3808_v50 = vadd.f32 %v9215_v18, %v3680_v1  ;;  %v4956_v28 = vadd.f32 %v9233_v23, %v4954_v9  ;;  %v2789_v25 = vadd.f32 %v11258_v51, %v11257_v32  ;;  %v4291_v24 = vmul.f32 %v4241_v26, %v11207_v56 }
 0x776   :  { %v3938_v21 = vadd.f32 %v3906_v62, %v3810_v22  ;;  %v3939_v63 = vadd.f32 %v3907_v33, %v3811_v48  ;;  %v3013_v16 = vmul.f32 %v11259_v27, %v11213_v12  ;;  %vm4382_vm2 = vcmp.gt.f32.partialorder %v4350_v40, 0.0  ;;  %v11262_v62 = vld [vmem:[#allocation130_spill] sm:$0xff] }
 0x777   :  { %v3936_v61 = vadd.f32 %v9220_v31, %v3808_v50  ;;  %v2917_v18 = vadd.f32 %v11260_v10, %v2789_v25  ;;  %v3221_v36 = vrot.slane %v11261_v43, %v7323_v14  ;;  %v5641_v9 = vsel %vm4382_vm2, 1.0, %v11159_v15  ;;  %v11263_v31 = vld [vmem:[#allocation142_spill] sm:$0xff] }
 0x778   :  { %v4066_v45 = vadd.f32 %v4034_v53, %v3938_v21  ;;  %v4067_v23 = vadd.f32 %v4035_v54, %v3939_v63  ;;  %v3141_v33 = vmul.f32 %v11262_v62, %v7981_v30  ;;  %v4957_v57 = vsel %vm4941_vm5, %v5641_v9, 0.0  ;;  %4791 = vperm.xlu1 %6330, %v5641_v9   ;;  %v11264_v63 = vld [vmem:[#allocation14_spill] sm:$0xff] }
 0x779   :  { %v4064_v7 = vadd.f32 %v9224_v0, %v3936_v61  ;;  %v3045_v26 = vadd.f32 %v3013_v16, %v2917_v18  ;;  %v3349_v1 = vrot.slane %v11263_v31, %v11230_v11  ;;  %v4958_v50 = vadd.f32 %v4957_v57, %v4956_v28  ;;  %v11266_v16 = vld [vmem:[#allocation15_spill] sm:$0xff]  ;;  %v11267_v10 = vld [vmem:[#allocation78_spill] sm:$0xff] }
 0x77a   :  { %v4194_v22 = vadd.f32 %v4162_v47, %v4066_v45  ;;  %v4195_v48 = vadd.f32 %v4163_v17, %v4067_v23  ;;  %v3268_v53 = vmul.f32 %v3221_v36, %v7867_v39  ;;  %v3269_v32 = vmul.f32 %v3221_v36, %v11233_v52  ;;  %v11265_v47 = vld [vmem:[#allocation35_spill] sm:$0xff] }
 0x77b   :  { %v4192_v54 = vadd.f32 %v9244_v59, %v4064_v7  ;;  %v3173_v40 = vadd.f32 %v3141_v33, %v3045_v26  ;;  %v3396_v51 = vmul.f32 %v3349_v1, %v8123_v6  ;;  %v3397_v21 = vmul.f32 %v3349_v1, %v8162_v29  ;;  %v11268_v18 = vld [vmem:[#allocation131_spill] sm:$0xff] }
 0x77c   :  { %v9337_v0 = vadd.f32 %v4290_v38, %v4194_v22  ;;  %v4323_v25 = vadd.f32 %v4291_v24, %v4195_v48  ;;  %v3477_v27 = vrot.slane %v11263_v31, %v11264_v63  ;;  %v3605_v61 = vrot.slane %v11263_v31, %v11266_v16  ;;  %v11269_v45 = vld [vmem:[#allocation47_spill] sm:$0xff] }
 0x77d   :  { %v4320_v17 = vadd.f32 %v11265_v47, %v4192_v54  ;;  %v3301_v28 = vadd.f32 %v3269_v32, %v3173_v40  ;;  %v3733_v59 = vrot.slane %v11263_v31, %v11138_v5  ;;  %v3861_v36 = vrot.slane %v11263_v31, %v11139_v35 }
 0x77e   :  { %v4482_v38 = vsel %vm82_vm1, %v9337_v0, %v11267_v10  ;;  %v4483_v24 = vsel %vm82_vm1, %v4323_v25, %v11268_v18  ;;  %v4355_v43 = vadd.f32 %v4323_v25, %v11268_v18  ;;  %v3525_v7 = vmul.f32 %v3477_v27, %v11131_v42  ;;  %v11271_v18 = vld [vmem:[#allocation27_spill] sm:$0xff] }
 0x77f   :  { %v4480_v23 = vsel %vm82_vm1, %v4320_v17, %v11269_v45  ;;  %v4513_v9 = vpack.c.bf16 %v4483_v24, %v4482_v38  ;;  %v3429_v33 = vadd.f32 %v3397_v21, %v3301_v28  ;;  %v3524_v26 = vmul.f32 %v3477_v27, %v11133_v34 }
 0x780   :  { %v4512_v57 = vpack.c.bf16 %v9293_v49, %v4480_v23  ;;  %vm4387_vm4 = vcmp.gt.f32.partialorder %v4355_v43, 0.0  ;;  %v3652_v1 = vmul.f32 %v3605_v61, %v11137_v13  ;;  %v3653_v54 = vmul.f32 %v3605_v61, %v11136_v2  ;;  %v11272_v43 = vld [vmem:[#allocation138_spill] sm:$0xff] }
 0x781   :  { %v5646_v22 = vsel %vm4387_vm4, 1.0, %v11159_v15  ;;  %v3557_v48 = vadd.f32 %v3525_v7, %v3429_v33  ;;  %v3780_v40 = vmul.f32 %v3733_v59, %v11140_v20  ;;  %v3781_v49 = vmul.f32 %v3733_v59, %v11102_v8 }
 0x782   :  { %6138 = vmatmul.mubr.msk.bf16.gmra.mrb[76].mxu1 %vm4533_vm8, %v4512_v57  ;;  %v9366_v32 = vsel %vm4941_vm5, %v5646_v22, 0.0  ;;  %4816 = vperm.xlu0 %6329, %v5646_v22   ;;  %v9370_v25 = vmul.f32 %v3861_v36, %v11142_v55  ;;  %v3989_v21 = vrot.slane %v11263_v31, %v11143_v41  ;;  %v3909_v47 = vmul.f32 %v3861_v36, %v11104_v60  ;;  %v11275_v22 = vld [vmem:[#allocation154_spill] sm:$0xff] }
 0x783   :  { %11270 = vst [vmem:[#allocation28_spill] sm:$0xff] %v9366_v32  ;;  %6141 = vmatprep.mubr.msk.bf16.mxu1 %vm4533_vm8, %v4513_v9  ;;  %v3685_v27 = vadd.f32 %v3653_v54, %v3557_v48  ;;  %v4117_v28 = vrot.slane %v11263_v31, %v7320_v4  ;;  %v4352_v61 = vadd.f32 %v4320_v17, %v11269_v45  ;;  %v11273_v45 = vld [vmem:[#allocation139_spill] sm:$0xff]  ;;  %v11279_v32 = vld [vmem:[#allocation157_spill] sm:$0xff] }
 0x784   :  { %v9380_v38 = vmul.f32 %v3989_v21, %v11105_v37  ;;  %v4245_v59 = vrot.slane %v11263_v31, %v7323_v14  ;;  %v4960_v24 = vadd.f32 %v11271_v18, %v4958_v50  ;;  %v3140_v23 = vmul.f32 %v11262_v62, %v11272_v43  ;;  %v11274_v31 = vld [vmem:[#allocation156_spill] sm:$0xff]  ;;  %v11276_v54 = vld [vmem:[#allocation87_spill] sm:$0xff] }
 0x785   :  { %v3813_v9 = vadd.f32 %v3781_v49, %v3685_v27  ;;  %v4037_v33 = vmul.f32 %v3989_v21, %v11106_v58  ;;  %v9389_v36 = vmul.f32 %v4117_v28, %v8555_v46  ;;  %v4165_v7 = vmul.f32 %v4117_v28, %v11197_v44  ;;  %v11277_v49 = vld [vmem:[#allocation84_spill] sm:$0xff] }
 0x786   :  { %v9393_v17 = vmul.f32 %v4245_v59, %v11200_v3  ;;  %vm4384_vm6 = vcmp.gt.f32.partialorder %v4352_v61, 0.0  ;;  %v3172_v57 = vadd.f32 %v3140_v23, %v11273_v45  ;;  %v3302_v50 = vadd.f32 %v11275_v22, %v11274_v31  ;;  %v11278_v27 = vld [vmem:[#allocation88_spill] sm:$0xff]  ;;  %v11280_v23 = vld [vmem:[#allocation93_spill] sm:$0xff] }
 0x787   :  { %v3941_v48 = vadd.f32 %v3909_v47, %v3813_v9  ;;  %v5643_v62 = vsel %vm4384_vm6, 1.0, %v11159_v15  ;;  %v3303_v21 = vadd.f32 %v11277_v49, %v11276_v54  ;;  %v3399_v18 = vmul.f32 %v11278_v27, %v8162_v29  ;;  %v11281_v27 = vld [vmem:[#allocation158_spill] sm:$0xff] }
 0x788   :  { %v4961_v28 = vsel %vm4941_vm5, %v5643_v62, 0.0  ;;  %4801 = vperm.xlu1 %6330, %v5643_v62   ;;  %v3300_v43 = vadd.f32 %v3268_v53, %v3172_v57  ;;  %v3430_v61 = vadd.f32 %v11279_v32, %v3302_v50  ;;  %v3526_v45 = vmul.f32 %v11280_v23, %v11133_v34  ;;  %v11282_v57 = vld [vmem:[#allocation96_spill] sm:$0xff] }
 0x789   :  { %v4069_v16 = vadd.f32 %v4037_v33, %v3941_v48  ;;  %v4962_v31 = vadd.f32 %v4961_v28, %v4960_v24  ;;  %v3431_v47 = vadd.f32 %v3399_v18, %v3303_v21  ;;  %v3527_v9 = vmul.f32 %v11280_v23, %v11131_v42 }
 0x78a   :  { %v4293_v22 = vmul.f32 %v4245_v59, %v11207_v56  ;;  %v3428_v54 = vadd.f32 %v3396_v51, %v3300_v43  ;;  %v3558_v49 = vadd.f32 %v3526_v45, %v3430_v61  ;;  %v3654_v29 = vmul.f32 %v11281_v27, %v11137_v13 }
 0x78b   :  { %v4197_v62 = vadd.f32 %v4165_v7, %v4069_v16  ;;  %v3559_v53 = vadd.f32 %v3527_v9, %v3431_v47  ;;  %v3655_v32 = vmul.f32 %v11281_v27, %v11136_v2  ;;  %v3737_v33 = vrot.slane %v11282_v57, %v11138_v5 }
 0x78c   :  { %v3556_v24 = vadd.f32 %v3524_v26, %v3428_v54  ;;  %v3686_v50 = vadd.f32 %v3654_v29, %v3558_v49  ;;  %v3865_v48 = vrot.slane %v11282_v57, %v11139_v35  ;;  %v3993_v51 = vrot.slane %v11282_v57, %v11143_v41  ;;  %v11283_v26 = vld [vmem:[#allocation141_spill] sm:$0xff] }
 0x78d   :  { %v4325_v59 = vadd.f32 %v4293_v22, %v4197_v62  ;;  %v3687_v21 = vadd.f32 %v3655_v32, %v3559_v53  ;;  %v3782_v18 = vmul.f32 %v3737_v33, %v11140_v20  ;;  %v3783_v16 = vmul.f32 %v3737_v33, %v11102_v8 }
 0x78e   :  { %v3684_v7 = vadd.f32 %v3652_v1, %v3556_v24  ;;  %v3910_v28 = vmul.f32 %v3865_v48, %v11142_v55  ;;  %v3911_v43 = vmul.f32 %v3865_v48, %v11104_v60  ;;  %v4121_v29 = vrot.slane %v11282_v57, %v7320_v4 }
 0x78f   :  { %v4357_v61 = vadd.f32 %v4325_v59, %v11283_v26  ;;  %v3814_v23 = vadd.f32 %v3782_v18, %v3686_v50  ;;  %v3815_v45 = vadd.f32 %v3783_v16, %v3687_v21  ;;  %v4038_v47 = vmul.f32 %v3993_v51, %v11105_v37  ;;  %v11284_v21 = vld [vmem:[#allocation152_spill] sm:$0xff]  ;;  %v11285_v18 = vld [vmem:[#allocation63_spill] sm:$0xff] }
 0x790   :  { %v3812_v9 = vadd.f32 %v3780_v40, %v3684_v7  ;;  %v4485_v22 = vsel %vm82_vm1, %v4325_v59, %v11283_v26  ;;  %v4039_v54 = vmul.f32 %v3993_v51, %v11106_v58  ;;  %v4166_v1 = vmul.f32 %v4121_v29, %v8555_v46 }
 0x791   :  { %vm4389_vm7 = vcmp.gt.f32.partialorder %v4357_v61, 0.0  ;;  %v3942_v49 = vadd.f32 %v3910_v28, %v3814_v23  ;;  %v3943_v27 = vadd.f32 %v3911_v43, %v3815_v45  ;;  %v4249_v62 = vrot.slane %v11282_v57, %v7323_v14  ;;  %v11287_v43 = vld [vmem:[#allocation151_spill] sm:$0xff] }
 0x792   :  { %v5648_v53 = vsel %vm4389_vm7, 1.0, %v11159_v15  ;;  %v3940_v32 = vadd.f32 %v9370_v25, %v3812_v9  ;;  %v4354_v40 = vadd.f32 %v9337_v0, %v11267_v10  ;;  %v4964_v33 = vadd.f32 %v9306_v19, %v4962_v31  ;;  %v11286_v19 = vld [vmem:[#allocation73_spill] sm:$0xff] }
 0x793   :  { %4826 = vperm.xlu0 %6329, %v5648_v53   ;;  %v4070_v24 = vadd.f32 %v4038_v47, %v3942_v49  ;;  %v4071_v50 = vadd.f32 %v4039_v54, %v3943_v27  ;;  %v4167_v48 = vmul.f32 %v4121_v29, %v11197_v44  ;;  %v4294_v51 = vmul.f32 %v4249_v62, %v11200_v3  ;;  %v11288_v29 = vld [vmem:[#allocation74_spill] sm:$0xff]  ;;  %v11289_v47 = vld [vmem:[#allocation147_spill] sm:$0xff] }
 0x794   :  { %v4068_v59 = vadd.f32 %v9380_v38, %v3940_v32  ;;  %v4295_v57 = vmul.f32 %v4249_v62, %v11207_v56  ;;  %vm4386_vm9 = vcmp.gt.f32.partialorder %v4354_v40, 0.0  ;;  %v2793_v25 = vadd.f32 %v11285_v18, %v11284_v21  ;;  %v11292_v32 = vld [vmem:[#allocation149_spill] sm:$0xff]  ;;  %v11294_v21 = vld [vmem:[#allocation64_spill] sm:$0xff] }
 0x795   :  { %v4198_v16 = vadd.f32 %v4166_v1, %v4070_v24  ;;  %v4199_v7 = vadd.f32 %v4167_v48, %v4071_v50  ;;  %v5645_v0 = vsel %vm4386_vm9, 1.0, %v11159_v15  ;;  %v3017_v10 = vmul.f32 %v11286_v19, %v11213_v12 }
 0x796   :  { %v4196_v31 = vadd.f32 %v9389_v36, %v4068_v59  ;;  %v4965_v28 = vsel %vm4941_vm5, %v5645_v0, 0.0  ;;  %4811 = vperm.xlu1 %6330, %v5645_v0   ;;  %v2921_v38 = vadd.f32 %v11287_v43, %v2793_v25  ;;  %v3145_v26 = vmul.f32 %v11288_v29, %v7981_v30  ;;  %v11290_v36 = vld [vmem:[#allocation86_spill] sm:$0xff] }
 0x797   :  { %v9453_v61 = vadd.f32 %v4294_v51, %v4198_v16  ;;  %v4327_v23 = vadd.f32 %v4295_v57, %v4199_v7  ;;  %v4966_v45 = vadd.f32 %v4965_v28, %v4964_v33  ;;  %v3229_v9 = vrot.slane %v11289_v47, %v7323_v14  ;;  %v11291_v30 = vld [vmem:[#allocation134_spill] sm:$0xff] }
 0x798   :  { %v4324_v54 = vadd.f32 %v9393_v17, %v4196_v31  ;;  %v3049_v12 = vadd.f32 %v3017_v10, %v2921_v38  ;;  %v3357_v1 = vrot.slane %v11290_v36, %v11230_v11  ;;  %v3485_v49 = vrot.slane %v11290_v36, %v11264_v63  ;;  %v11293_v17 = vld [vmem:[#allocation114_spill] sm:$0xff] }
 0x799   :  { %v9463_v27 = vsel %vm4941_vm5, %v5648_v53, 0.0  ;;  %v4486_v62 = vsel %vm82_vm1, %v9453_v61, %v11291_v30  ;;  %v4487_v40 = vsel %vm82_vm1, %v4327_v23, %v11292_v32  ;;  %v4359_v33 = vadd.f32 %v4327_v23, %v11292_v32 }
 0x79a   :  { %v4484_v24 = vsel %vm82_vm1, %v4324_v54, %v11293_v17  ;;  %v4515_v50 = vpack.c.bf16 %v4487_v40, %v4486_v62  ;;  %v3177_v11 = vadd.f32 %v3145_v26, %v3049_v12  ;;  %v3273_v48 = vmul.f32 %v3229_v9, %v11233_v52  ;;  %v11296_v40 = vld [vmem:[#allocation28_spill] sm:$0xff] }
 0x79b   :  { %v4514_v63 = vpack.c.bf16 %v4485_v22, %v4484_v24  ;;  %vm4391_vm10 = vcmp.gt.f32.partialorder %v4359_v33, 0.0  ;;  %v3272_v53 = vmul.f32 %v3229_v9, %v7867_v39  ;;  %v3400_v51 = vmul.f32 %v3357_v1, %v8123_v6  ;;  %v11295_v22 = vld [vmem:[#allocation15_spill] sm:$0xff] }
 0x79c   :  { %v5650_v59 = vsel %vm4391_vm10, 1.0, %v11159_v15  ;;  %v3305_v57 = vadd.f32 %v3273_v48, %v3177_v11  ;;  %v3401_v18 = vmul.f32 %v3357_v1, %v11294_v21  ;;  %v3528_v25 = vmul.f32 %v3485_v49, %v11133_v34  ;;  %v11297_v24 = vld [vmem:[#allocation83_spill] sm:$0xff]  ;;  %v11298_v11 = vld [vmem:[#allocation169_spill] sm:$0xff] }
 0x79d   :  { %6142 = vmatmul.mubr.msk.bf16.gmra.mrb[80].mxu1 %vm4533_vm8, %v4514_v63  ;;  %v9481_v16 = vsel %vm4941_vm5, %v5650_v59, 0.0  ;;  %4836 = vperm.xlu0 %6329, %v5650_v59   ;;  %v3529_v52 = vmul.f32 %v3485_v49, %v11131_v42  ;;  %v3613_v39 = vrot.slane %v11290_v36, %v11295_v22  ;;  %v3741_v6 = vrot.slane %v11290_v36, %v11138_v5  ;;  %v11299_v48 = vld [vmem:[#allocation163_spill] sm:$0xff]  ;;  %v11300_v59 = vld [vmem:[#allocation170_spill] sm:$0xff] }
 0x79e   :  { %6145 = vmatprep.mubr.msk.bf16.mxu1 %vm4533_vm8, %v4515_v50  ;;  %v3433_v7 = vadd.f32 %v3401_v18, %v3305_v57  ;;  %v3869_v0 = vrot.slane %v11290_v36, %v11139_v35  ;;  %v3997_v19 = vrot.slane %v11290_v36, %v11143_v41  ;;  %v4125_v10 = vrot.slane %v11290_v36, %v7320_v4  ;;  %v11301_v57 = vld [vmem:[#allocation165_spill] sm:$0xff] }
 0x79f   :  { %v3656_v31 = vmul.f32 %v3613_v39, %v11137_v13  ;;  %v3657_v28 = vmul.f32 %v3613_v39, %v11136_v2  ;;  %v3784_v43 = vmul.f32 %v3741_v6, %v11140_v20  ;;  %v4253_v38 = vrot.slane %v11290_v36, %v7323_v14 }
 0x7a0   :  { %v3561_v29 = vadd.f32 %v3529_v52, %v3433_v7  ;;  %v3785_v26 = vmul.f32 %v3741_v6, %v11102_v8  ;;  %v3912_v23 = vmul.f32 %v3869_v0, %v11142_v55  ;;  %v3913_v47 = vmul.f32 %v3869_v0, %v11104_v60  ;;  %v11302_v52 = vld [vmem:[#allocation167_spill] sm:$0xff]  ;;  %v11304_v0 = vld [vmem:[#allocation172_spill] sm:$0xff] }
 0x7a1   :  { %v4040_v9 = vmul.f32 %v3997_v19, %v11105_v37  ;;  %v4041_v12 = vmul.f32 %v3997_v19, %v11106_v58  ;;  %v9506_v1 = vmul.f32 %v4125_v10, %v8555_v46  ;;  %v4169_v49 = vmul.f32 %v4125_v10, %v11197_v44  ;;  %v11305_v10 = vld [vmem:[#allocation173_spill] sm:$0xff] }
 0x7a2   :  { %v3689_v62 = vadd.f32 %v3657_v28, %v3561_v29  ;;  %v9510_v32 = vmul.f32 %v4253_v38, %v11200_v3  ;;  %v4356_v36 = vadd.f32 %v4324_v54, %v11293_v17  ;;  %v4968_v33 = vadd.f32 %v11296_v40, %v4966_v45  ;;  %v11303_v54 = vld [vmem:[#allocation168_spill] sm:$0xff] }
 0x7a3   :  { %v3304_v50 = vadd.f32 %v3272_v53, %v11297_v24  ;;  %v3306_v63 = vadd.f32 %v11299_v48, %v11298_v11  ;;  %v3307_v18 = vadd.f32 %v11301_v57, %v11300_v59  ;;  %v3530_v39 = vmul.f32 %v11302_v52, %v11133_v34 }
 0x7a4   :  { %v3817_v6 = vadd.f32 %v3785_v26, %v3689_v62  ;;  %vm4388_vm11 = vcmp.gt.f32.partialorder %v4356_v36, 0.0  ;;  %v3531_v7 = vmul.f32 %v11302_v52, %v11131_v42  ;;  %v3658_v17 = vmul.f32 %v11303_v54, %v11137_v13  ;;  %v11306_v26 = vld [vmem:[#allocation164_spill] sm:$0xff] }
 0x7a5   :  { %v5647_v45 = vsel %vm4388_vm11, 1.0, %v11159_v15  ;;  %v3432_v53 = vadd.f32 %v3400_v51, %v3304_v50  ;;  %v3434_v19 = vadd.f32 %v11304_v0, %v3306_v63  ;;  %v3435_v28 = vadd.f32 %v11305_v10, %v3307_v18 }
 0x7a6   :  { %v3945_v29 = vadd.f32 %v3913_v47, %v3817_v6  ;;  %v4969_v40 = vsel %vm4941_vm5, %v5647_v45, 0.0  ;;  %4821 = vperm.xlu1 %6330, %v5647_v45   ;;  %v3659_v34 = vmul.f32 %v11303_v54, %v11136_v2  ;;  %v3745_v62 = vrot.slane %v11306_v26, %v11138_v5 }
 0x7a7   :  { %v4970_v36 = vadd.f32 %v4969_v40, %v4968_v33  ;;  %v3560_v24 = vadd.f32 %v3528_v25, %v3432_v53  ;;  %v3562_v11 = vadd.f32 %v3530_v39, %v3434_v19  ;;  %v3563_v48 = vadd.f32 %v3531_v7, %v3435_v28  ;;  %v11307_v28 = vld [vmem:[#allocation36_spill] sm:$0xff] }
 0x7a8   :  { %v4073_v59 = vadd.f32 %v4041_v12, %v3945_v29  ;;  %v3786_v51 = vmul.f32 %v3745_v62, %v11140_v20  ;;  %v3787_v50 = vmul.f32 %v3745_v62, %v11102_v8  ;;  %v3873_v47 = vrot.slane %v11306_v26, %v11139_v35 }
 0x7a9   :  { %v3688_v63 = vadd.f32 %v3656_v31, %v3560_v24  ;;  %v3690_v57 = vadd.f32 %v3658_v17, %v3562_v11  ;;  %v3691_v18 = vadd.f32 %v3659_v34, %v3563_v48  ;;  %v4001_v52 = vrot.slane %v11306_v26, %v11143_v41 }
 0x7aa   :  { %v4201_v6 = vadd.f32 %v4169_v49, %v4073_v59  ;;  %v4297_v33 = vmul.f32 %v4253_v38, %v11207_v56  ;;  %v3914_v25 = vmul.f32 %v3873_v47, %v11142_v55  ;;  %v4129_v12 = vrot.slane %v11306_v26, %v7320_v4  ;;  %v11308_v59 = vld [vmem:[#allocation128_spill] sm:$0xff] }
 0x7ab   :  { %v3816_v39 = vadd.f32 %v3784_v43, %v3688_v63  ;;  %v3818_v7 = vadd.f32 %v3786_v51, %v3690_v57  ;;  %v3819_v54 = vadd.f32 %v3787_v50, %v3691_v18  ;;  %v3915_v45 = vmul.f32 %v3873_v47, %v11104_v60  ;;  %v11311_v57 = vld [vmem:[#allocation176_spill] sm:$0xff] }
 0x7ac   :  { %v4329_v53 = vadd.f32 %v4297_v33, %v4201_v6  ;;  %v4042_v31 = vmul.f32 %v4001_v52, %v11105_v37  ;;  %v4043_v17 = vmul.f32 %v4001_v52, %v11106_v58  ;;  %v4170_v0 = vmul.f32 %v4129_v12, %v8555_v46 }
 0x7ad   :  { %v3944_v49 = vadd.f32 %v3912_v23, %v3816_v39  ;;  %v3946_v19 = vadd.f32 %v3914_v25, %v3818_v7  ;;  %v3947_v38 = vadd.f32 %v3915_v45, %v3819_v54  ;;  %v4257_v10 = vrot.slane %v11306_v26, %v7323_v14  ;;  %v11309_v26 = vld [vmem:[#allocation175_spill] sm:$0xff]  ;;  %v11312_v39 = vld [vmem:[#allocation102_spill] sm:$0xff] }
 0x7ae   :  { %v4361_v29 = vadd.f32 %v4329_v53, %v11307_v28  ;;  %v4171_v43 = vmul.f32 %v4129_v12, %v11197_v44  ;;  %v4358_v40 = vadd.f32 %v9453_v61, %v11291_v30  ;;  %v4972_v34 = vadd.f32 %v9463_v27, %v4970_v36  ;;  %v11313_v54 = vld [vmem:[#allocation174_spill] sm:$0xff] }
 0x7af   :  { %v4072_v62 = vadd.f32 %v4040_v9, %v3944_v49  ;;  %v4074_v24 = vadd.f32 %v4042_v31, %v3946_v19  ;;  %v4075_v11 = vadd.f32 %v4043_v17, %v3947_v38  ;;  %v4298_v48 = vmul.f32 %v4257_v10, %v11200_v3  ;;  %v11310_v9 = vld [vmem:[#allocation101_spill] sm:$0xff] }
 0x7b0   :  { %vm4393_vm12 = vcmp.gt.f32.partialorder %v4361_v29, 0.0  ;;  %v4299_v23 = vmul.f32 %v4257_v10, %v11207_v56  ;;  %vm4390_vm13 = vcmp.gt.f32.partialorder %v4358_v40, 0.0  ;;  %v3181_v51 = vadd.f32 %v11309_v26, %v11308_v59  ;;  %v11315_v17 = vld [vmem:[#allocation153_spill] sm:$0xff] }
 0x7b1   :  { %v5652_v50 = vsel %vm4393_vm12, 1.0, %v11159_v15  ;;  %v4200_v47 = vadd.f32 %v9506_v1, %v4072_v62  ;;  %v4202_v63 = vadd.f32 %v4170_v0, %v4074_v24  ;;  %v4203_v61 = vadd.f32 %v4171_v43, %v4075_v11  ;;  %v11316_v0 = vld [vmem:[#allocation162_spill] sm:$0xff] }
 0x7b2   :  { %4846 = vperm.xlu0 %6329, %v5652_v50   ;;  %v4489_v27 = vsel %vm82_vm1, %v4329_v53, %v11307_v28  ;;  %v5649_v30 = vsel %vm4390_vm13, 1.0, %v11159_v15  ;;  %v3309_v36 = vadd.f32 %v11310_v9, %v3181_v51  ;;  %v3405_v18 = vmul.f32 %v11311_v57, %v11294_v21  ;;  %v11314_v53 = vld [vmem:[#allocation11_spill] sm:$0xff]  ;;  %v11317_v43 = vld [vmem:[#allocation194_spill] sm:$0xff] }
 0x7b3   :  { %v4328_v52 = vadd.f32 %v9510_v32, %v4200_v47  ;;  %v9567_v6 = vadd.f32 %v4298_v48, %v4202_v63  ;;  %v4331_v33 = vadd.f32 %v4299_v23, %v4203_v61  ;;  %v4973_v1 = vsel %vm4941_vm5, %v5649_v30, 0.0  ;;  %4831 = vperm.xlu1 %6330, %v5649_v30  }
 0x7b4   :  { %v4974_v25 = vadd.f32 %v4973_v1, %v4972_v34  ;;  %v3437_v12 = vadd.f32 %v3405_v18, %v3309_v36  ;;  %v3533_v7 = vmul.f32 %v11312_v39, %v11131_v42  ;;  %v3621_v45 = vrot.slane %v11313_v54, %v11295_v22  ;;  %v11318_v18 = vld [vmem:[#allocation105_spill] sm:$0xff] }
 0x7b5   :  { %v4488_v31 = vsel %vm82_vm1, %v4328_v52, %v11314_v53  ;;  %v4490_v32 = vsel %vm82_vm1, %v9567_v6, %v11315_v17  ;;  %v4491_v49 = vsel %vm82_vm1, %v4331_v33, %v11316_v0  ;;  %v4363_v19 = vadd.f32 %v4331_v33, %v11316_v0  ;;  %v11319_v33 = vld [vmem:[#allocation106_spill] sm:$0xff] }
 0x7b6   :  { %v4516_v38 = vpack.c.bf16 %v4489_v27, %v4488_v31  ;;  %v4517_v10 = vpack.c.bf16 %v4491_v49, %v4490_v32  ;;  %v4976_v28 = vadd.f32 %v9481_v16, %v4974_v25  ;;  %v3565_v29 = vadd.f32 %v3533_v7, %v3437_v12  ;;  %v11320_v25 = vld [vmem:[#allocation185_spill] sm:$0xff]  ;;  %v11321_v12 = vld [vmem:[#allocation183_spill] sm:$0xff]  ;;  %v11322_v7 = vld [vmem:[#allocation186_spill] sm:$0xff] }
 0x7b7   :  { %v9585_v40 = vmul.f32 %v11317_v43, %v11137_v13  ;;  %vm4395_vm14 = vcmp.gt.f32.partialorder %v4363_v19, 0.0  ;;  %v3661_v34 = vmul.f32 %v3621_v45, %v11136_v2  ;;  %v3749_v62 = vrot.slane %v11313_v54, %v11138_v5  ;;  %v11324_v19 = vld [vmem:[#allocation181_spill] sm:$0xff] }
 0x7b8   :  { %6146 = vmatmul.mubr.msk.bf16.gmra.mrb[84].mxu1 %vm4533_vm8, %v4516_v38  ;;  %v9592_v24 = vsel %vm4395_vm14, 1.0, %v11159_v15  ;;  %v3660_v11 = vmul.f32 %v3621_v45, %v11137_v13  ;;  %v3877_v16 = vrot.slane %v11313_v54, %v11139_v35  ;;  %v4005_v48 = vrot.slane %v11313_v54, %v11143_v41  ;;  %v11323_v45 = vld [vmem:[#allocation184_spill] sm:$0xff] }
 0x7b9   :  { %v4979_v23 = vsel %vm4941_vm5, %v5652_v50, 0.0  ;;  %6149 = vmatprep.mubr.msk.bf16.mxu1 %vm4533_vm8, %v4517_v10  ;;  %4856 = vperm.xlu0 %6329, %v9592_v24   ;;  %v3693_v59 = vadd.f32 %v3661_v34, %v3565_v29  ;;  %v3789_v26 = vmul.f32 %v3749_v62, %v11102_v8  ;;  %v4133_v51 = vrot.slane %v11313_v54, %v7320_v4  ;;  %v11326_v10 = vld [vmem:[#allocation190_spill] sm:$0xff] }
 0x7ba   :  { %v3788_v47 = vmul.f32 %v3749_v62, %v11140_v20  ;;  %v3916_v63 = vmul.f32 %v3877_v16, %v11142_v55  ;;  %v3917_v61 = vmul.f32 %v3877_v16, %v11104_v60  ;;  %v4044_v27 = vmul.f32 %v4005_v48, %v11105_v37 }
 0x7bb   :  { %v3821_v30 = vadd.f32 %v3789_v26, %v3693_v59  ;;  %v4045_v50 = vmul.f32 %v4005_v48, %v11106_v58  ;;  %v4172_v9 = vmul.f32 %v4133_v51, %v8555_v46  ;;  %v4261_v36 = vrot.slane %v11313_v54, %v7323_v14  ;;  %v11327_v48 = vld [vmem:[#allocation182_spill] sm:$0xff] }
 0x7bc   :  { %v4360_v57 = vadd.f32 %v4328_v52, %v11314_v53  ;;  %v3564_v1 = vadd.f32 %v11319_v33, %v11318_v18  ;;  %v3566_v39 = vadd.f32 %v11321_v12, %v11320_v25  ;;  %v3567_v31 = vadd.f32 %v11323_v45, %v11322_v7  ;;  %v11325_v52 = vld [vmem:[#allocation187_spill] sm:$0xff] }
 0x7bd   :  { %v3949_v32 = vadd.f32 %v3917_v61, %v3821_v30  ;;  %v4173_v0 = vmul.f32 %v4133_v51, %v11197_v44  ;;  %v4301_v49 = vmul.f32 %v4261_v36, %v11207_v56  ;;  %v3790_v38 = vmul.f32 %v11324_v19, %v11140_v20 }
 0x7be   :  { %vm4392_vm15 = vcmp.gt.f32.partialorder %v4360_v57, 0.0  ;;  %v3692_v54 = vadd.f32 %v3660_v11, %v3564_v1  ;;  %v3694_v53 = vadd.f32 %v11325_v52, %v3566_v39  ;;  %v3695_v29 = vadd.f32 %v11326_v10, %v3567_v31 }
 0x7bf   :  { %v4077_v34 = vadd.f32 %v4045_v50, %v3949_v32  ;;  %v5651_v62 = vsel %vm4392_vm15, 1.0, %v11159_v15  ;;  %v3791_v16 = vmul.f32 %v11324_v19, %v11102_v8  ;;  %v3918_v59 = vmul.f32 %v11327_v48, %v11142_v55  ;;  %v11328_v50 = vld [vmem:[#allocation179_spill] sm:$0xff] }
 0x7c0   :  { %v4977_v26 = vsel %vm4941_vm5, %v5651_v62, 0.0  ;;  %4841 = vperm.xlu1 %6330, %v5651_v62   ;;  %v3820_v51 = vadd.f32 %v3788_v47, %v3692_v54  ;;  %v3822_v61 = vadd.f32 %v3790_v38, %v3694_v53  ;;  %v3919_v11 = vmul.f32 %v11327_v48, %v11104_v60  ;;  %v11331_v62 = vld [vmem:[#allocation122_spill] sm:$0xff] }
 0x7c1   :  { %v4205_v30 = vadd.f32 %v4173_v0, %v4077_v34  ;;  %v4978_v57 = vadd.f32 %v4977_v26, %v4976_v28  ;;  %v3823_v18 = vadd.f32 %v3791_v16, %v3695_v29  ;;  %v4009_v33 = vrot.slane %v11328_v50, %v11143_v41  ;;  %v11330_v34 = vld [vmem:[#allocation126_spill] sm:$0xff] }
 0x7c2   :  { %v3948_v1 = vadd.f32 %v3916_v63, %v3820_v51  ;;  %v3950_v25 = vadd.f32 %v3918_v59, %v3822_v61  ;;  %v4137_v12 = vrot.slane %v11328_v50, %v7320_v4  ;;  %v4265_v39 = vrot.slane %v11328_v50, %v7323_v14  ;;  %v11329_v63 = vld [vmem:[#allocation171_spill] sm:$0xff]  ;;  %v11332_v61 = vld [vmem:[#allocation124_spill] sm:$0xff] }
 0x7c3   :  { %v4333_v7 = vadd.f32 %v4301_v49, %v4205_v30  ;;  %v4980_v47 = vadd.f32 %v4979_v23, %v4978_v57  ;;  %v3951_v45 = vadd.f32 %v3919_v11, %v3823_v18  ;;  %v4046_v31 = vmul.f32 %v4009_v33, %v11105_v37  ;;  %v11334_v30 = vld [vmem:[#allocation92_spill] sm:$0xff] }
 0x7c4   :  { %v4300_v32 = vmul.f32 %v4261_v36, %v11200_v3  ;;  %v4076_v28 = vadd.f32 %v4044_v27, %v3948_v1  ;;  %v4047_v0 = vmul.f32 %v4009_v33, %v11106_v58  ;;  %v4174_v19 = vmul.f32 %v4137_v12, %v8555_v46  ;;  %v11335_v33 = vld [vmem:[#allocation116_spill] sm:$0xff] }
 0x7c5   :  { %v4365_v38 = vadd.f32 %v4333_v7, %v11329_v63  ;;  %v4493_v54 = vsel %vm82_vm1, %v4333_v7, %v11329_v63  ;;  %v4078_v52 = vadd.f32 %v4046_v31, %v3950_v25  ;;  %v4175_v53 = vmul.f32 %v4137_v12, %v11197_v44  ;;  %v11336_v12 = vld [vmem:[#allocation140_spill] sm:$0xff]  ;;  %v11337_v31 = vld [vmem:[#allocation178_spill] sm:$0xff] }
 0x7c6   :  { %v4204_v49 = vadd.f32 %v4172_v9, %v4076_v28  ;;  %v4079_v23 = vadd.f32 %v4047_v0, %v3951_v45  ;;  %v4302_v10 = vmul.f32 %v4265_v39, %v11200_v3  ;;  %v4362_v36 = vadd.f32 %v9567_v6, %v11315_v17  ;;  %v11333_v6 = vld [vmem:[#allocation191_spill] sm:$0xff]  ;;  %v11338_v28 = vld [vmem:[#allocation189_spill] sm:$0xff] }
 0x7c7   :  { %vm4397_vm0 = vcmp.gt.f32.partialorder %v4365_v38, 0.0  ;;  %v4206_v27 = vadd.f32 %v4174_v19, %v4078_v52  ;;  %v4303_v29 = vmul.f32 %v4265_v39, %v11207_v56  ;;  %v3185_v16 = vadd.f32 %v11331_v62, %v11330_v34  ;;  %v11339_v34 = vld [vmem:[#allocation121_spill] sm:$0xff]  ;;  %v11340_v62 = vld [vmem:[#allocation155_spill] sm:$0xff] }
 0x7c8   :  { %v5656_v48 = vsel %vm4397_vm0, 1.0, %v11159_v15  ;;  %v4332_v59 = vadd.f32 %v4300_v32, %v4204_v49  ;;  %v4207_v26 = vadd.f32 %v4175_v53, %v4079_v23  ;;  %vm4394_vm2 = vcmp.gt.f32.partialorder %v4362_v36, 0.0 }
 0x7c9   :  { %4866 = vperm.xlu0 %6329, %v5656_v48   ;;  %v9655_v9 = vadd.f32 %v4302_v10, %v4206_v27  ;;  %v5653_v51 = vsel %vm4394_vm2, 1.0, %v11159_v15  ;;  %v3313_v11 = vadd.f32 %v11332_v61, %v3185_v16  ;;  %v3409_v17 = vmul.f32 %v11333_v6, %v11294_v21  ;;  %v11343_v61 = vld [vmem:[#allocation201_spill] sm:$0xff] }
 0x7ca   :  { %v4492_v57 = vsel %vm82_vm1, %v4332_v59, %v11334_v30  ;;  %v4335_v18 = vadd.f32 %v4303_v29, %v4207_v26  ;;  %v4981_v50 = vsel %vm4941_vm5, %v5653_v51, 0.0  ;;  %4851 = vperm.xlu1 %6330, %v5653_v51   ;;  %v3537_v1 = vmul.f32 %v11335_v33, %v11131_v42  ;;  %v11342_v26 = vld [vmem:[#allocation197_spill] sm:$0xff] }
 0x7cb   :  { %v4518_v25 = vpack.c.bf16 %v4493_v54, %v4492_v57  ;;  %v4494_v39 = vsel %vm82_vm1, %v9655_v9, %v11336_v12  ;;  %v4982_v7 = vadd.f32 %v4981_v50, %v4980_v47  ;;  %v3441_v45 = vadd.f32 %v3409_v17, %v3313_v11  ;;  %v11344_v11 = vld [vmem:[#allocation198_spill] sm:$0xff] }
 0x7cc   :  { %v4495_v21 = vsel %vm82_vm1, %v4335_v18, %v11337_v31  ;;  %v4367_v32 = vadd.f32 %v4335_v18, %v11337_v31  ;;  %v3629_v0 = vrot.slane %v11338_v28, %v11295_v22  ;;  %v3757_v19 = vrot.slane %v11338_v28, %v11138_v5 }
 0x7cd   :  { %v3667_v42 = vmul.f32 %v11317_v43, %v11136_v2  ;;  %6150 = vmatmul.mubr.msk.bf16.gmra.mrb[88].mxu1 %vm4533_vm8, %v4518_v25  ;;  %v4519_v63 = vpack.c.bf16 %v4495_v21, %v4494_v39  ;;  %v3569_v38 = vadd.f32 %v3537_v1, %v3441_v45  ;;  %v3885_v47 = vrot.slane %v11338_v28, %v11139_v35  ;;  %v11345_v39 = vld [vmem:[#allocation195_spill] sm:$0xff] }
 0x7ce   :  { %v4983_v54 = vsel %vm4941_vm5, %v9592_v24, 0.0  ;;  %v9684_v52 = vsel %vm4941_vm5, %v5656_v48, 0.0  ;;  %vm4399_vm4 = vcmp.gt.f32.partialorder %v4367_v32, 0.0  ;;  %v3665_v22 = vmul.f32 %v3629_v0, %v11136_v2  ;;  %v11341_v48 = vld [vmem:[#allocation200_spill] sm:$0xff] }
 0x7cf   :  { %6153 = vmatprep.mubr.msk.bf16.mxu1 %vm4533_vm8, %v4519_v63  ;;  %v9689_v5 = vsel %vm4399_vm4, 1.0, %v11159_v15  ;;  %v3664_v43 = vmul.f32 %v3629_v0, %v11137_v13  ;;  %v3792_v53 = vmul.f32 %v3757_v19, %v11140_v20  ;;  %v4013_v35 = vrot.slane %v11338_v28, %v11143_v41 }
 0x7d0   :  { %4876 = vperm.xlu0 %6329, %v9689_v5   ;;  %v3697_v24 = vadd.f32 %v3665_v22, %v3569_v38  ;;  %v3793_v49 = vmul.f32 %v3757_v19, %v11102_v8  ;;  %v3920_v23 = vmul.f32 %v3885_v47, %v11142_v55  ;;  %v3921_v2 = vmul.f32 %v3885_v47, %v11104_v60 }
 0x7d1   :  { %v4141_v10 = vrot.slane %v11338_v28, %v7320_v4  ;;  %v4269_v13 = vrot.slane %v11338_v28, %v7323_v14  ;;  %v4364_v36 = vadd.f32 %v4332_v59, %v11334_v30  ;;  %v4984_v27 = vadd.f32 %v4983_v54, %v4982_v7  ;;  %v11346_v28 = vld [vmem:[#allocation196_spill] sm:$0xff] }
 0x7d2   :  { %v3825_v29 = vadd.f32 %v3793_v49, %v3697_v24  ;;  %v3568_v16 = vadd.f32 %v11340_v62, %v11339_v34  ;;  %v3570_v51 = vadd.f32 %v11342_v26, %v11341_v48  ;;  %v3571_v6 = vadd.f32 %v11344_v11, %v11343_v61 }
 0x7d3   :  { %v4048_v17 = vmul.f32 %v4013_v35, %v11105_v37  ;;  %v4049_v57 = vmul.f32 %v4013_v35, %v11106_v58  ;;  %v4177_v18 = vmul.f32 %v4141_v10, %v11197_v44  ;;  %v4305_v50 = vmul.f32 %v4269_v13, %v11207_v56 }
 0x7d4   :  { %v3953_v59 = vadd.f32 %v3921_v2, %v3825_v29  ;;  %vm4396_vm6 = vcmp.gt.f32.partialorder %v4364_v36, 0.0  ;;  %v3696_v30 = vadd.f32 %v3664_v43, %v3568_v16  ;;  %v3698_v33 = vadd.f32 %v9585_v40, %v3570_v51  ;;  %v11348_v36 = vld [vmem:[#allocation188_spill] sm:$0xff] }
 0x7d5   :  { %v5655_v1 = vsel %vm4396_vm6, 1.0, %v11159_v15  ;;  %v3699_v25 = vadd.f32 %v3667_v42, %v3571_v6  ;;  %v3794_v7 = vmul.f32 %v11345_v39, %v11140_v20  ;;  %v3795_v45 = vmul.f32 %v11345_v39, %v11102_v8  ;;  %v11347_v20 = vld [vmem:[#allocation160_spill] sm:$0xff] }
 0x7d6   :  { %v4081_v31 = vadd.f32 %v4049_v57, %v3953_v59  ;;  %v4985_v21 = vsel %vm4941_vm5, %v5655_v1, 0.0  ;;  %4861 = vperm.xlu1 %6330, %v5655_v1   ;;  %v3824_v32 = vadd.f32 %v3792_v53, %v3696_v30  ;;  %v3922_v0 = vmul.f32 %v11346_v28, %v11142_v55  ;;  %v11355_v39 = vld [vmem:[#allocation104_spill] sm:$0xff] }
 0x7d7   :  { %v4986_v19 = vadd.f32 %v4985_v21, %v4984_v27  ;;  %v3826_v63 = vadd.f32 %v3794_v7, %v3698_v33  ;;  %v3827_v40 = vadd.f32 %v3795_v45, %v3699_v25  ;;  %v3923_v42 = vmul.f32 %v11346_v28, %v11104_v60  ;;  %v11353_v33 = vld [vmem:[#allocation127_spill] sm:$0xff]  ;;  %v11354_v25 = vld [vmem:[#allocation125_spill] sm:$0xff] }
 0x7d8   :  { %v4209_v38 = vadd.f32 %v4177_v18, %v4081_v31  ;;  %v3952_v47 = vadd.f32 %v3920_v23, %v3824_v32  ;;  %v4017_v54 = vrot.slane %v11347_v20, %v11143_v41  ;;  %v4145_v8 = vrot.slane %v11347_v20, %v7320_v4  ;;  %v11352_v18 = vld [vmem:[#allocation180_spill] sm:$0xff] }
 0x7d9   :  { %v3954_v22 = vadd.f32 %v3922_v0, %v3826_v63  ;;  %v3955_v43 = vadd.f32 %v3923_v42, %v3827_v40  ;;  %v4273_v53 = vrot.slane %v11347_v20, %v7323_v14  ;;  %v4366_v55 = vadd.f32 %v9655_v9, %v11336_v12 }
 0x7da   :  { %v4176_v35 = vmul.f32 %v4141_v10, %v8555_v46  ;;  %v4337_v24 = vadd.f32 %v4305_v50, %v4209_v38  ;;  %v4080_v60 = vadd.f32 %v4048_v17, %v3952_v47  ;;  %v4050_v49 = vmul.f32 %v4017_v54, %v11105_v37  ;;  %v11350_v17 = vld [vmem:[#allocation117_spill] sm:$0xff] }
 0x7db   :  { %v4304_v23 = vmul.f32 %v4269_v13, %v11200_v3  ;;  %v4051_v41 = vmul.f32 %v4017_v54, %v11106_v58  ;;  %v4178_v4 = vmul.f32 %v4145_v8, %v8555_v46  ;;  %v4179_v2 = vmul.f32 %v4145_v8, %v11197_v44  ;;  %v11356_v54 = vld [vmem:[#allocation192_spill] sm:$0xff] }
 0x7dc   :  { %v4369_v27 = vadd.f32 %v4337_v24, %v11348_v36  ;;  %v4208_v14 = vadd.f32 %v4176_v35, %v4080_v60  ;;  %v4082_v29 = vadd.f32 %v4050_v49, %v3954_v22  ;;  %v4306_v9 = vmul.f32 %v4273_v53, %v11200_v3  ;;  %v11349_v3 = vld [vmem:[#allocation107_spill] sm:$0xff]  ;;  %v11357_v8 = vld [vmem:[#allocation72_spill] sm:$0xff] }
 0x7dd   :  { %v4497_v12 = vsel %vm82_vm1, %v4337_v24, %v11348_v36  ;;  %v4083_v10 = vadd.f32 %v4051_v41, %v3955_v43  ;;  %vm4398_vm7 = vcmp.gt.f32.partialorder %v4366_v55, 0.0  ;;  %v4988_v37 = vadd.f32 %v9684_v52, %v4986_v19  ;;  %v11359_v24 = vld [vmem:[#allocation3_spill] sm:$0xff] }
 0x7de   :  { %vm4401_vm9 = vcmp.gt.f32.partialorder %v4369_v27, 0.0  ;;  %v4336_v13 = vadd.f32 %v4304_v23, %v4208_v14  ;;  %v4210_v58 = vadd.f32 %v4178_v4, %v4082_v29  ;;  %v5657_v46 = vsel %vm4398_vm7, 1.0, %v11159_v15 }
 0x7df   :  { %v5660_v44 = vsel %vm4401_vm9, 1.0, %v11159_v15  ;;  %v4211_v34 = vadd.f32 %v4179_v2, %v4083_v10  ;;  %v4307_v62 = vmul.f32 %v4273_v53, %v11207_v56  ;;  %v4989_v16 = vsel %vm4941_vm5, %v5657_v46, 0.0  ;;  %4871 = vperm.xlu1 %6330, %v5657_v46   ;;  %v11351_v56 = vld [vmem:[#allocation199_spill] sm:$0xff]  ;;  %v9785_v46 = vld [vmem:[%s10521_s18] ss:$0 sm:$0xff] }
 0x7e0   :  { %4886 = vperm.xlu0 %6329, %v5660_v44   ;;  %v4496_v48 = vsel %vm82_vm1, %v4336_v13, %v11349_v3  ;;  %v4338_v26 = vadd.f32 %v4306_v9, %v4210_v58  ;;  %v4990_v51 = vadd.f32 %v4989_v16, %v4988_v37  ;;  %v4991_v52 = vsel %vm4941_vm5, %v9689_v5, 0.0  ;;  %v6333_v58 = vpop.permute.xlu1 %6332 }
 0x7e1   :  { %v4520_v61 = vpack.c.bf16 %v4497_v12, %v4496_v48  ;;  %v4339_v11 = vadd.f32 %v4307_v62, %v4211_v34  ;;  %v4368_v6 = vadd.f32 %v4336_v13, %v11349_v3  ;;  %v4373_v50 = vadd.f32 %v11352_v18, %v11351_v56 }
 0x7e2   :  { %v4498_v57 = vsel %vm82_vm1, %v4338_v26, %v11350_v17  ;;  %v4992_v59 = vadd.f32 %v4991_v52, %v4990_v51  ;;  %v4370_v30 = vadd.f32 %v4338_v26, %v11350_v17  ;;  %v4372_v7 = vadd.f32 %v11355_v39, %v11354_v25  ;;  %v9802_v17 = vpop.permute.xlu0 %4761 }
 0x7e3   :  { %6154 = vmatmul.mubr.msk.bf16.gmra.mrb[92].mxu1 %vm4533_vm8, %v4520_v61  ;;  %v4499_v1 = vsel %vm82_vm1, %v4339_v11, %v11353_v33  ;;  %v4371_v5 = vadd.f32 %v4339_v11, %v11353_v33  ;;  %vm4400_vm10 = vcmp.gt.f32.partialorder %v4368_v6, 0.0  ;;  %v4995_v19 = vsel %vm4941_vm5, %v5660_v44, 0.0 }
 0x7e4   :  { %v4521_v45 = vpack.c.bf16 %v4499_v1, %v4498_v57  ;;  %v5659_v31 = vsel %vm4400_vm10, 1.0, %v11159_v15  ;;  %vm4402_vm11 = vcmp.gt.f32.partialorder %v4370_v30, 0.0  ;;  %vm4405_vm13 = vcmp.gt.f32.partialorder %v4373_v50, 0.0  ;;  %v9804_v57 = vpop.permute.xlu1 %4766 }
 0x7e5   :  { %vm4403_vm12 = vcmp.gt.f32.partialorder %v4371_v5, 0.0  ;;  %v4993_v21 = vsel %vm4941_vm5, %v5659_v31, 0.0  ;;  %4881 = vperm.xlu1 %6330, %v5659_v31   ;;  %v5661_v0 = vsel %vm4402_vm11, 1.0, %v11159_v15  ;;  %vm4404_vm14 = vcmp.gt.f32.partialorder %v4372_v7, 0.0 }
 0x7e6   :  { %6157 = vmatprep.mubr.msk.bf16.mxu1 %vm4533_vm8, %v4521_v45  ;;  %v5662_v32 = vsel %vm4403_vm12, 1.0, %v11159_v15  ;;  %v4994_v28 = vadd.f32 %v4993_v21, %v4992_v59  ;;  %v4997_v40 = vsel %vm4941_vm5, %v5661_v0, 0.0  ;;  %v5664_v42 = vsel %vm4405_vm13, 1.0, %v11159_v15  ;;  %v9826_v31 = vpop.permute.xlu0 %4776 }
 0x7e7   :  { %4896 = vperm.xlu0 %6329, %v5662_v32   ;;  %v5663_v47 = vsel %vm4404_vm14, 1.0, %v11159_v15  ;;  %v4999_v20 = vsel %vm4941_vm5, %v5662_v32, 0.0  ;;  %v11358_v22 = vpack.c.bf16 %v11356_v54, %v11357_v8  ;;  %v5003_v35 = vsel %vm4941_vm5, %v5664_v42, 0.0 }
 0x7e8   :  { %v4996_v63 = vadd.f32 %v4995_v19, %v4994_v28  ;;  %v5001_v53 = vsel %vm4941_vm5, %v5663_v47, 0.0  ;;  %v9788_v34 = vunpack.i.h.bf16 %v6333_v58  ;;  %v9791_v16 = vunpack.i.l.bf16 %v6333_v58  ;;  %v9818_v5 = vpop.permute.xlu1 %4771 }
 0x7e9   :  { %4891 = vperm.xlu1 %6330, %v5661_v0   ;;  %vm5521_vm5 = vcmask 7168  }
 0x7ea   :  { %v4998_v38 = vadd.f32 %v4997_v40, %v4996_v63  ;;  %v9843_v54 = vpop.permute.xlu0 %4786 }
 0x7eb   :  { %4906 = vperm.xlu0 %6329, %v5664_v42   ;;  %6158 = vmatmul.mubr.msk.bf16.gmra.mrb[96].mxu1 %vm4533_vm8, %v11358_v22 }
 0x7ec   :  { %v5000_v43 = vadd.f32 %v4999_v20, %v4998_v38  ;;  %v9836_v40 = vpop.permute.xlu1 %4781 }
 0x7ed   :  { %4901 = vperm.xlu1 %6330, %v5663_v47  }
 0x7ee   :  { %v5002_v55 = vadd.f32 %v5001_v53, %v5000_v43 }
 0x7ef   :  { %5498 = vrot.lane.b32.xlu0 %v11359_v24, %s6350_s13 }
 0x7f0   :  { %v5004_v60 = vadd.f32 %v5003_v35, %v5002_v55 }
 0x7f2   :  { %v5005_v15 = vrot.slane %v5004_v60, 4 }
 0x7f4   :  { %v5006_v49 = vadd.f32 %v5005_v15, %v5004_v60 }
 0x7f6   :  { %v5007_v23 = vrot.slane %v5006_v49, 2 }
 0x7f7   :  { %v9850_v43 = vpop.permute.xlu1 %4791 }
 0x7f8   :  { %v5008_v41 = vadd.f32 %v5007_v23, %v5006_v49  ;;  %11360 = vst [vmem:[#allocation21_spill] sm:$0xff] %v9850_v43  ;;  %v9858_v23 = vpop.permute.xlu0 %4796 }
 0x7f9   :  { %11361 = vst [vmem:[#allocation38_spill] sm:$0xff] %v9858_v23 }
 0x7fa   :  { %v5009_v4 = vrot.slane %v5008_v41, 1 }
 0x7fc   :  { %v5010_v2 = vadd.f32 %v5009_v4, %v5008_v41  ;;  %v9875_v58 = vpop.permute.xlu0 %4806 }
 0x7fd   :  { %11363 = vst [vmem:[#allocation42_spill] sm:$0xff] %v9875_v58 }
 0x7fe   :  { %v5011_v36 = vmax.f32 %v5010_v2, 1.0 }
 0x800   :  { %5083 = vperm.xlu1 %6330, %v5011_v36  }
 0x814   :  { %v6131_v27 = vpop.f32.mrb[68].mxu1 }
 0x815   :  { %v4622_v14 = vpop.f32.mrb[69].mxu1  ;;  %v4631_v26 = vadd.f32 %v6131_v27, %v9785_v46 }
 0x816   :  { %v6132_v29 = vpop.f32.mrb[70].mxu1  ;;  %v4623_v62 = vadd.f32 %v9785_v46, %v4622_v14 }
 0x817   :  { %v4625_v9 = vpop.f32.mrb[71].mxu1  ;;  %v9807_v56 = vmul.f32 %v9802_v17, %v4631_v26  ;;  %v4634_v50 = vadd.f32 %v6132_v29, %v9785_v46 }
 0x818   :  { %v4626_v44 = vadd.f32 %v9785_v46, %v4625_v9  ;;  %v9798_v51 = vmul.f32 %v9791_v16, %v4623_v62  ;;  %v9868_v9 = vpop.permute.xlu1 %4801 }
 0x819   :  { %v5015_v33 = vsel %vm82_vm1, %v9807_v56, 0.0  ;;  %v9816_v1 = vmul.f32 %v9804_v57, %v4634_v50  ;;  %11362 = vst [vmem:[#allocation41_spill] sm:$0xff] %v9868_v9 }
 0x81a   :  { %v9794_v3 = vmul.f32 %v9788_v34, %v4626_v44  ;;  %v5012_v18 = vsel %vm82_vm1, %v9798_v51, 0.0 }
 0x81b   :  { %v5017_v45 = vsel %vm82_vm1, %v9816_v1, 0.0 }
 0x81c   :  { %v5013_v11 = vsel %vm82_vm1, %v9794_v3, 0.0 }
 0x81d   :  { %v5014_v59 = vadd.f32 %v5013_v11, %v5012_v18 }
 0x81f   :  { %v5016_v25 = vadd.f32 %v5015_v33, %v5014_v59 }
 0x821   :  { %v5018_v21 = vadd.f32 %v5017_v45, %v5016_v25 }
 0x836   :  { %v6135_v12 = vpop.f32.mrb[72].mxu1 }
 0x837   :  { %v4638_v10 = vpop.f32.mrb[73].mxu1  ;;  %v4647_v0 = vadd.f32 %v6135_v12, %v9785_v46 }
 0x838   :  { %v6136_v37 = vpop.f32.mrb[74].mxu1  ;;  %v4639_v30 = vadd.f32 %v9785_v46, %v4638_v10 }
 0x839   :  { %v4641_v13 = vpop.f32.mrb[75].mxu1  ;;  %v9839_v42 = vmul.f32 %v9836_v40, %v4647_v0  ;;  %v4650_v38 = vadd.f32 %v6136_v37, %v9785_v46 }
 0x83a   :  { %v9821_v39 = vmul.f32 %v9818_v5, %v4639_v30  ;;  %v4642_v7 = vadd.f32 %v9785_v46, %v4641_v13 }
 0x83b   :  { %v5023_v8 = vsel %vm82_vm1, %v9839_v42, 0.0  ;;  %v9848_v22 = vmul.f32 %v9843_v54, %v4650_v38 }
 0x83c   :  { %v5019_v32 = vsel %vm82_vm1, %v9821_v39, 0.0  ;;  %v9831_v28 = vmul.f32 %v9826_v31, %v4642_v7 }
 0x83d   :  { %v5020_v19 = vadd.f32 %v5019_v32, %v5018_v21  ;;  %v5025_v15 = vsel %vm82_vm1, %v9848_v22, 0.0 }
 0x83e   :  { %v5021_v63 = vsel %vm82_vm1, %v9831_v28, 0.0 }
 0x83f   :  { %v5022_v47 = vadd.f32 %v5021_v63, %v5020_v19 }
 0x841   :  { %v5024_v53 = vadd.f32 %v5023_v8, %v5022_v47 }
 0x843   :  { %v5026_v41 = vadd.f32 %v5025_v15, %v5024_v53 }
 0x855   :  { %v6139_v48 = vpop.f32.mrb[76].mxu1 }
 0x856   :  { %v4654_v52 = vpop.f32.mrb[77].mxu1  ;;  %v4663_v27 = vadd.f32 %v6139_v48, %v9785_v46  ;;  %v9882_v48 = vpop.permute.xlu1 %4811 }
 0x857   :  { %v6140_v61 = vpop.f32.mrb[78].mxu1  ;;  %v4655_v20 = vadd.f32 %v9785_v46, %v4654_v52  ;;  %11364 = vst [vmem:[#allocation89_spill] sm:$0xff] %v9882_v48 }
 0x858   :  { %v4657_v6 = vpop.f32.mrb[79].mxu1  ;;  %v9871_v12 = vmul.f32 %v9868_v9, %v4663_v27  ;;  %v4666_v10 = vadd.f32 %v6140_v61, %v9785_v46 }
 0x859   :  { %v9853_v55 = vmul.f32 %v9850_v43, %v4655_v20  ;;  %v4658_v35 = vadd.f32 %v9785_v46, %v4657_v6  ;;  %v9890_v6 = vpop.permute.xlu0 %4816 }
 0x85a   :  { %v5031_v44 = vsel %vm82_vm1, %v9871_v12, 0.0  ;;  %v9880_v62 = vmul.f32 %v9875_v58, %v4666_v10  ;;  %11365 = vst [vmem:[#allocation43_spill] sm:$0xff] %v9890_v6  ;;  %v9900_v7 = vpop.permute.xlu1 %4821 }
 0x85b   :  { %v5027_v2 = vsel %vm82_vm1, %v9853_v55, 0.0  ;;  %v9863_v36 = vmul.f32 %v9858_v23, %v4658_v35  ;;  %11366 = vst [vmem:[#allocation148_spill] sm:$0xff] %v9900_v7 }
 0x85c   :  { %v5028_v14 = vadd.f32 %v5027_v2, %v5026_v41  ;;  %v5033_v61 = vsel %vm82_vm1, %v9880_v62, 0.0 }
 0x85d   :  { %v5029_v29 = vsel %vm82_vm1, %v9863_v36, 0.0  ;;  %v9906_v63 = vpop.permute.xlu0 %4826 }
 0x85e   :  { %v5030_v37 = vadd.f32 %v5029_v29, %v5028_v14  ;;  %11367 = vst [vmem:[#allocation40_spill] sm:$0xff] %v9906_v63  ;;  %v9914_v35 = vpop.permute.xlu1 %4831 }
 0x860   :  { %v5032_v26 = vadd.f32 %v5031_v44, %v5030_v37 }
 0x861   :  { %v9922_v41 = vpop.permute.xlu0 %4836 }
 0x862   :  { %v5034_v18 = vadd.f32 %v5033_v61, %v5032_v26  ;;  %11368 = vst [vmem:[#allocation166_spill] sm:$0xff] %v9922_v41  ;;  %v9932_v37 = vpop.permute.xlu1 %4841 }
 0x863   :  { %11369 = vst [vmem:[#allocation161_spill] sm:$0xff] %v9932_v37 }
 0x865   :  { %v9938_v26 = vpop.permute.xlu0 %4846 }
 0x866   :  { %11370 = vst [vmem:[#allocation16_spill] sm:$0xff] %v9938_v26 }
 0x870   :  { %v6143_v24 = vpop.f32.mrb[80].mxu1 }
 0x871   :  { %v4670_v60 = vpop.f32.mrb[81].mxu1  ;;  %v4679_v30 = vadd.f32 %v6143_v24, %v9785_v46 }
 0x872   :  { %v6144_v49 = vpop.f32.mrb[82].mxu1  ;;  %v4671_v13 = vadd.f32 %v9785_v46, %v4670_v60 }
 0x873   :  { %v4673_v4 = vpop.f32.mrb[83].mxu1  ;;  %v9903_v45 = vmul.f32 %v9900_v7, %v4679_v30  ;;  %v4682_v21 = vadd.f32 %v6144_v49, %v9785_v46 }
 0x874   :  { %v9885_v52 = vmul.f32 %v9882_v48, %v4671_v13  ;;  %v4674_v11 = vadd.f32 %v9785_v46, %v4673_v4 }
 0x875   :  { %v5039_v20 = vsel %vm82_vm1, %v9903_v45, 0.0  ;;  %v9912_v8 = vmul.f32 %v9906_v63, %v4682_v21 }
 0x876   :  { %v5035_v50 = vsel %vm82_vm1, %v9885_v52, 0.0  ;;  %v9895_v59 = vmul.f32 %v9890_v6, %v4674_v11 }
 0x877   :  { %v5036_v33 = vadd.f32 %v5035_v50, %v5034_v18  ;;  %v5041_v49 = vsel %vm82_vm1, %v9912_v8, 0.0  ;;  %v9945_v50 = vpop.permute.xlu1 %4851 }
 0x878   :  { %v5037_v25 = vsel %vm82_vm1, %v9895_v59, 0.0  ;;  %11371 = vst [vmem:[#allocation19_spill] sm:$0xff] %v9945_v50 }
 0x879   :  { %v5038_v32 = vadd.f32 %v5037_v25, %v5036_v33  ;;  %v9947_v25 = vpop.permute.xlu0 %4856 }
 0x87a   :  { %11372 = vst [vmem:[#allocation159_spill] sm:$0xff] %v9947_v25 }
 0x87b   :  { %v5040_v24 = vadd.f32 %v5039_v20, %v5038_v32 }
 0x87d   :  { %v5042_v4 = vadd.f32 %v5041_v49, %v5040_v24  ;;  %v9958_v49 = vpop.permute.xlu1 %4861 }
 0x87e   :  { %11373 = vst [vmem:[#allocation177_spill] sm:$0xff] %v9958_v49 }
 0x88b   :  { %v6147_v0 = vpop.f32.mrb[84].mxu1 }
 0x88c   :  { %v4686_v19 = vpop.f32.mrb[85].mxu1  ;;  %v4695_v14 = vadd.f32 %v6147_v0, %v9785_v46 }
 0x88d   :  { %v4687_v38 = vadd.f32 %v9785_v46, %v4686_v19  ;;  %v6148_v47 = vpop.f32.mrb[86].mxu1 }
 0x88e   :  { %v4689_v53 = vpop.f32.mrb[87].mxu1  ;;  %v9935_v13 = vmul.f32 %v9932_v37, %v4695_v14  ;;  %v4698_v44 = vadd.f32 %v6148_v47, %v9785_v46 }
 0x88f   :  { %v9917_v60 = vmul.f32 %v9914_v35, %v4687_v38  ;;  %v4690_v15 = vadd.f32 %v9785_v46, %v4689_v53 }
 0x890   :  { %v5047_v61 = vsel %vm82_vm1, %v9935_v13, 0.0  ;;  %v9943_v18 = vmul.f32 %v9938_v26, %v4698_v44 }
 0x891   :  { %v5043_v2 = vsel %vm82_vm1, %v9917_v60, 0.0  ;;  %v9927_v27 = vmul.f32 %v9922_v41, %v4690_v15 }
 0x892   :  { %v5044_v29 = vadd.f32 %v5043_v2, %v5042_v4  ;;  %v5049_v32 = vsel %vm82_vm1, %v9943_v18, 0.0 }
 0x893   :  { %v5045_v10 = vsel %vm82_vm1, %v9927_v27, 0.0 }
 0x894   :  { %v5046_v11 = vadd.f32 %v5045_v10, %v5044_v29  ;;  %v9968_v29 = vpop.permute.xlu0 %4866 }
 0x895   :  { %11374 = vst [vmem:[#allocation20_spill] sm:$0xff] %v9968_v29 }
 0x896   :  { %v5048_v30 = vadd.f32 %v5047_v61, %v5046_v11 }
 0x898   :  { %v5050_v47 = vadd.f32 %v5049_v32, %v5048_v30 }
 0x8a0   :  { %v6151_v33 = vpop.f32.mrb[88].mxu1 }
 0x8a1   :  { %v4702_v21 = vpop.f32.mrb[89].mxu1  ;;  %v4711_v0 = vadd.f32 %v6151_v33, %v9785_v46 }
 0x8a2   :  { %v4703_v19 = vadd.f32 %v9785_v46, %v4702_v21  ;;  %v6152_v38 = vpop.f32.mrb[90].mxu1 }
 0x8a3   :  { %v4705_v20 = vpop.f32.mrb[91].mxu1  ;;  %v4714_v24 = vadd.f32 %v6152_v38, %v9785_v46  ;;  %v9961_v4 = vmul.f32 %v9958_v49, %v4711_v0  ;;  %v9979_v0 = vpop.permute.xlu1 %4871 }
 0x8a4   :  { %v9954_v53 = vmul.f32 %v9945_v50, %v4703_v19  ;;  %v4706_v15 = vadd.f32 %v9785_v46, %v4705_v20  ;;  %11375 = vst [vmem:[#allocation29_spill] sm:$0xff] %v9979_v0  ;;  %v9981_v19 = vpop.permute.xlu0 %4876 }
 0x8a5   :  { %v9971_v44 = vmul.f32 %v9968_v29, %v4714_v24  ;;  %v5055_v30 = vsel %vm82_vm1, %v9961_v4, 0.0  ;;  %11376 = vst [vmem:[#allocation39_spill] sm:$0xff] %v9981_v19 }
 0x8a6   :  { %v5051_v2 = vsel %vm82_vm1, %v9954_v53, 0.0  ;;  %v9966_v14 = vmul.f32 %v9947_v25, %v4706_v15 }
 0x8a7   :  { %v5052_v10 = vadd.f32 %v5051_v2, %v5050_v47  ;;  %v5057_v21 = vsel %vm82_vm1, %v9971_v44, 0.0  ;;  %v9983_v47 = vpop.permute.xlu1 %4881 }
 0x8a8   :  { %v5053_v11 = vsel %vm82_vm1, %v9966_v14, 0.0  ;;  %11377 = vst [vmem:[#allocation57_spill] sm:$0xff] %v9983_v47 }
 0x8a9   :  { %v5054_v61 = vadd.f32 %v5053_v11, %v5052_v10  ;;  %v9987_v10 = vpop.permute.xlu0 %4886 }
 0x8aa   :  { %11378 = vst [vmem:[#allocation5_spill] sm:$0xff] %v9987_v10 }
 0x8ab   :  { %v5056_v33 = vadd.f32 %v5055_v30, %v5054_v61 }
 0x8ad   :  { %v5058_v32 = vadd.f32 %v5057_v21, %v5056_v33 }
 0x8b6   :  { %v6155_v38 = vpop.f32.mrb[92].mxu1 }
 0x8b7   :  { %v4718_v20 = vpop.f32.mrb[93].mxu1  ;;  %v4727_v24 = vadd.f32 %v6155_v38, %v9785_v46 }
 0x8b8   :  { %v4719_v15 = vadd.f32 %v9785_v46, %v4718_v20  ;;  %v6156_v2 = vpop.f32.mrb[94].mxu1  ;;  %v10002_v20 = vpop.permute.xlu1 %4891 }
 0x8b9   :  { %v4721_v11 = vpop.f32.mrb[95].mxu1  ;;  %v4730_v30 = vadd.f32 %v6156_v2, %v9785_v46  ;;  %v9995_v21 = vmul.f32 %v9983_v47, %v4727_v24  ;;  %11379 = vst [vmem:[#allocation65_spill] sm:$0xff] %v10002_v20 }
 0x8ba   :  { %v9990_v61 = vmul.f32 %v9979_v0, %v4719_v15  ;;  %v4722_v33 = vadd.f32 %v9785_v46, %v4721_v11  ;;  %v10009_v11 = vpop.permute.xlu0 %4896 }
 0x8bb   :  { %v10005_v25 = vmul.f32 %v9987_v10, %v4730_v30  ;;  %11380 = vst [vmem:[#allocation55_spill] sm:$0xff] %v10009_v11  ;;  %v5063_v0 = vsel %vm82_vm1, %v9995_v21, 0.0 }
 0x8bc   :  { %v5059_v29 = vsel %vm82_vm1, %v9990_v61, 0.0  ;;  %v10000_v38 = vmul.f32 %v9981_v19, %v4722_v33 }
 0x8bd   :  { %v5060_v49 = vadd.f32 %v5059_v29, %v5058_v32  ;;  %v5065_v30 = vsel %vm82_vm1, %v10005_v25, 0.0 }
 0x8be   :  { %v5061_v15 = vsel %vm82_vm1, %v10000_v38, 0.0  ;;  %v6159_v2 = vpop.f32.mrb[96].mxu1 }
 0x8bf   :  { %v5062_v24 = vadd.f32 %v5061_v15, %v5060_v49  ;;  %v4734_v47 = vpop.f32.mrb[97].mxu1  ;;  %v4743_v33 = vadd.f32 %v6159_v2, %v9785_v46  ;;  %v10022_v15 = vpop.permute.xlu1 %4901 }
 0x8c0   :  { %v4735_v19 = vadd.f32 %v9785_v46, %v4734_v47  ;;  %v6160_v50 = vpop.f32.mrb[98].mxu1  ;;  %11381 = vst [vmem:[#allocation6_spill] sm:$0xff] %v10022_v15 }
 0x8c1   :  { %v5064_v29 = vadd.f32 %v5063_v0, %v5062_v24  ;;  %v4737_v32 = vpop.f32.mrb[99].mxu1  ;;  %v4746_v26 = vadd.f32 %v6160_v50, %v9785_v46  ;;  %v10025_v2 = vmul.f32 %v10022_v15, %v4743_v33  ;;  %v10032_v24 = vpop.permute.xlu0 %4906 }
 0x8c2   :  { %v10018_v10 = vmul.f32 %v10002_v20, %v4735_v19  ;;  %v4738_v49 = vadd.f32 %v9785_v46, %v4737_v32  ;;  %11382 = vst [vmem:[#allocation67_spill] sm:$0xff] %v10032_v24 }
 0x8c3   :  { %v5066_v37 = vadd.f32 %v5065_v30, %v5064_v29  ;;  %v10035_v20 = vmul.f32 %v10032_v24, %v4746_v26  ;;  %v5071_v33 = vsel %vm82_vm1, %v10025_v2, 0.0  ;;  %v5084_v15 = vpop.permute.xlu1 %5083 }
 0x8c4   :  { %v5067_v0 = vsel %vm82_vm1, %v10018_v10, 0.0  ;;  %v10030_v47 = vmul.f32 %v10009_v11, %v4738_v49  ;;  %6340 = vrcp.f32 %v5084_v15 }
 0x8c5   :  { %v5068_v19 = vadd.f32 %v5067_v0, %v5066_v37  ;;  %v5073_v32 = vsel %vm82_vm1, %v10035_v20, 0.0 }
 0x8c6   :  { %v5069_v46 = vsel %vm82_vm1, %v10030_v47, 0.0 }
 0x8c7   :  { %v5070_v50 = vadd.f32 %v5069_v46, %v5068_v19 }
 0x8c9   :  { %v5072_v29 = vadd.f32 %v5071_v33, %v5070_v50 }
 0x8cb   :  { %v5074_v30 = vadd.f32 %v5073_v32, %v5072_v29 }
 0x8cd   :  { %v5075_v49 = vrot.slane %v5074_v30, 4 }
 0x8ce   :  { %v10043_v41 = vpop.eup %6340 }
 0x8cf   :  { %v5076_v11 = vadd.f32 %v5075_v49, %v5074_v30 }
 0x8d1   :  { %v5077_v37 = vrot.slane %v5076_v11, 2 }
 0x8d3   :  { %v5078_v0 = vadd.f32 %v5077_v37, %v5076_v11 }
 0x8d5   :  { %v5079_v26 = vrot.slane %v5078_v0, 1 }
 0x8d7   :  { %v5080_v24 = vadd.f32 %v5079_v26, %v5078_v0 }
 0x8d9   :  { %v10046_v19 = vmul.f32 %v10043_v41, %v5080_v24 }
 0x8db   :  { %v5088_v26 = vsub.f32 %v9798_v51, %v10046_v19  ;;  %v5089_v24 = vsub.f32 %v9794_v3, %v10046_v19  ;;  %v5090_v32 = vsub.f32 %v9807_v56, %v10046_v19  ;;  %v5091_v30 = vsub.f32 %v9816_v1, %v10046_v19 }
 0x8dc   :  { %v5092_v0 = vsub.f32 %v9821_v39, %v10046_v19  ;;  %v5093_v3 = vsub.f32 %v9831_v28, %v10046_v19  ;;  %v5095_v28 = vsub.f32 %v9848_v22, %v10046_v19  ;;  %v5097_v46 = vsub.f32 %v9863_v36, %v10046_v19 }
 0x8dd   :  { %v10081_v49 = vmul.f32 %v9791_v16, %v5088_v26  ;;  %v10084_v37 = vmul.f32 %v9788_v34, %v5089_v24  ;;  %v10089_v51 = vmul.f32 %v5090_v32, %v9802_v17  ;;  %v10094_v56 = vmul.f32 %v5091_v30, %v9804_v57 }
 0x8de   :  { %v5094_v24 = vsub.f32 %v9839_v42, %v10046_v19  ;;  %v10103_v39 = vmul.f32 %v5092_v0, %v9818_v5  ;;  %v10110_v30 = vmul.f32 %v5093_v3, %v9826_v31  ;;  %v5096_v0 = vsub.f32 %v9853_v55, %v10046_v19 }
 0x8df   :  { %v5152_v1 = vmul.f32 %v10081_v49, %v10081_v49  ;;  %v5153_v26 = vmul.f32 %v10084_v37, %v10084_v37  ;;  %v5154_v32 = vmul.f32 %v10089_v51, %v10089_v51  ;;  %v5155_v29 = vmul.f32 %v10094_v56, %v10094_v56 }
 0x8e0   :  { %v10119_v33 = vmul.f32 %v5094_v24, %v9836_v40  ;;  %v5156_v22 = vmul.f32 %v10103_v39, %v10103_v39  ;;  %v10135_v24 = vmul.f32 %v5096_v0, %v9850_v43 }
 0x8e1   :  { %v5184_v11 = vsel %vm82_vm1, %v5152_v1, 0.0  ;;  %v5185_v15 = vsel %vm82_vm1, %v5153_v26, 0.0  ;;  %v5187_v3 = vsel %vm82_vm1, %v5154_v32, 0.0  ;;  %v10127_v1 = vmul.f32 %v5095_v28, %v9843_v54  ;;  %v5353_v28 = vld [vmem:[%s10522_s7 + $0x8] sm:$0xff] }
 0x8e2   :  { %v5186_v42 = vadd.f32 %v5185_v15, %v5184_v11  ;;  %v5157_v15 = vmul.f32 %v10110_v30, %v10110_v30  ;;  %v5189_v55 = vsel %vm82_vm1, %v5155_v29, 0.0  ;;  %v5098_v26 = vsub.f32 %v9871_v12, %v10046_v19  ;;  %5418 = vmatprep.mubr.f32.mxu0 %v5353_v28 }
 0x8e3   :  { %v5158_v32 = vmul.f32 %v10119_v33, %v10119_v33  ;;  %v5191_v36 = vsel %vm82_vm1, %v5156_v22, 0.0  ;;  %v5099_v29 = vsub.f32 %v9880_v62, %v10046_v19  ;;  %v5159_v12 = vmul.f32 %v10127_v1, %v10127_v1 }
 0x8e4   :  { %v5188_v50 = vadd.f32 %v5187_v3, %v5186_v42  ;;  %v5193_v0 = vsel %vm82_vm1, %v5157_v15, 0.0  ;;  %v5100_v22 = vsub.f32 %v9885_v52, %v10046_v19 }
 0x8e5   :  { %v5195_v62 = vsel %vm82_vm1, %v5158_v32, 0.0  ;;  %v5197_v52 = vsel %vm82_vm1, %v5159_v12, 0.0 }
 0x8e6   :  { %v5190_v11 = vadd.f32 %v5189_v55, %v5188_v50  ;;  %v10146_v50 = vmul.f32 %v5097_v46, %v9858_v23  ;;  %v10154_v55 = vmul.f32 %v5098_v26, %v9868_v9  ;;  %v10162_v23 = vmul.f32 %v5099_v29, %v9875_v58 }
 0x8e7   :  { %v5102_v26 = vsub.f32 %v9903_v45, %v10046_v19  ;;  %v10170_v28 = vmul.f32 %v5100_v22, %v9882_v48  ;;  %v5103_v29 = vsub.f32 %v9912_v8, %v10046_v19  ;;  %v5104_v22 = vsub.f32 %v9917_v60, %v10046_v19 }
 0x8e8   :  { %v5192_v42 = vadd.f32 %v5191_v36, %v5190_v11  ;;  %v5160_v11 = vmul.f32 %v10135_v24, %v10135_v24  ;;  %v5101_v36 = vsub.f32 %v9895_v59, %v10046_v19  ;;  %v5161_v15 = vmul.f32 %v10146_v50, %v10146_v50 }
 0x8e9   :  { %v5162_v32 = vmul.f32 %v10154_v55, %v10154_v55  ;;  %v5163_v12 = vmul.f32 %v10162_v23, %v10162_v23 }
 0x8ea   :  { %v5194_v3 = vadd.f32 %v5193_v0, %v5192_v42  ;;  %v5199_v59 = vsel %vm82_vm1, %v5160_v11, 0.0  ;;  %v5201_v45 = vsel %vm82_vm1, %v5161_v15, 0.0  ;;  %v5164_v11 = vmul.f32 %v10170_v28, %v10170_v28 }
 0x8eb   :  { %v5203_v8 = vsel %vm82_vm1, %v5162_v32, 0.0  ;;  %v5205_v60 = vsel %vm82_vm1, %v5163_v12, 0.0 }
 0x8ec   :  { %v5196_v46 = vadd.f32 %v5195_v62, %v5194_v3  ;;  %v10178_v3 = vmul.f32 %v5101_v36, %v9890_v6  ;;  %v5105_v36 = vsub.f32 %v9927_v27, %v10046_v19  ;;  %v5207_v27 = vsel %vm82_vm1, %v5164_v11, 0.0 }
 0x8ee   :  { %v5198_v42 = vadd.f32 %v5197_v52, %v5196_v46  ;;  %11383 = vst [vmem:[#allocation60_spill] sm:$0xff] %v10178_v3  ;;  %v10186_v46 = vmul.f32 %v5102_v26, %v9900_v7  ;;  %v5165_v15 = vmul.f32 %v10178_v3, %v10178_v3  ;;  %v5106_v26 = vsub.f32 %v9935_v13, %v10046_v19 }
 0x8f0   :  { %v5200_v0 = vadd.f32 %v5199_v59, %v5198_v42  ;;  %11384 = vst [vmem:[#allocation58_spill] sm:$0xff] %v10186_v46  ;;  %v10194_v42 = vmul.f32 %v5103_v29, %v9906_v63  ;;  %v5166_v32 = vmul.f32 %v10186_v46, %v10186_v46  ;;  %v5107_v29 = vsub.f32 %v9943_v18, %v10046_v19 }
 0x8f1   :  { %v5209_v13 = vsel %vm82_vm1, %v5165_v15, 0.0  ;;  %v11389_v15 = vld [vmem:[#allocation19_spill] sm:$0xff] }
 0x8f2   :  { %v5202_v62 = vadd.f32 %v5201_v45, %v5200_v0  ;;  %11385 = vst [vmem:[#allocation59_spill] sm:$0xff] %v10194_v42  ;;  %v10202_v0 = vmul.f32 %v5104_v22, %v9914_v35  ;;  %v5167_v12 = vmul.f32 %v10194_v42, %v10194_v42  ;;  %v11387_v22 = vld [vmem:[#allocation161_spill] sm:$0xff]  ;;  %v5211_v11 = vsel %vm82_vm1, %v5166_v32, 0.0 }
 0x8f4   :  { %v5204_v52 = vadd.f32 %v5203_v8, %v5202_v62  ;;  %v11386_v62 = vld [vmem:[#allocation166_spill] sm:$0xff]  ;;  %v5168_v63 = vmul.f32 %v10202_v0, %v10202_v0  ;;  %v5213_v7 = vsel %vm82_vm1, %v5167_v12, 0.0 }
 0x8f5   :  { %v10210_v8 = vmul.f32 %v5105_v36, %v11386_v62 }
 0x8f6   :  { %v5206_v59 = vadd.f32 %v5205_v60, %v5204_v52  ;;  %v10216_v60 = vmul.f32 %v5106_v26, %v11387_v22  ;;  %v11390_v26 = vsub.f32 %v9954_v53, %v10046_v19  ;;  %v5215_v32 = vsel %vm82_vm1, %v5168_v63, 0.0 }
 0x8f7   :  { %v5169_v36 = vmul.f32 %v10210_v8, %v10210_v8 }
 0x8f8   :  { %v5208_v45 = vadd.f32 %v5207_v27, %v5206_v59  ;;  %v11388_v27 = vld [vmem:[#allocation16_spill] sm:$0xff] }
 0x8f9   :  { %v10222_v18 = vmul.f32 %v5107_v29, %v11388_v27  ;;  %v11391_v29 = vld [vmem:[#allocation159_spill] sm:$0xff]  ;;  %v5217_v12 = vsel %vm82_vm1, %v5169_v36, 0.0 }
 0x8fa   :  { %v5210_v52 = vadd.f32 %v5209_v13, %v5208_v45  ;;  %v10231_v45 = vmul.f32 %v11390_v26, %v11389_v15  ;;  %v5170_v13 = vmul.f32 %v10216_v60, %v10216_v60  ;;  %v11394_v26 = vsub.f32 %v9961_v4, %v10046_v19 }
 0x8fc   :  { %v5212_v59 = vadd.f32 %v5211_v11, %v5210_v52  ;;  %v11392_v11 = vsub.f32 %v9966_v14, %v10046_v19  ;;  %v5219_v63 = vsel %vm82_vm1, %v5170_v13, 0.0 }
 0x8fe   :  { %v5214_v6 = vadd.f32 %v5213_v7, %v5212_v59  ;;  %v10240_v48 = vmul.f32 %v11392_v11, %v11391_v29  ;;  %v5171_v7 = vmul.f32 %v10222_v18, %v10222_v18  ;;  %v11393_v59 = vld [vmem:[#allocation177_spill] sm:$0xff]  ;;  %v11396_v11 = vsub.f32 %v9971_v44, %v10046_v19 }
 0x8ff   :  { %v10249_v58 = vmul.f32 %v11394_v26, %v11393_v59  ;;  %v11398_v26 = vsub.f32 %v9990_v61, %v10046_v19 }
 0x900   :  { %v5216_v52 = vadd.f32 %v5215_v32, %v5214_v6  ;;  %v5172_v6 = vmul.f32 %v10231_v45, %v10231_v45  ;;  %v11395_v32 = vld [vmem:[#allocation20_spill] sm:$0xff]  ;;  %v5173_v36 = vmul.f32 %v10240_v48, %v10240_v48 }
 0x901   :  { %v10258_v9 = vmul.f32 %v11396_v11, %v11395_v32  ;;  %v5174_v13 = vmul.f32 %v10249_v58, %v10249_v58  ;;  %v11400_v11 = vsub.f32 %v10000_v38, %v10046_v19 }
 0x902   :  { %v5218_v53 = vadd.f32 %v5217_v12, %v5216_v52  ;;  %v5221_v52 = vsel %vm82_vm1, %v5171_v7, 0.0  ;;  %v11397_v12 = vld [vmem:[#allocation29_spill] sm:$0xff] }
 0x903   :  { %v10267_v42 = vmul.f32 %v11398_v26, %v11397_v12  ;;  %v5175_v7 = vmul.f32 %v10258_v9, %v10258_v9  ;;  %v11402_v26 = vsub.f32 %v9995_v21, %v10046_v19 }
 0x904   :  { %v5220_v14 = vadd.f32 %v5219_v63, %v5218_v53  ;;  %v5223_v53 = vsel %vm82_vm1, %v5172_v6, 0.0  ;;  %v11399_v63 = vld [vmem:[#allocation39_spill] sm:$0xff] }
 0x905   :  { %v10276_v46 = vmul.f32 %v11400_v11, %v11399_v63  ;;  %v5176_v6 = vmul.f32 %v10267_v42, %v10267_v42  ;;  %v11404_v11 = vsub.f32 %v10005_v25, %v10046_v19 }
 0x906   :  { %v5222_v4 = vadd.f32 %v5221_v52, %v5220_v14  ;;  %v5225_v14 = vsel %vm82_vm1, %v5173_v36, 0.0  ;;  %v11401_v52 = vld [vmem:[#allocation57_spill] sm:$0xff] }
 0x907   :  { %v10285_v43 = vmul.f32 %v11402_v26, %v11401_v52  ;;  %v5177_v36 = vmul.f32 %v10276_v46, %v10276_v46  ;;  %v11406_v26 = vsub.f32 %v10018_v10, %v10046_v19 }
 0x908   :  { %v5224_v44 = vadd.f32 %v5223_v53, %v5222_v4  ;;  %v5227_v4 = vsel %vm82_vm1, %v5174_v13, 0.0  ;;  %v11403_v53 = vld [vmem:[#allocation5_spill] sm:$0xff] }
 0x909   :  { %v10294_v3 = vmul.f32 %v11404_v11, %v11403_v53  ;;  %v5178_v13 = vmul.f32 %v10285_v43, %v10285_v43  ;;  %v11409_v11 = vsub.f32 %v10030_v47, %v10046_v19 }
 0x90a   :  { %v5226_v61 = vadd.f32 %v5225_v14, %v5224_v44  ;;  %v5229_v44 = vsel %vm82_vm1, %v5175_v7, 0.0  ;;  %v11405_v14 = vld [vmem:[#allocation65_spill] sm:$0xff] }
 0x90b   :  { %v10303_v52 = vmul.f32 %v11406_v26, %v11405_v14  ;;  %v5179_v7 = vmul.f32 %v10294_v3, %v10294_v3  ;;  %v11412_v26 = vsub.f32 %v10025_v2, %v10046_v19 }
 0x90c   :  { %v5228_v38 = vadd.f32 %v5227_v4, %v5226_v61  ;;  %v5231_v61 = vsel %vm82_vm1, %v5176_v6, 0.0  ;;  %v11408_v4 = vld [vmem:[#allocation55_spill] sm:$0xff] }
 0x90d   :  { %11407 = vst [vmem:[#allocation61_spill] sm:$0xff] %v10303_v52  ;;  %v10312_v53 = vmul.f32 %v11409_v11, %v11408_v4  ;;  %v5180_v6 = vmul.f32 %v10303_v52, %v10303_v52  ;;  %v11415_v11 = vsub.f32 %v10035_v20, %v10046_v19 }
 0x90e   :  { %v5230_v21 = vadd.f32 %v5229_v44, %v5228_v38  ;;  %v5233_v38 = vsel %vm82_vm1, %v5177_v36, 0.0  ;;  %v11411_v44 = vld [vmem:[#allocation6_spill] sm:$0xff] }
 0x90f   :  { %11410 = vst [vmem:[#allocation62_spill] sm:$0xff] %v10312_v53  ;;  %v10321_v14 = vmul.f32 %v11412_v26, %v11411_v44  ;;  %v5181_v36 = vmul.f32 %v10312_v53, %v10312_v53  ;;  %v5239_v26 = vsel %vm82_vm1, %v5180_v6, 0.0 }
 0x910   :  { %v5232_v25 = vadd.f32 %v5231_v61, %v5230_v21  ;;  %v5235_v21 = vsel %vm82_vm1, %v5178_v13, 0.0  ;;  %v11414_v61 = vld [vmem:[#allocation67_spill] sm:$0xff] }
 0x911   :  { %11413 = vst [vmem:[#allocation75_spill] sm:$0xff] %v10321_v14  ;;  %v10330_v4 = vmul.f32 %v11415_v11, %v11414_v61 }
 0x912   :  { %v5234_v10 = vadd.f32 %v5233_v38, %v5232_v25  ;;  %v5237_v25 = vsel %vm82_vm1, %v5179_v7, 0.0  ;;  %v5182_v38 = vmul.f32 %v10321_v14, %v10321_v14 }
 0x913   :  { %v5183_v13 = vmul.f32 %v10330_v4, %v10330_v4 }
 0x914   :  { %v5236_v47 = vadd.f32 %v5235_v21, %v5234_v10  ;;  %v5241_v10 = vsel %vm82_vm1, %v5181_v36, 0.0  ;;  %v5243_v19 = vsel %vm82_vm1, %v5182_v38, 0.0 }
 0x915   :  { %v5245_v11 = vsel %vm82_vm1, %v5183_v13, 0.0 }
 0x916   :  { %v5238_v2 = vadd.f32 %v5237_v25, %v5236_v47 }
 0x918   :  { %v5240_v44 = vadd.f32 %v5239_v26, %v5238_v2 }
 0x91a   :  { %v5242_v20 = vadd.f32 %v5241_v10, %v5240_v44 }
 0x91c   :  { %v5244_v21 = vadd.f32 %v5243_v19, %v5242_v20 }
 0x91e   :  { %v5246_v61 = vadd.f32 %v5245_v11, %v5244_v21 }
 0x920   :  { %v5247_v7 = vrot.slane %v5246_v61, 4 }
 0x922   :  { %v5248_v47 = vadd.f32 %v5247_v7, %v5246_v61 }
 0x924   :  { %v5249_v25 = vrot.slane %v5248_v47, 2 }
 0x926   :  { %v5250_v53 = vadd.f32 %v5249_v25, %v5248_v47 }
 0x928   :  { %v5251_v14 = vrot.slane %v5250_v53, 1 }
 0x92a   :  { %v5252_v52 = vadd.f32 %v5251_v14, %v5250_v53 }
 0x92c   :  { %v5253_v6 = vmul.f32 %v10043_v41, %v5252_v52 }
 0x92e   :  { %v5254_v2 = vadd.f32 1e-05, %v5253_v6 }
 0x930   :  { %6342 = vrsqrt.f32 %v5254_v2 }
 0x93a   :  { %v10344_v26 = vpop.eup %6342 }
 0x93b   :  { %v5256_v44 = vmul.f32 %v10344_v26, %v10081_v49  ;;  %v5257_v36 = vmul.f32 %v10344_v26, %v10084_v37  ;;  %v5258_v38 = vmul.f32 %v10344_v26, %v10089_v51  ;;  %v5259_v61 = vmul.f32 %v10344_v26, %v10094_v56 }
 0x93c   :  { %v5272_v53 = vmul.f32 %v10344_v26, %v10202_v0  ;;  %v5273_v41 = vmul.f32 %v10344_v26, %v10210_v8  ;;  %v5260_v52 = vmul.f32 %v10344_v26, %v10103_v39  ;;  %v5261_v37 = vmul.f32 %v10344_v26, %v10110_v30 }
 0x93d   :  { %v5288_v14 = vmax.f32 %v5256_v44, 0.0  ;;  %v5289_v49 = vmax.f32 %v5257_v36, 0.0  ;;  %v5262_v51 = vmul.f32 %v10344_v26, %v10119_v33  ;;  %v5263_v56 = vmul.f32 %v10344_v26, %v10127_v1 }
 0x93e   :  { %v10368_v0 = vmul.f32 %v10344_v26, %v10135_v24  ;;  %v10372_v8 = vmul.f32 %v10344_v26, %v10146_v50  ;;  %v10376_v39 = vmul.f32 %v10344_v26, %v10154_v55  ;;  %v10380_v30 = vmul.f32 %v10344_v26, %v10162_v23 }
 0x93f   :  { %v10384_v33 = vmul.f32 %v10344_v26, %v10170_v28  ;;  %v5290_v1 = vmax.f32 %v5258_v38, 0.0  ;;  %v5291_v13 = vmax.f32 %v5259_v61, 0.0  ;;  %v5304_v24 = vmax.f32 %v5272_v53, 0.0 }
 0x940   :  { %v5305_v10 = vmax.f32 %v5273_v41, 0.0  ;;  %v5320_v20 = vmul.f32 %v9791_v16, %v5288_v14  ;;  %v5321_v50 = vmul.f32 %v9788_v34, %v5289_v49  ;;  %v5274_v55 = vmul.f32 %v10344_v26, %v10216_v60 }
 0x941   :  { %v5275_v19 = vmul.f32 %v10344_v26, %v10222_v18  ;;  %v5292_v23 = vmax.f32 %v5260_v52, 0.0  ;;  %v5293_v21 = vmax.f32 %v5261_v37, 0.0  ;;  %v5336_v11 = vmul.f32 %v5304_v24, %v9914_v35  ;;  %v11417_v24 = vld [vmem:[#allocation60_spill] sm:$0xff] }
 0x942   :  { %v5337_v28 = vmul.f32 %v5305_v10, %v11386_v62  ;;  %v10394_v7 = vpack.c.bf16 %v5321_v50, %v5320_v20  ;;  %v5306_v47 = vmax.f32 %v5274_v55, 0.0  ;;  %v5276_v16 = vmul.f32 %v10344_v26, %v10231_v45  ;;  %v11418_v50 = vld [vmem:[#allocation62_spill] sm:$0xff] }
 0x943   :  { %v5307_v25 = vmax.f32 %v5275_v19, 0.0  ;;  %v5294_v34 = vmax.f32 %v5262_v51, 0.0  ;;  %v5322_v60 = vmul.f32 %v5290_v1, %v9802_v17  ;;  %v5277_v18 = vmul.f32 %v10344_v26, %v10240_v48  ;;  %v11420_v19 = vld [vmem:[#allocation5_spill] sm:$0xff] }
 0x944   :  { %v10398_v6 = vpack.c.bf16 %v5337_v28, %v5336_v11  ;;  %v5338_v2 = vmul.f32 %v5306_v47, %v11387_v22  ;;  %v5323_v62 = vmul.f32 %v5291_v13, %v9804_v57  ;;  %v5308_v44 = vmax.f32 %v5276_v16, 0.0  ;;  %v11416_v13 = vld [vmem:[#allocation61_spill] sm:$0xff]  ;;  %v11421_v47 = vld [vmem:[#allocation75_spill] sm:$0xff] }
 0x945   :  { %v5339_v35 = vmul.f32 %v5307_v25, %v11388_v27  ;;  %v5295_v36 = vmax.f32 %v5263_v56, 0.0  ;;  %v5309_v38 = vmax.f32 %v5277_v18, 0.0  ;;  %v5278_v45 = vmul.f32 %v10344_v26, %v10249_v58  ;;  %v11422_v25 = vld [vmem:[#allocation21_spill] sm:$0xff] }
 0x946   :  { %6176 = vmatprep.subr.bf16.mxu0 %v10398_v6  ;;  %v5279_v17 = vmul.f32 %v10344_v26, %v10258_v9  ;;  %v5340_v22 = vmul.f32 %v5308_v44, %v11389_v15  ;;  %v5324_v27 = vmul.f32 %v5292_v23, %v9818_v5  ;;  %v5325_v57 = vmul.f32 %v5293_v21, %v9826_v31 }
 0x947   :  { %6178 = vmatpush3.bf16.msra.mxu0 %v10394_v7  ;;  %v10412_v48 = vpack.c.bf16 %v5339_v35, %v5338_v2  ;;  %v5341_v61 = vmul.f32 %v5309_v38, %v11391_v29  ;;  %v5310_v53 = vmax.f32 %v5278_v45, 0.0  ;;  %v5280_v58 = vmul.f32 %v10344_v26, %v10267_v42  ;;  %v11424_v2 = vld [vmem:[#allocation65_spill] sm:$0xff]  ;;  %v11426_v45 = vld [vmem:[#allocation58_spill] sm:$0xff] }
 0x948   :  { %v5311_v41 = vmax.f32 %v5279_v17, 0.0  ;;  %v5296_v52 = vmax.f32 %v10368_v0, 0.0  ;;  %v5297_v9 = vmax.f32 %v10372_v8, 0.0  ;;  %v10423_v14 = vpack.c.bf16 %v5323_v62, %v5322_v60  ;;  %v11425_v62 = vld [vmem:[#allocation55_spill] sm:$0xff] }
 0x949   :  { %6180 = vmatprep.subr.bf16.mxu0 %v10412_v48  ;;  %v5281_v5 = vmul.f32 %v10344_v26, %v10276_v46  ;;  %v10427_v15 = vpack.c.bf16 %v5341_v61, %v5340_v22  ;;  %v5342_v31 = vmul.f32 %v5310_v53, %v11393_v59  ;;  %v5312_v49 = vmax.f32 %v5280_v58, 0.0  ;;  %v11427_v22 = vld [vmem:[#allocation59_spill] sm:$0xff]  ;;  %v11428_v61 = vld [vmem:[#allocation6_spill] sm:$0xff] }
 0x94a   :  { %v5343_v29 = vmul.f32 %v5311_v41, %v11395_v32  ;;  %v5326_v42 = vmul.f32 %v5294_v34, %v9836_v40  ;;  %v5282_v51 = vmul.f32 %v10344_v26, %v10285_v43  ;;  %v5283_v56 = vmul.f32 %v10344_v26, %v10294_v3  ;;  %v11423_v34 = vld [vmem:[#allocation38_spill] sm:$0xff]  ;;  %v11429_v41 = vld [vmem:[#allocation67_spill] sm:$0xff] }
 0x94b   :  { %6182 = vmatpush3.bf16.msra.mxu0 %v10423_v14  ;;  %v5313_v37 = vmax.f32 %v5281_v5, 0.0  ;;  %v10438_v46 = vpack.c.bf16 %v5325_v57, %v5324_v27  ;;  %v5327_v59 = vmul.f32 %v5295_v36, %v9843_v54  ;;  %v5344_v32 = vmul.f32 %v5312_v49, %v11397_v12  ;;  %v11419_v12 = vld [vmem:[#allocation57_spill] sm:$0xff] }
 0x94c   :  { %6184 = vmatprep.subr.bf16.mxu0 %v10427_v15  ;;  %v10440_v0 = vpack.c.bf16 %v5343_v29, %v5342_v31  ;;  %v5314_v40 = vmax.f32 %v5282_v51, 0.0  ;;  %v5315_v1 = vmax.f32 %v5283_v56, 0.0  ;;  %v5284_v43 = vmul.f32 %v10344_v26, %v11416_v13  ;;  %v11430_v5 = vld [vmem:[#allocation41_spill] sm:$0xff]  ;;  %v11431_v29 = vld [vmem:[#allocation42_spill] sm:$0xff]  ;;  %v11435_v13 = vld [vmem:[#allocation40_spill] sm:$0xff] }
 0x94d   :  { %v5345_v8 = vmul.f32 %v5313_v37, %v11399_v63  ;;  %v5269_v3 = vmul.f32 %v10344_v26, %v11417_v24  ;;  %v5298_v10 = vmax.f32 %v10376_v39, 0.0  ;;  %v5299_v20 = vmax.f32 %v10380_v30, 0.0  ;;  %v11432_v56 = vld [vmem:[#allocation89_spill] sm:$0xff] }
 0x94e   :  { %v5285_v55 = vmul.f32 %v10344_v26, %v11418_v50  ;;  %v5346_v63 = vmul.f32 %v5314_v40, %v11419_v12  ;;  %v5347_v23 = vmul.f32 %v5315_v1, %v11420_v19  ;;  %v5316_v21 = vmax.f32 %v5284_v43, 0.0  ;;  %v11434_v40 = vld [vmem:[#allocation148_spill] sm:$0xff] }
 0x94f   :  { %6186 = vmatpush3.bf16.msra.mxu0 %v10438_v46  ;;  %v6191_v54 = vpack.c.bf16 %v5345_v8, %v5344_v32  ;;  %v6189_v11 = vpack.c.bf16 %v5327_v59, %v5326_v42  ;;  %v5286_v39 = vmul.f32 %v10344_v26, %v11421_v47  ;;  %v5287_v30 = vmul.f32 %v10344_v26, %v10330_v4  ;;  %v11433_v59 = vld [vmem:[#allocation43_spill] sm:$0xff] }
 0x950   :  { %6188 = vmatprep.subr.bf16.mxu0 %v10440_v0  ;;  %v5317_v28 = vmax.f32 %v5285_v55, 0.0  ;;  %v5328_v16 = vmul.f32 %v5296_v52, %v11422_v25  ;;  %v5329_v60 = vmul.f32 %v5297_v9, %v11423_v34  ;;  %v6195_v18 = vpack.c.bf16 %v5347_v23, %v5346_v63  ;;  %v5682_v55 = vld [vmem:[%s10525_s19] ss:$0 sm:$0xff] }
 0x951   :  { %v5348_v35 = vmul.f32 %v5316_v21, %v11424_v2  ;;  %v5318_v36 = vmax.f32 %v5286_v39, 0.0  ;;  %v5319_v38 = vmax.f32 %v5287_v30, 0.0  ;;  %v5270_v17 = vmul.f32 %v10344_v26, %v11426_v45 }
 0x952   :  { %v5349_v44 = vmul.f32 %v5317_v28, %v11425_v62  ;;  %v5271_v27 = vmul.f32 %v10344_v26, %v11427_v22  ;;  %v5300_v4 = vmax.f32 %v10384_v33, 0.0  ;;  %v5301_v52 = vmax.f32 %v5269_v3, 0.0  ;;  %v5352_v3 = vld [vmem:[%s10522_s7] sm:$0xff] }
 0x953   :  { %6190 = vmatpush3.bf16.msra.mxu0 %v6189_v11  ;;  %v5350_v53 = vmul.f32 %v5318_v36, %v11428_v61  ;;  %v5351_v58 = vmul.f32 %v5319_v38, %v11429_v41  ;;  %v6193_v9 = vpack.c.bf16 %v5329_v60, %v5328_v16  ;;  %v5330_v31 = vmul.f32 %v5298_v10, %v11430_v5  ;;  %v5425_v10 = vld [vmem:[%s10523_s8 + $0x8] sm:$0xff] }
 0x954   :  { %6192 = vmatprep.subr.bf16.mxu0 %v6191_v54  ;;  %v6199_v57 = vpack.c.bf16 %v5349_v44, %v5348_v35  ;;  %v5331_v49 = vmul.f32 %v5299_v20, %v11431_v29  ;;  %v5302_v37 = vmax.f32 %v5270_v17, 0.0  ;;  %v5303_v26 = vmax.f32 %v5271_v27, 0.0 }
 0x955   :  { %v6203_v42 = vpack.c.bf16 %v5351_v58, %v5350_v53  ;;  %v5332_v33 = vmul.f32 %v5300_v4, %v11432_v56  ;;  %v5333_v32 = vmul.f32 %v5301_v52, %v11433_v59 }
 0x956   :  { %v6197_v51 = vpack.c.bf16 %v5331_v49, %v5330_v31  ;;  %v5334_v1 = vmul.f32 %v5302_v37, %v11434_v40  ;;  %v5335_v43 = vmul.f32 %v5303_v26, %v11435_v13 }
 0x957   :  { %6194 = vmatpush3.bf16.msra.mxu0 %v6193_v9  ;;  %v6201_v8 = vpack.c.bf16 %v5333_v32, %v5332_v33 }
 0x958   :  { %6196 = vmatprep.subr.bf16.mxu0 %v6195_v18  ;;  %v6205_v24 = vpack.c.bf16 %v5335_v43, %v5334_v1 }
 0x95b   :  { %6198 = vmatpush3.bf16.msra.mxu0 %v6197_v51 }
 0x95c   :  { %6200 = vmatprep.subr.bf16.mxu0 %v6199_v57 }
 0x95f   :  { %6202 = vmatpush3.bf16.msra.mxu0 %v6201_v8 }
 0x960   :  { %6204 = vmatprep.subr.bf16.mxu0 %v6203_v42 }
 0x963   :  { %6206 = vmatpush3.bf16.msra.mxu0 %v6205_v24 }
 0x964   :  { %6208 = vmatprep.subr.bf16.mxu0 %v10398_v6  ;;  %v26_v6 = vstv %s10524_s20 }
 0x965   :  { %27 = vst [vmem:[#allocation2] sm:$0x1] %v26_v6 }
 0x966   :  { %5419 = vmatmul.mubr.f32.vlgmr.msra.gmra.mrb[80].mxu0 %v5352_v3 }
 0x967   :  { %6210 = vmatpush3.bf16.msra.mxu0 %v10394_v7  ;;  %5490 = vmatprep.mubr.f32.mxu0 %v5425_v10  ;;  %v5424_v7 = vld [vmem:[%s10523_s8] sm:$0xff] }
 0x968   :  { %6212 = vmatprep.subr.bf16.mxu0 %v10412_v48 }
 0x96b   :  { %6214 = vmatpush3.bf16.msra.mxu0 %v10423_v14 }
 0x96c   :  { %6216 = vmatprep.subr.bf16.mxu0 %v10427_v15  ;;  %v5683_v23 = vld [vmem:[#allocation2] ss:$0 sm:$0xff] }
 0x96f   :  { %6218 = vmatpush3.bf16.msra.mxu0 %v10438_v46 }
 0x970   :  { %6220 = vmatprep.subr.bf16.mxu0 %v10440_v0 }
 0x973   :  { %6222 = vmatpush3.bf16.msra.mxu0 %v6189_v11 }
 0x974   :  { %6224 = vmatprep.subr.bf16.mxu0 %v6191_v54  ;;  %v5499_v54 = vpop.permute.xlu0 %5498 }
 0x977   :  { %6226 = vmatpush3.bf16.msra.mxu0 %v6193_v9 }
 0x978   :  { %6228 = vmatprep.subr.bf16.mxu0 %v6195_v18 }
 0x97b   :  { %6230 = vmatpush3.bf16.msra.mxu0 %v6197_v51 }
 0x97c   :  { %6232 = vmatprep.subr.bf16.mxu0 %v6199_v57 }
 0x97f   :  { %6234 = vmatpush3.bf16.msra.mxu0 %v6201_v8 }
 0x980   :  { %6236 = vmatprep.subr.bf16.mxu0 %v6203_v42 }
 0x983   :  { %6238 = vmatpush3.bf16.msra.mxu0 %v6205_v24 }
 0x986   :  { %5491 = vmatmul.mubr.f32.vlgmr.msra.gmra.mrb[82].mxu0 %v5424_v7 }
 0xa39   :  { %v5859_v48 = vpop.f32.mrb[80].mxu0 }
 0xa3a   :  { %v5860_v14 = vpop.f32.mrb[81].mxu0 }
 0xa3b   :  { %v5861_v15 = vadd.f32 %v5860_v14, %v5859_v48 }
 0xa59   :  { %v5894_v46 = vpop.f32.mrb[82].mxu0 }
 0xa5a   :  { %v5895_v0 = vpop.f32.mrb[83].mxu0 }
 0xa5b   :  { %v5896_v20 = vadd.f32 %v5895_v0, %v5894_v46 }
 0xa5d   :  { %v5496_v50 = vmul.f32 %v5896_v20, %v5861_v15 }
 0xa5f   :  { %v5501_v12 = vsel %vm82_vm1, %v5496_v50, %v5499_v54 }
 0xa60   :  { %v5509_v63 = vmul.f32 %v5682_v55, %v5501_v12 }
 0xa62   :  { %v5510_v19 = vsel %vm1424_vm3, %v5509_v63, 0.0 }
 0xa63   :  { %5511 = vadd.xlane.f32.xlu1 %v5510_v19 }
 0xaf0   :  { %v5512_v21 = vpop.xlane.xlu1 %5511 }
 0xaf1   :  { %v5520_v11 = vadd.f32 %v5683_v23, %v5512_v21 }
 0xaf3   :  { %5522 = vst.msk [vmem:[%s10526_s21] sm:$0xff] %vm5521_vm5, %v5520_v11 }

</bundles_post_ra>
